<compile_context>
chip_gen: v6e
topology: v6e:2x2x1
jax: 0.10.0
libtpu: 0.0.40
codegen_flags: <defaults>
</compile_context>

<pallas_src>
import jax
import jax.numpy as jnp
import numpy as np
from jax import lax
from jax.experimental import pallas as pl
from jax.experimental.pallas import tpu as pltpu

TARGET_FRAMES = 16  # conv in/out channels == LSTM sequence length (conv batch == 1)
LANE = 128


def _round_up(x, m):
    return ((x + m - 1) // m) * m


def _sigmoid_ref(z):
    return 1.0 / (1.0 + jnp.exp(-z))


def make_cnn_lstm_kernel(n_layers, H, Gp, T):
    """Builds the fused forward kernel (closure fixes layer count / sizes).

    H  : native hidden size (32)            -> h, c are (1, H) values
    Gp : lane-padded gate width >= 4H (128) -> one vreg of gates per layer-step
    """

    def kernel(*refs):
        # inputs : patches(CKK,Fp) bf16, conv_w(Cout,CKK) bf16, conv_b(Cout,1) f32,
        #          w0ih_T(Fp,Gp) bf16, w0hh_T(H,Gp) bf16, b0(1,Gp) f32,
        #          [w_ih_T(H,Gp) bf16, w_hh_T(H,Gp) bf16, b_l(1,Gp) f32] * (n_layers-1),
        #          lin_w(1,H) f32, lin_b(1,1) f32
        # outputs: y(1,1) f32
        # scratch: xp(T,Gp) f32  (hoisted layer-0 input projection)
        idx = 0
        p_ref = refs[idx]; idx += 1
        wc_ref = refs[idx]; idx += 1
        bc_ref = refs[idx]; idx += 1
        w0ih_ref = refs[idx]; idx += 1
        w0hh_ref = refs[idx]; idx += 1
        b0_ref = refs[idx]; idx += 1
        deep = []
        for _ in range(n_layers - 1):
            deep.append((refs[idx], refs[idx + 1], refs[idx + 2]))
            idx += 3
        wlin_ref = refs[idx]; idx += 1
        blin_ref = refs[idx]; idx += 1
        y_ref = refs[idx]; idx += 1
        xp_ref = refs[idx]; idx += 1

        # --- Conv2d(16,16,k=3,s=2) as one bf16 MXU matmul over im2col patches (local value) ---
        xs = (
            jnp.dot(wc_ref[...], p_ref[...], preferred_element_type=jnp.float32)
            + bc_ref[...]
        )  # (T, Fp) f32 == seq.view(TARGET_FRAMES, -1), lane-padded

        # --- Hoisted layer-0 input projection for all T timesteps (single M=16 matmul) ---
        # Padded xs columns (>= n_features) hold the conv bias, but the corresponding rows
        # of w0ih_T are exactly zero, so they never contaminate the gates.
        xp_ref[...] = (
            jnp.dot(xs.astype(jnp.bfloat16), w0ih_ref[...],
                    preferred_element_type=jnp.float32)
            + b0_ref[...]
        )  # (T, Gp) f32, bias (b_ih0 + b_hh0) already folded in

        # --- per-lane fused-nonlinearity constants, hoisted out of the recurrence ---
        # gate layout in one vreg: lanes [0:H)=i, [H:2H)=f, [2H:3H)=g, [3H:4H)=o (PyTorch order)
        # sigmoid(z) = 0.5*tanh(0.5*z) + 0.5 on i/f/o lanes ; tanh(z) on g lanes
        lane = lax.broadcasted_iota(jnp.int32, (1, Gp), 1)
        is_g = jnp.logical_and(lane >= 2 * H, lane < 3 * H)
        g_scale = jnp.where(is_g, 1.0, 0.5).astype(jnp.float32)   # pre- and post-scale
        g_offset = jnp.where(is_g, 0.0, 0.5).astype(jnp.float32)

        def _gate(z, c_prev):
            # z: (1, Gp) f32 pre-activations; ONE EUP tanh for all four gates.
            act = g_scale * jnp.tanh(g_scale * z) + g_offset
            i_g = act[:, 0 * H:1 * H]
            f_g = act[:, 1 * H:2 * H]
            g_g = act[:, 2 * H:3 * H]
            o_g = act[:, 3 * H:4 * H]
            c_new = f_g * c_prev + i_g * g_g
            h_new = o_g * jnp.tanh(c_new)
            return h_new, c_new

        # --- stacked LSTM, batch=1, zero initial (h, c) ---
        init_h = tuple(jnp.zeros((1, H), jnp.float32) for _ in range(n_layers))
        init_c = tuple(jnp.zeros((1, H), jnp.float32) for _ in range(n_layers))

        def step(t, carry):
            hs, cs = carry
            new_hs, new_cs = [], []
            # layer 0: input projection precomputed above; one (1,H)x(H,Gp) single-tile dot
            gates0 = xp_ref[pl.ds(t, 1), :] + jnp.dot(
                hs[0].astype(jnp.bfloat16), w0hh_ref[...],
                preferred_element_type=jnp.float32)
            h_new, c_new = _gate(gates0, cs[0])
            new_hs.append(h_new); new_cs.append(c_new)
            inp = h_new
            # deeper layers: two accumulating single-tile dots (no lane concat on crit path)
            for l in range(1, n_layers):
                wih_ref, whh_ref, bl_ref = deep[l - 1]
                gates = (
                    jnp.dot(inp.astype(jnp.bfloat16), wih_ref[...],
                            preferred_element_type=jnp.float32)
                    + jnp.dot(hs[l].astype(jnp.bfloat16), whh_ref[...],
                              preferred_element_type=jnp.float32)
                    + bl_ref[...]
                )  # (1, Gp)
                h_new, c_new = _gate(gates, cs[l])
                new_hs.append(h_new); new_cs.append(c_new)
                inp = h_new
            return tuple(new_hs), tuple(new_cs)

        hs, _ = lax.fori_loop(0, T, step, (init_h, init_c), unroll=True)
        # lstm_out.view(seq_len=16, 1, H)[-1] == top-layer hidden at the last timestep
        last_h = hs[n_layers - 1]  # (1, H) f32

        # --- Linear(n_hidden -> 1) as VPU multiply + lane reduction (XLU slot is idle) ---
        y_ref[...] = (
            jnp.sum(last_h * wlin_ref[...], axis=-1, keepdims=True) + blin_ref[...]
        )

    return kernel


def cnn_lstm_forward(x, params, *, n_hidden, n_layers):
    """x: (1, TARGET_FRAMES, H, W) float32 (NCHW, like the PyTorch module)."""
    N, C, Hin, Win = x.shape
    assert N == 1 and C == TARGET_FRAMES
    K, S = 3, 2
    Ho = (Hin - K) // S + 1
    Wo = (Win - K) // S + 1
    n_features = Ho * Wo
    T = TARGET_FRAMES
    H = n_hidden
    Fp = _round_up(n_features, LANE)   # lane-padded LSTM input width
    Gp = _round_up(4 * H, LANE)        # native gate width (4*32 = 128 -> exactly one vreg)

    wdt = jnp.bfloat16                 # weight / patch dtype (f32 accumulate in-kernel)

    # im2col (host-side reindexing glue):
    # patches[ci*9 + kh*3 + kw, oi*Wo + oj] = x[0, ci, 2*oi+kh, 2*oj+kw]
    xc = x[0]
    cols = []
    for kh in range(K):
        for kw in range(K):
            cols.append(xc[:, kh:kh + S * Ho:S, kw:kw + S * Wo:S])  # (C, Ho, Wo)
    patches = jnp.stack(cols, axis=1).reshape(C * K * K, n_features)
    patches = jnp.pad(patches, ((0, 0), (0, Fp - n_features)))      # (CKK, Fp)

    wc = params["conv_w"].reshape(TARGET_FRAMES, C * K * K).astype(wdt)   # (Cout, C*K*K)
    bc = params["conv_b"].reshape(TARGET_FRAMES, 1).astype(jnp.float32)

    def pad_gates_T(w, in_dim, in_pad):
        # (4H, in_dim) -> transposed, zero-padded (in_pad, Gp); gates stay contiguous [i|f|g|o]
        out = jnp.zeros((in_pad, Gp), jnp.float32)
        out = out.at[:in_dim, :4 * H].set(jnp.transpose(w))
        return out.astype(wdt)

    def pad_bias(b_ih, b_hh):
        out = jnp.zeros((1, Gp), jnp.float32)
        return out.at[0, :4 * H].set(b_ih + b_hh)

    ins = [patches.astype(wdt), wc, bc]

    # layer 0: hoisted ih-projection weight + separate hh weight
    w_ih0, w_hh0, b_ih0, b_hh0 = params["lstm"][0]
    ins.append(pad_gates_T(w_ih0, n_features, Fp))   # (Fp, Gp) bf16
    ins.append(pad_gates_T(w_hh0, H, H))             # (H, Gp)  bf16
    ins.append(pad_bias(b_ih0, b_hh0))               # (1, Gp)  f32

    # deeper layers: separate single-tile ih / hh weights (two accumulating dots per step)
    for l in range(1, n_layers):
        w_ih, w_hh, b_ih, b_hh = params["lstm"][l]
        ins.append(pad_gates_T(w_ih, H, H))          # (H, Gp) bf16
        ins.append(pad_gates_T(w_hh, H, H))          # (H, Gp) bf16
        ins.append(pad_bias(b_ih, b_hh))             # (1, Gp) f32

    ins.append(params["lin_w"].reshape(1, H).astype(jnp.float32))   # (1, H) f32 (VPU path)
    ins.append(params["lin_b"].reshape(1, 1).astype(jnp.float32))   # (1, 1)

    kernel = make_cnn_lstm_kernel(n_layers, H, Gp, T)
    vmem = pl.BlockSpec(memory_space=pltpu.MemorySpace.VMEM)

    # TODO(synk): if the caller ever has a batch of independent sequences, fold it into the
    # matmul M dimension and add a "parallel" grid axis so both v7x TensorCores are used.
    y = pl.pallas_call(
        kernel,
        out_shape=jax.ShapeDtypeStruct((1, 1), jnp.float32),
        in_specs=[vmem] * len(ins),
        out_specs=vmem,
        scratch_shapes=[
            pltpu.VMEM((T, Gp), jnp.float32),   # hoisted layer-0 input projection
        ],
    )(*ins)
    return y


def reference_forward(x, params, n_hidden, n_layers):
    """Pure-JAX f32 reference of the PyTorch forward (for correctness check)."""
    out = lax.conv_general_dilated(
        x, params["conv_w"], window_strides=(2, 2), padding="VALID",
        dimension_numbers=("NCHW", "OIHW", "NCHW"))
    out = out + params["conv_b"].reshape(1, -1, 1, 1)
    seq = out.reshape(TARGET_FRAMES, -1)            # (16, n_features)
    H = n_hidden
    hs = [jnp.zeros((H,), jnp.float32) for _ in range(n_layers)]
    cs = [jnp.zeros((H,), jnp.float32) for _ in range(n_layers)]
    outs = []
    for t in range(TARGET_FRAMES):
        inp = seq[t]
        for l in range(n_layers):
            w_ih, w_hh, b_ih, b_hh = params["lstm"][l]
            g = w_ih @ inp + b_ih + w_hh @ hs[l] + b_hh
            i = _sigmoid_ref(g[0:H]); f = _sigmoid_ref(g[H:2 * H])
            gg = jnp.tanh(g[2 * H:3 * H]); o = _sigmoid_ref(g[3 * H:4 * H])
            cs[l] = f * cs[l] + i * gg
            hs[l] = o * jnp.tanh(cs[l])
            inp = hs[l]
        outs.append(hs[-1])
    lstm_out = jnp.stack(outs)                        # (16, H)
    last = lstm_out.reshape(TARGET_FRAMES, 1, H)[-1]  # seq_len=16, conv batch=1
    return last @ params["lin_w"].T + params["lin_b"]


def init_params(key, n_features, n_hidden, n_layers):
    """Deterministic synthetic parameters (shapes follow the nn.Module __init__)."""
    ks = jax.random.split(key, 4 + n_layers)
    scale = 0.1
    params = {
        "conv_w": scale * jax.random.normal(
            ks[0], (TARGET_FRAMES, TARGET_FRAMES, 3, 3), jnp.float32),
        "conv_b": scale * jax.random.normal(ks[1], (TARGET_FRAMES,), jnp.float32),
        "lin_w": scale * jax.random.normal(ks[2], (1, n_hidden), jnp.float32),
        "lin_b": scale * jax.random.normal(ks[3], (1,), jnp.float32),
        "lstm": [],
    }
    for l in range(n_layers):
        in_dim = n_features if l == 0 else n_hidden
        k0, k1, k2, k3 = jax.random.split(ks[4 + l], 4)
        params["lstm"].append((
            scale * jax.random.normal(k0, (4 * n_hidden, in_dim), jnp.float32),
            scale * jax.random.normal(k1, (4 * n_hidden, n_hidden), jnp.float32),
            scale * jax.random.normal(k2, (4 * n_hidden,), jnp.float32),
            scale * jax.random.normal(k3, (4 * n_hidden,), jnp.float32),
        ))
    return params


# TODO(synk): the PyTorch module also mutates `self.hidden` as a side effect; Pallas
# kernels are functional, so only the returned y_pred is reproduced here.

if __name__ == "__main__":
    key = jax.random.PRNGKey(0)
    kx, kp = jax.random.split(key)

    Hin = Win = 16
    n_hidden = 32
    n_layers = 2
    Ho = (Hin - 3) // 2 + 1                 # 7
    n_features = Ho * Ho                    # 49
    # seq_len * len(conv_out) == TARGET_FRAMES with conv batch 1 => seq_len == 16

    x = jax.random.normal(kx, (1, TARGET_FRAMES, Hin, Win), jnp.float32)
    params = init_params(kp, n_features, n_hidden, n_layers)

    y = cnn_lstm_forward(x, params, n_hidden=n_hidden, n_layers=n_layers)
    y = jax.block_until_ready(y)

    y_ref = reference_forward(x, params, n_hidden, n_layers)
    assert y.shape == (1, 1)
    # bf16 weights/patches (f32 accumulate) => slightly wider tolerance than pure f32
    np.testing.assert_allclose(np.asarray(y), np.asarray(y_ref), rtol=2e-2, atol=2e-2)

    print("KERNEL_OK")
</pallas_src>

<mosaic_0001>
module attributes {stable_mosaic.version = 11 : i64} {
  func.func @kernel(%arg0: memref<144x128xbf16, #tpu.memory_space<vmem>>, %arg1: memref<16x144xbf16, #tpu.memory_space<vmem>>, %arg2: memref<16x1xf32, #tpu.memory_space<vmem>>, %arg3: memref<128x128xbf16, #tpu.memory_space<vmem>>, %arg4: memref<32x128xbf16, #tpu.memory_space<vmem>>, %arg5: memref<1x128xf32, #tpu.memory_space<vmem>>, %arg6: memref<32x128xbf16, #tpu.memory_space<vmem>>, %arg7: memref<32x128xbf16, #tpu.memory_space<vmem>>, %arg8: memref<1x128xf32, #tpu.memory_space<vmem>>, %arg9: memref<1x32xf32, #tpu.memory_space<vmem>>, %arg10: memref<1x1xf32, #tpu.memory_space<vmem>>, %arg11: memref<1x1xf32, #tpu.memory_space<vmem>>, %arg12: memref<16x128xf32, #tpu.memory_space<vmem>>) attributes {dimension_semantics = [], scalar_prefetch = 0 : i64, scratch_operands = 1 : i64, tpu.core_type = #tpu.core_type<tc>} {
    %c0 = arith.constant 0 : index
    %c0_0 = arith.constant 0 : index
    %0 = vector.load %arg1[%c0, %c0_0] : memref<16x144xbf16, #tpu.memory_space<vmem>>, vector<16x144xbf16>
    %c0_1 = arith.constant 0 : index
    %c0_2 = arith.constant 0 : index
    %1 = vector.load %arg0[%c0_1, %c0_2] : memref<144x128xbf16, #tpu.memory_space<vmem>>, vector<144x128xbf16>
    %cst = arith.constant dense<0.000000e+00> : vector<16x128xf32>
    %2 = tpu.matmul %0, %1, %cst {dimension_numbers = #tpu.dot_dimension_numbers<[1], [0], [0], [1], [0, 0, 1, 1], [], []>} : vector<16x144xbf16>, vector<144x128xbf16>, vector<16x128xf32> -> vector<16x128xf32>
    %c0_3 = arith.constant 0 : index
    %c0_4 = arith.constant 0 : index
    %3 = vector.load %arg2[%c0_3, %c0_4] : memref<16x1xf32, #tpu.memory_space<vmem>>, vector<16x1xf32>
    %4 = vector.broadcast %3 : vector<16x1xf32> to vector<16x128xf32>
    %5 = arith.addf %2, %4 : vector<16x128xf32>
    %6 = arith.truncf %5 : vector<16x128xf32> to vector<16x128xbf16>
    %c0_5 = arith.constant 0 : index
    %c0_6 = arith.constant 0 : index
    %7 = vector.load %arg3[%c0_5, %c0_6] : memref<128x128xbf16, #tpu.memory_space<vmem>>, vector<128x128xbf16>
    %cst_7 = arith.constant dense<0.000000e+00> : vector<16x128xf32>
    %8 = tpu.matmul %6, %7, %cst_7 {dimension_numbers = #tpu.dot_dimension_numbers<[1], [0], [0], [1], [0, 0, 1, 1], [], []>} : vector<16x128xbf16>, vector<128x128xbf16>, vector<16x128xf32> -> vector<16x128xf32>
    %c0_8 = arith.constant 0 : index
    %c0_9 = arith.constant 0 : index
    %9 = vector.load %arg5[%c0_8, %c0_9] : memref<1x128xf32, #tpu.memory_space<vmem>>, vector<1x128xf32>
    %10 = vector.broadcast %9 : vector<1x128xf32> to vector<16x128xf32>
    %11 = arith.addf %8, %10 : vector<16x128xf32>
    %c0_10 = arith.constant 0 : index
    %c0_11 = arith.constant 0 : index
    %12 = vector.load %arg12[%c0_10, %c0_11] : memref<16x128xf32, #tpu.memory_space<vmem>>, vector<16x128xf32>
    tpu.vector_store %arg12[%c0_10, %c0_11], %11 {strides = array<i32>} : memref<16x128xf32, #tpu.memory_space<vmem>>, vector<16x128xf32>,
    %13 = tpu.iota {dimensions = array<i32: 1>} : vector<1x128xi32>
    %c64_i32 = arith.constant 64 : i32
    %14 = vector.broadcast %c64_i32 : i32 to vector<1x128xi32>
    %15 = arith.cmpi sge, %13, %14 : vector<1x128xi32>
    %c96_i32 = arith.constant 96 : i32
    %16 = vector.broadcast %c96_i32 : i32 to vector<1x128xi32>
    %17 = arith.cmpi slt, %13, %16 : vector<1x128xi32>
    %18 = arith.andi %15, %17 : vector<1x128xi1>
    %cst_12 = arith.constant 1.000000e+00 : f32
    %cst_13 = arith.constant 5.000000e-01 : f32
    %19 = vector.broadcast %cst_12 : f32 to vector<1x128xf32>
    %20 = vector.broadcast %cst_13 : f32 to vector<1x128xf32>
    %21 = arith.select %18, %19, %20 : vector<1x128xi1>, vector<1x128xf32>
    %cst_14 = arith.constant 0.000000e+00 : f32
    %cst_15 = arith.constant 5.000000e-01 : f32
    %22 = vector.broadcast %cst_14 : f32 to vector<1x128xf32>
    %23 = vector.broadcast %cst_15 : f32 to vector<1x128xf32>
    %24 = arith.select %18, %22, %23 : vector<1x128xi1>, vector<1x128xf32>
    %cst_16 = arith.constant 0.000000e+00 : f32
    %25 = vector.broadcast %cst_16 : f32 to vector<1x32xf32>
    %cst_17 = arith.constant 0.000000e+00 : f32
    %26 = vector.broadcast %cst_17 : f32 to vector<1x32xf32>
    %cst_18 = arith.constant 0.000000e+00 : f32
    %27 = vector.broadcast %cst_18 : f32 to vector<1x32xf32>
    %cst_19 = arith.constant 0.000000e+00 : f32
    %28 = vector.broadcast %cst_19 : f32 to vector<1x32xf32>
    %c0_i32 = arith.constant 0 : i32
    %29 = arith.index_cast %c0_i32 : i32 to index
    %c0_20 = arith.constant 0 : index
    %30 = vector.load %arg12[%29, %c0_20] : memref<16x128xf32, #tpu.memory_space<vmem>>, vector<1x128xf32>
    %31 = arith.truncf %25 : vector<1x32xf32> to vector<1x32xbf16>
    %c0_21 = arith.constant 0 : index
    %c0_22 = arith.constant 0 : index
    %32 = vector.load %arg4[%c0_21, %c0_22] : memref<32x128xbf16, #tpu.memory_space<vmem>>, vector<32x128xbf16>
    %cst_23 = arith.constant dense<0.000000e+00> : vector<1x128xf32>
    %33 = tpu.matmul %31, %32, %cst_23 {dimension_numbers = #tpu.dot_dimension_numbers<[1], [0], [0], [1], [0, 0, 1, 1], [], []>} : vector<1x32xbf16>, vector<32x128xbf16>, vector<1x128xf32> -> vector<1x128xf32>
    %34 = arith.addf %30, %33 : vector<1x128xf32>
    %35 = arith.mulf %21, %34 : vector<1x128xf32>
    %36 = math.tanh %35 : vector<1x128xf32>
    %37 = arith.mulf %21, %36 : vector<1x128xf32>
    %38 = arith.addf %37, %24 : vector<1x128xf32>
    %39 = vector.extract_strided_slice %38 {offsets = [0, 0], sizes = [1, 32], strides = [1, 1]} : vector<1x128xf32> to vector<1x32xf32>
    %40 = vector.extract_strided_slice %38 {offsets = [0, 32], sizes = [1, 32], strides = [1, 1]} : vector<1x128xf32> to vector<1x32xf32>
    %41 = vector.extract_strided_slice %38 {offsets = [0, 64], sizes = [1, 32], strides = [1, 1]} : vector<1x128xf32> to vector<1x32xf32>
    %42 = vector.extract_strided_slice %38 {offsets = [0, 96], sizes = [1, 32], strides = [1, 1]} : vector<1x128xf32> to vector<1x32xf32>
    %43 = arith.mulf %40, %27 : vector<1x32xf32>
    %44 = arith.mulf %39, %41 : vector<1x32xf32>
    %45 = arith.addf %43, %44 : vector<1x32xf32>
    %46 = math.tanh %45 : vector<1x32xf32>
    %47 = arith.mulf %42, %46 : vector<1x32xf32>
    %48 = arith.truncf %47 : vector<1x32xf32> to vector<1x32xbf16>
    %c0_24 = arith.constant 0 : index
    %c0_25 = arith.constant 0 : index
    %49 = vector.load %arg6[%c0_24, %c0_25] : memref<32x128xbf16, #tpu.memory_space<vmem>>, vector<32x128xbf16>
    %cst_26 = arith.constant dense<0.000000e+00> : vector<1x128xf32>
    %50 = tpu.matmul %48, %49, %cst_26 {dimension_numbers = #tpu.dot_dimension_numbers<[1], [0], [0], [1], [0, 0, 1, 1], [], []>} : vector<1x32xbf16>, vector<32x128xbf16>, vector<1x128xf32> -> vector<1x128xf32>
    %51 = arith.truncf %26 : vector<1x32xf32> to vector<1x32xbf16>
    %c0_27 = arith.constant 0 : index
    %c0_28 = arith.constant 0 : index
    %52 = vector.load %arg7[%c0_27, %c0_28] : memref<32x128xbf16, #tpu.memory_space<vmem>>, vector<32x128xbf16>
    %cst_29 = arith.constant dense<0.000000e+00> : vector<1x128xf32>
    %53 = tpu.matmul %51, %52, %cst_29 {dimension_numbers = #tpu.dot_dimension_numbers<[1], [0], [0], [1], [0, 0, 1, 1], [], []>} : vector<1x32xbf16>, vector<32x128xbf16>, vector<1x128xf32> -> vector<1x128xf32>
    %54 = arith.addf %50, %53 : vector<1x128xf32>
    %c0_30 = arith.constant 0 : index
    %c0_31 = arith.constant 0 : index
    %55 = vector.load %arg8[%c0_30, %c0_31] : memref<1x128xf32, #tpu.memory_space<vmem>>, vector<1x128xf32>
    %56 = arith.addf %54, %55 : vector<1x128xf32>
    %57 = arith.mulf %21, %56 : vector<1x128xf32>
    %58 = math.tanh %57 : vector<1x128xf32>
    %59 = arith.mulf %21, %58 : vector<1x128xf32>
    %60 = arith.addf %59, %24 : vector<1x128xf32>
    %61 = vector.extract_strided_slice %60 {offsets = [0, 0], sizes = [1, 32], strides = [1, 1]} : vector<1x128xf32> to vector<1x32xf32>
    %62 = vector.extract_strided_slice %60 {offsets = [0, 32], sizes = [1, 32], strides = [1, 1]} : vector<1x128xf32> to vector<1x32xf32>
    %63 = vector.extract_strided_slice %60 {offsets = [0, 64], sizes = [1, 32], strides = [1, 1]} : vector<1x128xf32> to vector<1x32xf32>
    %64 = vector.extract_strided_slice %60 {offsets = [0, 96], sizes = [1, 32], strides = [1, 1]} : vector<1x128xf32> to vector<1x32xf32>
    %65 = arith.mulf %62, %28 : vector<1x32xf32>
    %66 = arith.mulf %61, %63 : vector<1x32xf32>
    %67 = arith.addf %65, %66 : vector<1x32xf32>
    %68 = math.tanh %67 : vector<1x32xf32>
    %69 = arith.mulf %64, %68 : vector<1x32xf32>
    %c1_i32 = arith.constant 1 : i32
    %70 = arith.index_cast %c1_i32 : i32 to index
    %c0_32 = arith.constant 0 : index
    %71 = vector.load %arg12[%70, %c0_32] : memref<16x128xf32, #tpu.memory_space<vmem>>, vector<1x128xf32>
    %72 = arith.truncf %47 : vector<1x32xf32> to vector<1x32xbf16>
    %c0_33 = arith.constant 0 : index
    %c0_34 = arith.constant 0 : index
    %73 = vector.load %arg4[%c0_33, %c0_34] : memref<32x128xbf16, #tpu.memory_space<vmem>>, vector<32x128xbf16>
    %cst_35 = arith.constant dense<0.000000e+00> : vector<1x128xf32>
    %74 = tpu.matmul %72, %73, %cst_35 {dimension_numbers = #tpu.dot_dimension_numbers<[1], [0], [0], [1], [0, 0, 1, 1], [], []>} : vector<1x32xbf16>, vector<32x128xbf16>, vector<1x128xf32> -> vector<1x128xf32>
    %75 = arith.addf %71, %74 : vector<1x128xf32>
    %76 = arith.mulf %21, %75 : vector<1x128xf32>
    %77 = math.tanh %76 : vector<1x128xf32>
    %78 = arith.mulf %21, %77 : vector<1x128xf32>
    %79 = arith.addf %78, %24 : vector<1x128xf32>
    %80 = vector.extract_strided_slice %79 {offsets = [0, 0], sizes = [1, 32], strides = [1, 1]} : vector<1x128xf32> to vector<1x32xf32>
    %81 = vector.extract_strided_slice %79 {offsets = [0, 32], sizes = [1, 32], strides = [1, 1]} : vector<1x128xf32> to vector<1x32xf32>
    %82 = vector.extract_strided_slice %79 {offsets = [0, 64], sizes = [1, 32], strides = [1, 1]} : vector<1x128xf32> to vector<1x32xf32>
    %83 = vector.extract_strided_slice %79 {offsets = [0, 96], sizes = [1, 32], strides = [1, 1]} : vector<1x128xf32> to vector<1x32xf32>
    %84 = arith.mulf %81, %45 : vector<1x32xf32>
    %85 = arith.mulf %80, %82 : vector<1x32xf32>
    %86 = arith.addf %84, %85 : vector<1x32xf32>
    %87 = math.tanh %86 : vector<1x32xf32>
    %88 = arith.mulf %83, %87 : vector<1x32xf32>
    %89 = arith.truncf %88 : vector<1x32xf32> to vector<1x32xbf16>
    %c0_36 = arith.constant 0 : index
    %c0_37 = arith.constant 0 : index
    %90 = vector.load %arg6[%c0_36, %c0_37] : memref<32x128xbf16, #tpu.memory_space<vmem>>, vector<32x128xbf16>
    %cst_38 = arith.constant dense<0.000000e+00> : vector<1x128xf32>
    %91 = tpu.matmul %89, %90, %cst_38 {dimension_numbers = #tpu.dot_dimension_numbers<[1], [0], [0], [1], [0, 0, 1, 1], [], []>} : vector<1x32xbf16>, vector<32x128xbf16>, vector<1x128xf32> -> vector<1x128xf32>
    %92 = arith.truncf %69 : vector<1x32xf32> to vector<1x32xbf16>
    %c0_39 = arith.constant 0 : index
    %c0_40 = arith.constant 0 : index
    %93 = vector.load %arg7[%c0_39, %c0_40] : memref<32x128xbf16, #tpu.memory_space<vmem>>, vector<32x128xbf16>
    %cst_41 = arith.constant dense<0.000000e+00> : vector<1x128xf32>
    %94 = tpu.matmul %92, %93, %cst_41 {dimension_numbers = #tpu.dot_dimension_numbers<[1], [0], [0], [1], [0, 0, 1, 1], [], []>} : vector<1x32xbf16>, vector<32x128xbf16>, vector<1x128xf32> -> vector<1x128xf32>
    %95 = arith.addf %91, %94 : vector<1x128xf32>
    %c0_42 = arith.constant 0 : index
    %c0_43 = arith.constant 0 : index
    %96 = vector.load %arg8[%c0_42, %c0_43] : memref<1x128xf32, #tpu.memory_space<vmem>>, vector<1x128xf32>
    %97 = arith.addf %95, %96 : vector<1x128xf32>
    %98 = arith.mulf %21, %97 : vector<1x128xf32>
    %99 = math.tanh %98 : vector<1x128xf32>
    %100 = arith.mulf %21, %99 : vector<1x128xf32>
    %101 = arith.addf %100, %24 : vector<1x128xf32>
    %102 = vector.extract_strided_slice %101 {offsets = [0, 0], sizes = [1, 32], strides = [1, 1]} : vector<1x128xf32> to vector<1x32xf32>
    %103 = vector.extract_strided_slice %101 {offsets = [0, 32], sizes = [1, 32], strides = [1, 1]} : vector<1x128xf32> to vector<1x32xf32>
    %104 = vector.extract_strided_slice %101 {offsets = [0, 64], sizes = [1, 32], strides = [1, 1]} : vector<1x128xf32> to vector<1x32xf32>
    %105 = vector.extract_strided_slice %101 {offsets = [0, 96], sizes = [1, 32], strides = [1, 1]} : vector<1x128xf32> to vector<1x32xf32>
    %106 = arith.mulf %103, %67 : vector<1x32xf32>
    %107 = arith.mulf %102, %104 : vector<1x32xf32>
    %108 = arith.addf %106, %107 : vector<1x32xf32>
    %109 = math.tanh %108 : vector<1x32xf32>
    %110 = arith.mulf %105, %109 : vector<1x32xf32>
    %c2_i32 = arith.constant 2 : i32
    %111 = arith.index_cast %c2_i32 : i32 to index
    %c0_44 = arith.constant 0 : index
    %112 = vector.load %arg12[%111, %c0_44] : memref<16x128xf32, #tpu.memory_space<vmem>>, vector<1x128xf32>
    %113 = arith.truncf %88 : vector<1x32xf32> to vector<1x32xbf16>
    %c0_45 = arith.constant 0 : index
    %c0_46 = arith.constant 0 : index
    %114 = vector.load %arg4[%c0_45, %c0_46] : memref<32x128xbf16, #tpu.memory_space<vmem>>, vector<32x128xbf16>
    %cst_47 = arith.constant dense<0.000000e+00> : vector<1x128xf32>
    %115 = tpu.matmul %113, %114, %cst_47 {dimension_numbers = #tpu.dot_dimension_numbers<[1], [0], [0], [1], [0, 0, 1, 1], [], []>} : vector<1x32xbf16>, vector<32x128xbf16>, vector<1x128xf32> -> vector<1x128xf32>
    %116 = arith.addf %112, %115 : vector<1x128xf32>
    %117 = arith.mulf %21, %116 : vector<1x128xf32>
    %118 = math.tanh %117 : vector<1x128xf32>
    %119 = arith.mulf %21, %118 : vector<1x128xf32>
    %120 = arith.addf %119, %24 : vector<1x128xf32>
    %121 = vector.extract_strided_slice %120 {offsets = [0, 0], sizes = [1, 32], strides = [1, 1]} : vector<1x128xf32> to vector<1x32xf32>
    %122 = vector.extract_strided_slice %120 {offsets = [0, 32], sizes = [1, 32], strides = [1, 1]} : vector<1x128xf32> to vector<1x32xf32>
    %123 = vector.extract_strided_slice %120 {offsets = [0, 64], sizes = [1, 32], strides = [1, 1]} : vector<1x128xf32> to vector<1x32xf32>
    %124 = vector.extract_strided_slice %120 {offsets = [0, 96], sizes = [1, 32], strides = [1, 1]} : vector<1x128xf32> to vector<1x32xf32>
    %125 = arith.mulf %122, %86 : vector<1x32xf32>
    %126 = arith.mulf %121, %123 : vector<1x32xf32>
    %127 = arith.addf %125, %126 : vector<1x32xf32>
    %128 = math.tanh %127 : vector<1x32xf32>
    %129 = arith.mulf %124, %128 : vector<1x32xf32>
    %130 = arith.truncf %129 : vector<1x32xf32> to vector<1x32xbf16>
    %c0_48 = arith.constant 0 : index
    %c0_49 = arith.constant 0 : index
    %131 = vector.load %arg6[%c0_48, %c0_49] : memref<32x128xbf16, #tpu.memory_space<vmem>>, vector<32x128xbf16>
    %cst_50 = arith.constant dense<0.000000e+00> : vector<1x128xf32>
    %132 = tpu.matmul %130, %131, %cst_50 {dimension_numbers = #tpu.dot_dimension_numbers<[1], [0], [0], [1], [0, 0, 1, 1], [], []>} : vector<1x32xbf16>, vector<32x128xbf16>, vector<1x128xf32> -> vector<1x128xf32>
    %133 = arith.truncf %110 : vector<1x32xf32> to vector<1x32xbf16>
    %c0_51 = arith.constant 0 : index
    %c0_52 = arith.constant 0 : index
    %134 = vector.load %arg7[%c0_51, %c0_52] : memref<32x128xbf16, #tpu.memory_space<vmem>>, vector<32x128xbf16>
    %cst_53 = arith.constant dense<0.000000e+00> : vector<1x128xf32>
    %135 = tpu.matmul %133, %134, %cst_53 {dimension_numbers = #tpu.dot_dimension_numbers<[1], [0], [0], [1], [0, 0, 1, 1], [], []>} : vector<1x32xbf16>, vector<32x128xbf16>, vector<1x128xf32> -> vector<1x128xf32>
    %136 = arith.addf %132, %135 : vector<1x128xf32>
    %c0_54 = arith.constant 0 : index
    %c0_55 = arith.constant 0 : index
    %137 = vector.load %arg8[%c0_54, %c0_55] : memref<1x128xf32, #tpu.memory_space<vmem>>, vector<1x128xf32>
    %138 = arith.addf %136, %137 : vector<1x128xf32>
    %139 = arith.mulf %21, %138 : vector<1x128xf32>
    %140 = math.tanh %139 : vector<1x128xf32>
    %141 = arith.mulf %21, %140 : vector<1x128xf32>
    %142 = arith.addf %141, %24 : vector<1x128xf32>
    %143 = vector.extract_strided_slice %142 {offsets = [0, 0], sizes = [1, 32], strides = [1, 1]} : vector<1x128xf32> to vector<1x32xf32>
    %144 = vector.extract_strided_slice %142 {offsets = [0, 32], sizes = [1, 32], strides = [1, 1]} : vector<1x128xf32> to vector<1x32xf32>
    %145 = vector.extract_strided_slice %142 {offsets = [0, 64], sizes = [1, 32], strides = [1, 1]} : vector<1x128xf32> to vector<1x32xf32>
    %146 = vector.extract_strided_slice %142 {offsets = [0, 96], sizes = [1, 32], strides = [1, 1]} : vector<1x128xf32> to vector<1x32xf32>
    %147 = arith.mulf %144, %108 : vector<1x32xf32>
    %148 = arith.mulf %143, %145 : vector<1x32xf32>
    %149 = arith.addf %147, %148 : vector<1x32xf32>
    %150 = math.tanh %149 : vector<1x32xf32>
    %151 = arith.mulf %146, %150 : vector<1x32xf32>
    %c3_i32 = arith.constant 3 : i32
    %152 = arith.index_cast %c3_i32 : i32 to index
    %c0_56 = arith.constant 0 : index
    %153 = vector.load %arg12[%152, %c0_56] : memref<16x128xf32, #tpu.memory_space<vmem>>, vector<1x128xf32>
    %154 = arith.truncf %129 : vector<1x32xf32> to vector<1x32xbf16>
    %c0_57 = arith.constant 0 : index
    %c0_58 = arith.constant 0 : index
    %155 = vector.load %arg4[%c0_57, %c0_58] : memref<32x128xbf16, #tpu.memory_space<vmem>>, vector<32x128xbf16>
    %cst_59 = arith.constant dense<0.000000e+00> : vector<1x128xf32>
    %156 = tpu.matmul %154, %155, %cst_59 {dimension_numbers = #tpu.dot_dimension_numbers<[1], [0], [0], [1], [0, 0, 1, 1], [], []>} : vector<1x32xbf16>, vector<32x128xbf16>, vector<1x128xf32> -> vector<1x128xf32>
    %157 = arith.addf %153, %156 : vector<1x128xf32>
    %158 = arith.mulf %21, %157 : vector<1x128xf32>
    %159 = math.tanh %158 : vector<1x128xf32>
    %160 = arith.mulf %21, %159 : vector<1x128xf32>
    %161 = arith.addf %160, %24 : vector<1x128xf32>
    %162 = vector.extract_strided_slice %161 {offsets = [0, 0], sizes = [1, 32], strides = [1, 1]} : vector<1x128xf32> to vector<1x32xf32>
    %163 = vector.extract_strided_slice %161 {offsets = [0, 32], sizes = [1, 32], strides = [1, 1]} : vector<1x128xf32> to vector<1x32xf32>
    %164 = vector.extract_strided_slice %161 {offsets = [0, 64], sizes = [1, 32], strides = [1, 1]} : vector<1x128xf32> to vector<1x32xf32>
    %165 = vector.extract_strided_slice %161 {offsets = [0, 96], sizes = [1, 32], strides = [1, 1]} : vector<1x128xf32> to vector<1x32xf32>
    %166 = arith.mulf %163, %127 : vector<1x32xf32>
    %167 = arith.mulf %162, %164 : vector<1x32xf32>
    %168 = arith.addf %166, %167 : vector<1x32xf32>
    %169 = math.tanh %168 : vector<1x32xf32>
    %170 = arith.mulf %165, %169 : vector<1x32xf32>
    %171 = arith.truncf %170 : vector<1x32xf32> to vector<1x32xbf16>
    %c0_60 = arith.constant 0 : index
    %c0_61 = arith.constant 0 : index
    %172 = vector.load %arg6[%c0_60, %c0_61] : memref<32x128xbf16, #tpu.memory_space<vmem>>, vector<32x128xbf16>
    %cst_62 = arith.constant dense<0.000000e+00> : vector<1x128xf32>
    %173 = tpu.matmul %171, %172, %cst_62 {dimension_numbers = #tpu.dot_dimension_numbers<[1], [0], [0], [1], [0, 0, 1, 1], [], []>} : vector<1x32xbf16>, vector<32x128xbf16>, vector<1x128xf32> -> vector<1x128xf32>
    %174 = arith.truncf %151 : vector<1x32xf32> to vector<1x32xbf16>
    %c0_63 = arith.constant 0 : index
    %c0_64 = arith.constant 0 : index
    %175 = vector.load %arg7[%c0_63, %c0_64] : memref<32x128xbf16, #tpu.memory_space<vmem>>, vector<32x128xbf16>
    %cst_65 = arith.constant dense<0.000000e+00> : vector<1x128xf32>
    %176 = tpu.matmul %174, %175, %cst_65 {dimension_numbers = #tpu.dot_dimension_numbers<[1], [0], [0], [1], [0, 0, 1, 1], [], []>} : vector<1x32xbf16>, vector<32x128xbf16>, vector<1x128xf32> -> vector<1x128xf32>
    %177 = arith.addf %173, %176 : vector<1x128xf32>
    %c0_66 = arith.constant 0 : index
    %c0_67 = arith.constant 0 : index
    %178 = vector.load %arg8[%c0_66, %c0_67] : memref<1x128xf32, #tpu.memory_space<vmem>>, vector<1x128xf32>
    %179 = arith.addf %177, %178 : vector<1x128xf32>
    %180 = arith.mulf %21, %179 : vector<1x128xf32>
    %181 = math.tanh %180 : vector<1x128xf32>
    %182 = arith.mulf %21, %181 : vector<1x128xf32>
    %183 = arith.addf %182, %24 : vector<1x128xf32>
    %184 = vector.extract_strided_slice %183 {offsets = [0, 0], sizes = [1, 32], strides = [1, 1]} : vector<1x128xf32> to vector<1x32xf32>
    %185 = vector.extract_strided_slice %183 {offsets = [0, 32], sizes = [1, 32], strides = [1, 1]} : vector<1x128xf32> to vector<1x32xf32>
    %186 = vector.extract_strided_slice %183 {offsets = [0, 64], sizes = [1, 32], strides = [1, 1]} : vector<1x128xf32> to vector<1x32xf32>
    %187 = vector.extract_strided_slice %183 {offsets = [0, 96], sizes = [1, 32], strides = [1, 1]} : vector<1x128xf32> to vector<1x32xf32>
    %188 = arith.mulf %185, %149 : vector<1x32xf32>
    %189 = arith.mulf %184, %186 : vector<1x32xf32>
    %190 = arith.addf %188, %189 : vector<1x32xf32>
    %191 = math.tanh %190 : vector<1x32xf32>
    %192 = arith.mulf %187, %191 : vector<1x32xf32>
    %c4_i32 = arith.constant 4 : i32
    %193 = arith.index_cast %c4_i32 : i32 to index
    %c0_68 = arith.constant 0 : index
    %194 = vector.load %arg12[%193, %c0_68] : memref<16x128xf32, #tpu.memory_space<vmem>>, vector<1x128xf32>
    %195 = arith.truncf %170 : vector<1x32xf32> to vector<1x32xbf16>
    %c0_69 = arith.constant 0 : index
    %c0_70 = arith.constant 0 : index
    %196 = vector.load %arg4[%c0_69, %c0_70] : memref<32x128xbf16, #tpu.memory_space<vmem>>, vector<32x128xbf16>
    %cst_71 = arith.constant dense<0.000000e+00> : vector<1x128xf32>
    %197 = tpu.matmul %195, %196, %cst_71 {dimension_numbers = #tpu.dot_dimension_numbers<[1], [0], [0], [1], [0, 0, 1, 1], [], []>} : vector<1x32xbf16>, vector<32x128xbf16>, vector<1x128xf32> -> vector<1x128xf32>
    %198 = arith.addf %194, %197 : vector<1x128xf32>
    %199 = arith.mulf %21, %198 : vector<1x128xf32>
    %200 = math.tanh %199 : vector<1x128xf32>
    %201 = arith.mulf %21, %200 : vector<1x128xf32>
    %202 = arith.addf %201, %24 : vector<1x128xf32>
    %203 = vector.extract_strided_slice %202 {offsets = [0, 0], sizes = [1, 32], strides = [1, 1]} : vector<1x128xf32> to vector<1x32xf32>
    %204 = vector.extract_strided_slice %202 {offsets = [0, 32], sizes = [1, 32], strides = [1, 1]} : vector<1x128xf32> to vector<1x32xf32>
    %205 = vector.extract_strided_slice %202 {offsets = [0, 64], sizes = [1, 32], strides = [1, 1]} : vector<1x128xf32> to vector<1x32xf32>
    %206 = vector.extract_strided_slice %202 {offsets = [0, 96], sizes = [1, 32], strides = [1, 1]} : vector<1x128xf32> to vector<1x32xf32>
    %207 = arith.mulf %204, %168 : vector<1x32xf32>
    %208 = arith.mulf %203, %205 : vector<1x32xf32>
    %209 = arith.addf %207, %208 : vector<1x32xf32>
    %210 = math.tanh %209 : vector<1x32xf32>
    %211 = arith.mulf %206, %210 : vector<1x32xf32>
    %212 = arith.truncf %211 : vector<1x32xf32> to vector<1x32xbf16>
    %c0_72 = arith.constant 0 : index
    %c0_73 = arith.constant 0 : index
    %213 = vector.load %arg6[%c0_72, %c0_73] : memref<32x128xbf16, #tpu.memory_space<vmem>>, vector<32x128xbf16>
    %cst_74 = arith.constant dense<0.000000e+00> : vector<1x128xf32>
    %214 = tpu.matmul %212, %213, %cst_74 {dimension_numbers = #tpu.dot_dimension_numbers<[1], [0], [0], [1], [0, 0, 1, 1], [], []>} : vector<1x32xbf16>, vector<32x128xbf16>, vector<1x128xf32> -> vector<1x128xf32>
    %215 = arith.truncf %192 : vector<1x32xf32> to vector<1x32xbf16>
    %c0_75 = arith.constant 0 : index
    %c0_76 = arith.constant 0 : index
    %216 = vector.load %arg7[%c0_75, %c0_76] : memref<32x128xbf16, #tpu.memory_space<vmem>>, vector<32x128xbf16>
    %cst_77 = arith.constant dense<0.000000e+00> : vector<1x128xf32>
    %217 = tpu.matmul %215, %216, %cst_77 {dimension_numbers = #tpu.dot_dimension_numbers<[1], [0], [0], [1], [0, 0, 1, 1], [], []>} : vector<1x32xbf16>, vector<32x128xbf16>, vector<1x128xf32> -> vector<1x128xf32>
    %218 = arith.addf %214, %217 : vector<1x128xf32>
    %c0_78 = arith.constant 0 : index
    %c0_79 = arith.constant 0 : index
    %219 = vector.load %arg8[%c0_78, %c0_79] : memref<1x128xf32, #tpu.memory_space<vmem>>, vector<1x128xf32>
    %220 = arith.addf %218, %219 : vector<1x128xf32>
    %221 = arith.mulf %21, %220 : vector<1x128xf32>
    %222 = math.tanh %221 : vector<1x128xf32>
    %223 = arith.mulf %21, %222 : vector<1x128xf32>
    %224 = arith.addf %223, %24 : vector<1x128xf32>
    %225 = vector.extract_strided_slice %224 {offsets = [0, 0], sizes = [1, 32], strides = [1, 1]} : vector<1x128xf32> to vector<1x32xf32>
    %226 = vector.extract_strided_slice %224 {offsets = [0, 32], sizes = [1, 32], strides = [1, 1]} : vector<1x128xf32> to vector<1x32xf32>
    %227 = vector.extract_strided_slice %224 {offsets = [0, 64], sizes = [1, 32], strides = [1, 1]} : vector<1x128xf32> to vector<1x32xf32>
    %228 = vector.extract_strided_slice %224 {offsets = [0, 96], sizes = [1, 32], strides = [1, 1]} : vector<1x128xf32> to vector<1x32xf32>
    %229 = arith.mulf %226, %190 : vector<1x32xf32>
    %230 = arith.mulf %225, %227 : vector<1x32xf32>
    %231 = arith.addf %229, %230 : vector<1x32xf32>
    %232 = math.tanh %231 : vector<1x32xf32>
    %233 = arith.mulf %228, %232 : vector<1x32xf32>
    %c5_i32 = arith.constant 5 : i32
    %234 = arith.index_cast %c5_i32 : i32 to index
    %c0_80 = arith.constant 0 : index
    %235 = vector.load %arg12[%234, %c0_80] : memref<16x128xf32, #tpu.memory_space<vmem>>, vector<1x128xf32>
    %236 = arith.truncf %211 : vector<1x32xf32> to vector<1x32xbf16>
    %c0_81 = arith.constant 0 : index
    %c0_82 = arith.constant 0 : index
    %237 = vector.load %arg4[%c0_81, %c0_82] : memref<32x128xbf16, #tpu.memory_space<vmem>>, vector<32x128xbf16>
    %cst_83 = arith.constant dense<0.000000e+00> : vector<1x128xf32>
    %238 = tpu.matmul %236, %237, %cst_83 {dimension_numbers = #tpu.dot_dimension_numbers<[1], [0], [0], [1], [0, 0, 1, 1], [], []>} : vector<1x32xbf16>, vector<32x128xbf16>, vector<1x128xf32> -> vector<1x128xf32>
    %239 = arith.addf %235, %238 : vector<1x128xf32>
    %240 = arith.mulf %21, %239 : vector<1x128xf32>
    %241 = math.tanh %240 : vector<1x128xf32>
    %242 = arith.mulf %21, %241 : vector<1x128xf32>
    %243 = arith.addf %242, %24 : vector<1x128xf32>
    %244 = vector.extract_strided_slice %243 {offsets = [0, 0], sizes = [1, 32], strides = [1, 1]} : vector<1x128xf32> to vector<1x32xf32>
    %245 = vector.extract_strided_slice %243 {offsets = [0, 32], sizes = [1, 32], strides = [1, 1]} : vector<1x128xf32> to vector<1x32xf32>
    %246 = vector.extract_strided_slice %243 {offsets = [0, 64], sizes = [1, 32], strides = [1, 1]} : vector<1x128xf32> to vector<1x32xf32>
    %247 = vector.extract_strided_slice %243 {offsets = [0, 96], sizes = [1, 32], strides = [1, 1]} : vector<1x128xf32> to vector<1x32xf32>
    %248 = arith.mulf %245, %209 : vector<1x32xf32>
    %249 = arith.mulf %244, %246 : vector<1x32xf32>
    %250 = arith.addf %248, %249 : vector<1x32xf32>
    %251 = math.tanh %250 : vector<1x32xf32>
    %252 = arith.mulf %247, %251 : vector<1x32xf32>
    %253 = arith.truncf %252 : vector<1x32xf32> to vector<1x32xbf16>
    %c0_84 = arith.constant 0 : index
    %c0_85 = arith.constant 0 : index
    %254 = vector.load %arg6[%c0_84, %c0_85] : memref<32x128xbf16, #tpu.memory_space<vmem>>, vector<32x128xbf16>
    %cst_86 = arith.constant dense<0.000000e+00> : vector<1x128xf32>
    %255 = tpu.matmul %253, %254, %cst_86 {dimension_numbers = #tpu.dot_dimension_numbers<[1], [0], [0], [1], [0, 0, 1, 1], [], []>} : vector<1x32xbf16>, vector<32x128xbf16>, vector<1x128xf32> -> vector<1x128xf32>
    %256 = arith.truncf %233 : vector<1x32xf32> to vector<1x32xbf16>
    %c0_87 = arith.constant 0 : index
    %c0_88 = arith.constant 0 : index
    %257 = vector.load %arg7[%c0_87, %c0_88] : memref<32x128xbf16, #tpu.memory_space<vmem>>, vector<32x128xbf16>
    %cst_89 = arith.constant dense<0.000000e+00> : vector<1x128xf32>
    %258 = tpu.matmul %256, %257, %cst_89 {dimension_numbers = #tpu.dot_dimension_numbers<[1], [0], [0], [1], [0, 0, 1, 1], [], []>} : vector<1x32xbf16>, vector<32x128xbf16>, vector<1x128xf32> -> vector<1x128xf32>
    %259 = arith.addf %255, %258 : vector<1x128xf32>
    %c0_90 = arith.constant 0 : index
    %c0_91 = arith.constant 0 : index
    %260 = vector.load %arg8[%c0_90, %c0_91] : memref<1x128xf32, #tpu.memory_space<vmem>>, vector<1x128xf32>
    %261 = arith.addf %259, %260 : vector<1x128xf32>
    %262 = arith.mulf %21, %261 : vector<1x128xf32>
    %263 = math.tanh %262 : vector<1x128xf32>
    %264 = arith.mulf %21, %263 : vector<1x128xf32>
    %265 = arith.addf %264, %24 : vector<1x128xf32>
    %266 = vector.extract_strided_slice %265 {offsets = [0, 0], sizes = [1, 32], strides = [1, 1]} : vector<1x128xf32> to vector<1x32xf32>
    %267 = vector.extract_strided_slice %265 {offsets = [0, 32], sizes = [1, 32], strides = [1, 1]} : vector<1x128xf32> to vector<1x32xf32>
    %268 = vector.extract_strided_slice %265 {offsets = [0, 64], sizes = [1, 32], strides = [1, 1]} : vector<1x128xf32> to vector<1x32xf32>
    %269 = vector.extract_strided_slice %265 {offsets = [0, 96], sizes = [1, 32], strides = [1, 1]} : vector<1x128xf32> to vector<1x32xf32>
    %270 = arith.mulf %267, %231 : vector<1x32xf32>
    %271 = arith.mulf %266, %268 : vector<1x32xf32>
    %272 = arith.addf %270, %271 : vector<1x32xf32>
    %273 = math.tanh %272 : vector<1x32xf32>
    %274 = arith.mulf %269, %273 : vector<1x32xf32>
    %c6_i32 = arith.constant 6 : i32
    %275 = arith.index_cast %c6_i32 : i32 to index
    %c0_92 = arith.constant 0 : index
    %276 = vector.load %arg12[%275, %c0_92] : memref<16x128xf32, #tpu.memory_space<vmem>>, vector<1x128xf32>
    %277 = arith.truncf %252 : vector<1x32xf32> to vector<1x32xbf16>
    %c0_93 = arith.constant 0 : index
    %c0_94 = arith.constant 0 : index
    %278 = vector.load %arg4[%c0_93, %c0_94] : memref<32x128xbf16, #tpu.memory_space<vmem>>, vector<32x128xbf16>
    %cst_95 = arith.constant dense<0.000000e+00> : vector<1x128xf32>
    %279 = tpu.matmul %277, %278, %cst_95 {dimension_numbers = #tpu.dot_dimension_numbers<[1], [0], [0], [1], [0, 0, 1, 1], [], []>} : vector<1x32xbf16>, vector<32x128xbf16>, vector<1x128xf32> -> vector<1x128xf32>
    %280 = arith.addf %276, %279 : vector<1x128xf32>
    %281 = arith.mulf %21, %280 : vector<1x128xf32>
    %282 = math.tanh %281 : vector<1x128xf32>
    %283 = arith.mulf %21, %282 : vector<1x128xf32>
    %284 = arith.addf %283, %24 : vector<1x128xf32>
    %285 = vector.extract_strided_slice %284 {offsets = [0, 0], sizes = [1, 32], strides = [1, 1]} : vector<1x128xf32> to vector<1x32xf32>
    %286 = vector.extract_strided_slice %284 {offsets = [0, 32], sizes = [1, 32], strides = [1, 1]} : vector<1x128xf32> to vector<1x32xf32>
    %287 = vector.extract_strided_slice %284 {offsets = [0, 64], sizes = [1, 32], strides = [1, 1]} : vector<1x128xf32> to vector<1x32xf32>
    %288 = vector.extract_strided_slice %284 {offsets = [0, 96], sizes = [1, 32], strides = [1, 1]} : vector<1x128xf32> to vector<1x32xf32>
    %289 = arith.mulf %286, %250 : vector<1x32xf32>
    %290 = arith.mulf %285, %287 : vector<1x32xf32>
    %291 = arith.addf %289, %290 : vector<1x32xf32>
    %292 = math.tanh %291 : vector<1x32xf32>
    %293 = arith.mulf %288, %292 : vector<1x32xf32>
    %294 = arith.truncf %293 : vector<1x32xf32> to vector<1x32xbf16>
    %c0_96 = arith.constant 0 : index
    %c0_97 = arith.constant 0 : index
    %295 = vector.load %arg6[%c0_96, %c0_97] : memref<32x128xbf16, #tpu.memory_space<vmem>>, vector<32x128xbf16>
    %cst_98 = arith.constant dense<0.000000e+00> : vector<1x128xf32>
    %296 = tpu.matmul %294, %295, %cst_98 {dimension_numbers = #tpu.dot_dimension_numbers<[1], [0], [0], [1], [0, 0, 1, 1], [], []>} : vector<1x32xbf16>, vector<32x128xbf16>, vector<1x128xf32> -> vector<1x128xf32>
    %297 = arith.truncf %274 : vector<1x32xf32> to vector<1x32xbf16>
    %c0_99 = arith.constant 0 : index
    %c0_100 = arith.constant 0 : index
    %298 = vector.load %arg7[%c0_99, %c0_100] : memref<32x128xbf16, #tpu.memory_space<vmem>>, vector<32x128xbf16>
    %cst_101 = arith.constant dense<0.000000e+00> : vector<1x128xf32>
    %299 = tpu.matmul %297, %298, %cst_101 {dimension_numbers = #tpu.dot_dimension_numbers<[1], [0], [0], [1], [0, 0, 1, 1], [], []>} : vector<1x32xbf16>, vector<32x128xbf16>, vector<1x128xf32> -> vector<1x128xf32>
    %300 = arith.addf %296, %299 : vector<1x128xf32>
    %c0_102 = arith.constant 0 : index
    %c0_103 = arith.constant 0 : index
    %301 = vector.load %arg8[%c0_102, %c0_103] : memref<1x128xf32, #tpu.memory_space<vmem>>, vector<1x128xf32>
    %302 = arith.addf %300, %301 : vector<1x128xf32>
    %303 = arith.mulf %21, %302 : vector<1x128xf32>
    %304 = math.tanh %303 : vector<1x128xf32>
    %305 = arith.mulf %21, %304 : vector<1x128xf32>
    %306 = arith.addf %305, %24 : vector<1x128xf32>
    %307 = vector.extract_strided_slice %306 {offsets = [0, 0], sizes = [1, 32], strides = [1, 1]} : vector<1x128xf32> to vector<1x32xf32>
    %308 = vector.extract_strided_slice %306 {offsets = [0, 32], sizes = [1, 32], strides = [1, 1]} : vector<1x128xf32> to vector<1x32xf32>
    %309 = vector.extract_strided_slice %306 {offsets = [0, 64], sizes = [1, 32], strides = [1, 1]} : vector<1x128xf32> to vector<1x32xf32>
    %310 = vector.extract_strided_slice %306 {offsets = [0, 96], sizes = [1, 32], strides = [1, 1]} : vector<1x128xf32> to vector<1x32xf32>
    %311 = arith.mulf %308, %272 : vector<1x32xf32>
    %312 = arith.mulf %307, %309 : vector<1x32xf32>
    %313 = arith.addf %311, %312 : vector<1x32xf32>
    %314 = math.tanh %313 : vector<1x32xf32>
    %315 = arith.mulf %310, %314 : vector<1x32xf32>
    %c7_i32 = arith.constant 7 : i32
    %316 = arith.index_cast %c7_i32 : i32 to index
    %c0_104 = arith.constant 0 : index
    %317 = vector.load %arg12[%316, %c0_104] : memref<16x128xf32, #tpu.memory_space<vmem>>, vector<1x128xf32>
    %318 = arith.truncf %293 : vector<1x32xf32> to vector<1x32xbf16>
    %c0_105 = arith.constant 0 : index
    %c0_106 = arith.constant 0 : index
    %319 = vector.load %arg4[%c0_105, %c0_106] : memref<32x128xbf16, #tpu.memory_space<vmem>>, vector<32x128xbf16>
    %cst_107 = arith.constant dense<0.000000e+00> : vector<1x128xf32>
    %320 = tpu.matmul %318, %319, %cst_107 {dimension_numbers = #tpu.dot_dimension_numbers<[1], [0], [0], [1], [0, 0, 1, 1], [], []>} : vector<1x32xbf16>, vector<32x128xbf16>, vector<1x128xf32> -> vector<1x128xf32>
    %321 = arith.addf %317, %320 : vector<1x128xf32>
    %322 = arith.mulf %21, %321 : vector<1x128xf32>
    %323 = math.tanh %322 : vector<1x128xf32>
    %324 = arith.mulf %21, %323 : vector<1x128xf32>
    %325 = arith.addf %324, %24 : vector<1x128xf32>
    %326 = vector.extract_strided_slice %325 {offsets = [0, 0], sizes = [1, 32], strides = [1, 1]} : vector<1x128xf32> to vector<1x32xf32>
    %327 = vector.extract_strided_slice %325 {offsets = [0, 32], sizes = [1, 32], strides = [1, 1]} : vector<1x128xf32> to vector<1x32xf32>
    %328 = vector.extract_strided_slice %325 {offsets = [0, 64], sizes = [1, 32], strides = [1, 1]} : vector<1x128xf32> to vector<1x32xf32>
    %329 = vector.extract_strided_slice %325 {offsets = [0, 96], sizes = [1, 32], strides = [1, 1]} : vector<1x128xf32> to vector<1x32xf32>
    %330 = arith.mulf %327, %291 : vector<1x32xf32>
    %331 = arith.mulf %326, %328 : vector<1x32xf32>
    %332 = arith.addf %330, %331 : vector<1x32xf32>
    %333 = math.tanh %332 : vector<1x32xf32>
    %334 = arith.mulf %329, %333 : vector<1x32xf32>
    %335 = arith.truncf %334 : vector<1x32xf32> to vector<1x32xbf16>
    %c0_108 = arith.constant 0 : index
    %c0_109 = arith.constant 0 : index
    %336 = vector.load %arg6[%c0_108, %c0_109] : memref<32x128xbf16, #tpu.memory_space<vmem>>, vector<32x128xbf16>
    %cst_110 = arith.constant dense<0.000000e+00> : vector<1x128xf32>
    %337 = tpu.matmul %335, %336, %cst_110 {dimension_numbers = #tpu.dot_dimension_numbers<[1], [0], [0], [1], [0, 0, 1, 1], [], []>} : vector<1x32xbf16>, vector<32x128xbf16>, vector<1x128xf32> -> vector<1x128xf32>
    %338 = arith.truncf %315 : vector<1x32xf32> to vector<1x32xbf16>
    %c0_111 = arith.constant 0 : index
    %c0_112 = arith.constant 0 : index
    %339 = vector.load %arg7[%c0_111, %c0_112] : memref<32x128xbf16, #tpu.memory_space<vmem>>, vector<32x128xbf16>
    %cst_113 = arith.constant dense<0.000000e+00> : vector<1x128xf32>
    %340 = tpu.matmul %338, %339, %cst_113 {dimension_numbers = #tpu.dot_dimension_numbers<[1], [0], [0], [1], [0, 0, 1, 1], [], []>} : vector<1x32xbf16>, vector<32x128xbf16>, vector<1x128xf32> -> vector<1x128xf32>
    %341 = arith.addf %337, %340 : vector<1x128xf32>
    %c0_114 = arith.constant 0 : index
    %c0_115 = arith.constant 0 : index
    %342 = vector.load %arg8[%c0_114, %c0_115] : memref<1x128xf32, #tpu.memory_space<vmem>>, vector<1x128xf32>
    %343 = arith.addf %341, %342 : vector<1x128xf32>
    %344 = arith.mulf %21, %343 : vector<1x128xf32>
    %345 = math.tanh %344 : vector<1x128xf32>
    %346 = arith.mulf %21, %345 : vector<1x128xf32>
    %347 = arith.addf %346, %24 : vector<1x128xf32>
    %348 = vector.extract_strided_slice %347 {offsets = [0, 0], sizes = [1, 32], strides = [1, 1]} : vector<1x128xf32> to vector<1x32xf32>
    %349 = vector.extract_strided_slice %347 {offsets = [0, 32], sizes = [1, 32], strides = [1, 1]} : vector<1x128xf32> to vector<1x32xf32>
    %350 = vector.extract_strided_slice %347 {offsets = [0, 64], sizes = [1, 32], strides = [1, 1]} : vector<1x128xf32> to vector<1x32xf32>
    %351 = vector.extract_strided_slice %347 {offsets = [0, 96], sizes = [1, 32], strides = [1, 1]} : vector<1x128xf32> to vector<1x32xf32>
    %352 = arith.mulf %349, %313 : vector<1x32xf32>
    %353 = arith.mulf %348, %350 : vector<1x32xf32>
    %354 = arith.addf %352, %353 : vector<1x32xf32>
    %355 = math.tanh %354 : vector<1x32xf32>
    %356 = arith.mulf %351, %355 : vector<1x32xf32>
    %c8_i32 = arith.constant 8 : i32
    %357 = arith.index_cast %c8_i32 : i32 to index
    %c0_116 = arith.constant 0 : index
    %358 = vector.load %arg12[%357, %c0_116] : memref<16x128xf32, #tpu.memory_space<vmem>>, vector<1x128xf32>
    %359 = arith.truncf %334 : vector<1x32xf32> to vector<1x32xbf16>
    %c0_117 = arith.constant 0 : index
    %c0_118 = arith.constant 0 : index
    %360 = vector.load %arg4[%c0_117, %c0_118] : memref<32x128xbf16, #tpu.memory_space<vmem>>, vector<32x128xbf16>
    %cst_119 = arith.constant dense<0.000000e+00> : vector<1x128xf32>
    %361 = tpu.matmul %359, %360, %cst_119 {dimension_numbers = #tpu.dot_dimension_numbers<[1], [0], [0], [1], [0, 0, 1, 1], [], []>} : vector<1x32xbf16>, vector<32x128xbf16>, vector<1x128xf32> -> vector<1x128xf32>
    %362 = arith.addf %358, %361 : vector<1x128xf32>
    %363 = arith.mulf %21, %362 : vector<1x128xf32>
    %364 = math.tanh %363 : vector<1x128xf32>
    %365 = arith.mulf %21, %364 : vector<1x128xf32>
    %366 = arith.addf %365, %24 : vector<1x128xf32>
    %367 = vector.extract_strided_slice %366 {offsets = [0, 0], sizes = [1, 32], strides = [1, 1]} : vector<1x128xf32> to vector<1x32xf32>
    %368 = vector.extract_strided_slice %366 {offsets = [0, 32], sizes = [1, 32], strides = [1, 1]} : vector<1x128xf32> to vector<1x32xf32>
    %369 = vector.extract_strided_slice %366 {offsets = [0, 64], sizes = [1, 32], strides = [1, 1]} : vector<1x128xf32> to vector<1x32xf32>
    %370 = vector.extract_strided_slice %366 {offsets = [0, 96], sizes = [1, 32], strides = [1, 1]} : vector<1x128xf32> to vector<1x32xf32>
    %371 = arith.mulf %368, %332 : vector<1x32xf32>
    %372 = arith.mulf %367, %369 : vector<1x32xf32>
    %373 = arith.addf %371, %372 : vector<1x32xf32>
    %374 = math.tanh %373 : vector<1x32xf32>
    %375 = arith.mulf %370, %374 : vector<1x32xf32>
    %376 = arith.truncf %375 : vector<1x32xf32> to vector<1x32xbf16>
    %c0_120 = arith.constant 0 : index
    %c0_121 = arith.constant 0 : index
    %377 = vector.load %arg6[%c0_120, %c0_121] : memref<32x128xbf16, #tpu.memory_space<vmem>>, vector<32x128xbf16>
    %cst_122 = arith.constant dense<0.000000e+00> : vector<1x128xf32>
    %378 = tpu.matmul %376, %377, %cst_122 {dimension_numbers = #tpu.dot_dimension_numbers<[1], [0], [0], [1], [0, 0, 1, 1], [], []>} : vector<1x32xbf16>, vector<32x128xbf16>, vector<1x128xf32> -> vector<1x128xf32>
    %379 = arith.truncf %356 : vector<1x32xf32> to vector<1x32xbf16>
    %c0_123 = arith.constant 0 : index
    %c0_124 = arith.constant 0 : index
    %380 = vector.load %arg7[%c0_123, %c0_124] : memref<32x128xbf16, #tpu.memory_space<vmem>>, vector<32x128xbf16>
    %cst_125 = arith.constant dense<0.000000e+00> : vector<1x128xf32>
    %381 = tpu.matmul %379, %380, %cst_125 {dimension_numbers = #tpu.dot_dimension_numbers<[1], [0], [0], [1], [0, 0, 1, 1], [], []>} : vector<1x32xbf16>, vector<32x128xbf16>, vector<1x128xf32> -> vector<1x128xf32>
    %382 = arith.addf %378, %381 : vector<1x128xf32>
    %c0_126 = arith.constant 0 : index
    %c0_127 = arith.constant 0 : index
    %383 = vector.load %arg8[%c0_126, %c0_127] : memref<1x128xf32, #tpu.memory_space<vmem>>, vector<1x128xf32>
    %384 = arith.addf %382, %383 : vector<1x128xf32>
    %385 = arith.mulf %21, %384 : vector<1x128xf32>
    %386 = math.tanh %385 : vector<1x128xf32>
    %387 = arith.mulf %21, %386 : vector<1x128xf32>
    %388 = arith.addf %387, %24 : vector<1x128xf32>
    %389 = vector.extract_strided_slice %388 {offsets = [0, 0], sizes = [1, 32], strides = [1, 1]} : vector<1x128xf32> to vector<1x32xf32>
    %390 = vector.extract_strided_slice %388 {offsets = [0, 32], sizes = [1, 32], strides = [1, 1]} : vector<1x128xf32> to vector<1x32xf32>
    %391 = vector.extract_strided_slice %388 {offsets = [0, 64], sizes = [1, 32], strides = [1, 1]} : vector<1x128xf32> to vector<1x32xf32>
    %392 = vector.extract_strided_slice %388 {offsets = [0, 96], sizes = [1, 32], strides = [1, 1]} : vector<1x128xf32> to vector<1x32xf32>
    %393 = arith.mulf %390, %354 : vector<1x32xf32>
    %394 = arith.mulf %389, %391 : vector<1x32xf32>
    %395 = arith.addf %393, %394 : vector<1x32xf32>
    %396 = math.tanh %395 : vector<1x32xf32>
    %397 = arith.mulf %392, %396 : vector<1x32xf32>
    %c9_i32 = arith.constant 9 : i32
    %398 = arith.index_cast %c9_i32 : i32 to index
    %c0_128 = arith.constant 0 : index
    %399 = vector.load %arg12[%398, %c0_128] : memref<16x128xf32, #tpu.memory_space<vmem>>, vector<1x128xf32>
    %400 = arith.truncf %375 : vector<1x32xf32> to vector<1x32xbf16>
    %c0_129 = arith.constant 0 : index
    %c0_130 = arith.constant 0 : index
    %401 = vector.load %arg4[%c0_129, %c0_130] : memref<32x128xbf16, #tpu.memory_space<vmem>>, vector<32x128xbf16>
    %cst_131 = arith.constant dense<0.000000e+00> : vector<1x128xf32>
    %402 = tpu.matmul %400, %401, %cst_131 {dimension_numbers = #tpu.dot_dimension_numbers<[1], [0], [0], [1], [0, 0, 1, 1], [], []>} : vector<1x32xbf16>, vector<32x128xbf16>, vector<1x128xf32> -> vector<1x128xf32>
    %403 = arith.addf %399, %402 : vector<1x128xf32>
    %404 = arith.mulf %21, %403 : vector<1x128xf32>
    %405 = math.tanh %404 : vector<1x128xf32>
    %406 = arith.mulf %21, %405 : vector<1x128xf32>
    %407 = arith.addf %406, %24 : vector<1x128xf32>
    %408 = vector.extract_strided_slice %407 {offsets = [0, 0], sizes = [1, 32], strides = [1, 1]} : vector<1x128xf32> to vector<1x32xf32>
    %409 = vector.extract_strided_slice %407 {offsets = [0, 32], sizes = [1, 32], strides = [1, 1]} : vector<1x128xf32> to vector<1x32xf32>
    %410 = vector.extract_strided_slice %407 {offsets = [0, 64], sizes = [1, 32], strides = [1, 1]} : vector<1x128xf32> to vector<1x32xf32>
    %411 = vector.extract_strided_slice %407 {offsets = [0, 96], sizes = [1, 32], strides = [1, 1]} : vector<1x128xf32> to vector<1x32xf32>
    %412 = arith.mulf %409, %373 : vector<1x32xf32>
    %413 = arith.mulf %408, %410 : vector<1x32xf32>
    %414 = arith.addf %412, %413 : vector<1x32xf32>
    %415 = math.tanh %414 : vector<1x32xf32>
    %416 = arith.mulf %411, %415 : vector<1x32xf32>
    %417 = arith.truncf %416 : vector<1x32xf32> to vector<1x32xbf16>
    %c0_132 = arith.constant 0 : index
    %c0_133 = arith.constant 0 : index
    %418 = vector.load %arg6[%c0_132, %c0_133] : memref<32x128xbf16, #tpu.memory_space<vmem>>, vector<32x128xbf16>
    %cst_134 = arith.constant dense<0.000000e+00> : vector<1x128xf32>
    %419 = tpu.matmul %417, %418, %cst_134 {dimension_numbers = #tpu.dot_dimension_numbers<[1], [0], [0], [1], [0, 0, 1, 1], [], []>} : vector<1x32xbf16>, vector<32x128xbf16>, vector<1x128xf32> -> vector<1x128xf32>
    %420 = arith.truncf %397 : vector<1x32xf32> to vector<1x32xbf16>
    %c0_135 = arith.constant 0 : index
    %c0_136 = arith.constant 0 : index
    %421 = vector.load %arg7[%c0_135, %c0_136] : memref<32x128xbf16, #tpu.memory_space<vmem>>, vector<32x128xbf16>
    %cst_137 = arith.constant dense<0.000000e+00> : vector<1x128xf32>
    %422 = tpu.matmul %420, %421, %cst_137 {dimension_numbers = #tpu.dot_dimension_numbers<[1], [0], [0], [1], [0, 0, 1, 1], [], []>} : vector<1x32xbf16>, vector<32x128xbf16>, vector<1x128xf32> -> vector<1x128xf32>
    %423 = arith.addf %419, %422 : vector<1x128xf32>
    %c0_138 = arith.constant 0 : index
    %c0_139 = arith.constant 0 : index
    %424 = vector.load %arg8[%c0_138, %c0_139] : memref<1x128xf32, #tpu.memory_space<vmem>>, vector<1x128xf32>
    %425 = arith.addf %423, %424 : vector<1x128xf32>
    %426 = arith.mulf %21, %425 : vector<1x128xf32>
    %427 = math.tanh %426 : vector<1x128xf32>
    %428 = arith.mulf %21, %427 : vector<1x128xf32>
    %429 = arith.addf %428, %24 : vector<1x128xf32>
    %430 = vector.extract_strided_slice %429 {offsets = [0, 0], sizes = [1, 32], strides = [1, 1]} : vector<1x128xf32> to vector<1x32xf32>
    %431 = vector.extract_strided_slice %429 {offsets = [0, 32], sizes = [1, 32], strides = [1, 1]} : vector<1x128xf32> to vector<1x32xf32>
    %432 = vector.extract_strided_slice %429 {offsets = [0, 64], sizes = [1, 32], strides = [1, 1]} : vector<1x128xf32> to vector<1x32xf32>
    %433 = vector.extract_strided_slice %429 {offsets = [0, 96], sizes = [1, 32], strides = [1, 1]} : vector<1x128xf32> to vector<1x32xf32>
    %434 = arith.mulf %431, %395 : vector<1x32xf32>
    %435 = arith.mulf %430, %432 : vector<1x32xf32>
    %436 = arith.addf %434, %435 : vector<1x32xf32>
    %437 = math.tanh %436 : vector<1x32xf32>
    %438 = arith.mulf %433, %437 : vector<1x32xf32>
    %c10_i32 = arith.constant 10 : i32
    %439 = arith.index_cast %c10_i32 : i32 to index
    %c0_140 = arith.constant 0 : index
    %440 = vector.load %arg12[%439, %c0_140] : memref<16x128xf32, #tpu.memory_space<vmem>>, vector<1x128xf32>
    %441 = arith.truncf %416 : vector<1x32xf32> to vector<1x32xbf16>
    %c0_141 = arith.constant 0 : index
    %c0_142 = arith.constant 0 : index
    %442 = vector.load %arg4[%c0_141, %c0_142] : memref<32x128xbf16, #tpu.memory_space<vmem>>, vector<32x128xbf16>
    %cst_143 = arith.constant dense<0.000000e+00> : vector<1x128xf32>
    %443 = tpu.matmul %441, %442, %cst_143 {dimension_numbers = #tpu.dot_dimension_numbers<[1], [0], [0], [1], [0, 0, 1, 1], [], []>} : vector<1x32xbf16>, vector<32x128xbf16>, vector<1x128xf32> -> vector<1x128xf32>
    %444 = arith.addf %440, %443 : vector<1x128xf32>
    %445 = arith.mulf %21, %444 : vector<1x128xf32>
    %446 = math.tanh %445 : vector<1x128xf32>
    %447 = arith.mulf %21, %446 : vector<1x128xf32>
    %448 = arith.addf %447, %24 : vector<1x128xf32>
    %449 = vector.extract_strided_slice %448 {offsets = [0, 0], sizes = [1, 32], strides = [1, 1]} : vector<1x128xf32> to vector<1x32xf32>
    %450 = vector.extract_strided_slice %448 {offsets = [0, 32], sizes = [1, 32], strides = [1, 1]} : vector<1x128xf32> to vector<1x32xf32>
    %451 = vector.extract_strided_slice %448 {offsets = [0, 64], sizes = [1, 32], strides = [1, 1]} : vector<1x128xf32> to vector<1x32xf32>
    %452 = vector.extract_strided_slice %448 {offsets = [0, 96], sizes = [1, 32], strides = [1, 1]} : vector<1x128xf32> to vector<1x32xf32>
    %453 = arith.mulf %450, %414 : vector<1x32xf32>
    %454 = arith.mulf %449, %451 : vector<1x32xf32>
    %455 = arith.addf %453, %454 : vector<1x32xf32>
    %456 = math.tanh %455 : vector<1x32xf32>
    %457 = arith.mulf %452, %456 : vector<1x32xf32>
    %458 = arith.truncf %457 : vector<1x32xf32> to vector<1x32xbf16>
    %c0_144 = arith.constant 0 : index
    %c0_145 = arith.constant 0 : index
    %459 = vector.load %arg6[%c0_144, %c0_145] : memref<32x128xbf16, #tpu.memory_space<vmem>>, vector<32x128xbf16>
    %cst_146 = arith.constant dense<0.000000e+00> : vector<1x128xf32>
    %460 = tpu.matmul %458, %459, %cst_146 {dimension_numbers = #tpu.dot_dimension_numbers<[1], [0], [0], [1], [0, 0, 1, 1], [], []>} : vector<1x32xbf16>, vector<32x128xbf16>, vector<1x128xf32> -> vector<1x128xf32>
    %461 = arith.truncf %438 : vector<1x32xf32> to vector<1x32xbf16>
    %c0_147 = arith.constant 0 : index
    %c0_148 = arith.constant 0 : index
    %462 = vector.load %arg7[%c0_147, %c0_148] : memref<32x128xbf16, #tpu.memory_space<vmem>>, vector<32x128xbf16>
    %cst_149 = arith.constant dense<0.000000e+00> : vector<1x128xf32>
    %463 = tpu.matmul %461, %462, %cst_149 {dimension_numbers = #tpu.dot_dimension_numbers<[1], [0], [0], [1], [0, 0, 1, 1], [], []>} : vector<1x32xbf16>, vector<32x128xbf16>, vector<1x128xf32> -> vector<1x128xf32>
    %464 = arith.addf %460, %463 : vector<1x128xf32>
    %c0_150 = arith.constant 0 : index
    %c0_151 = arith.constant 0 : index
    %465 = vector.load %arg8[%c0_150, %c0_151] : memref<1x128xf32, #tpu.memory_space<vmem>>, vector<1x128xf32>
    %466 = arith.addf %464, %465 : vector<1x128xf32>
    %467 = arith.mulf %21, %466 : vector<1x128xf32>
    %468 = math.tanh %467 : vector<1x128xf32>
    %469 = arith.mulf %21, %468 : vector<1x128xf32>
    %470 = arith.addf %469, %24 : vector<1x128xf32>
    %471 = vector.extract_strided_slice %470 {offsets = [0, 0], sizes = [1, 32], strides = [1, 1]} : vector<1x128xf32> to vector<1x32xf32>
    %472 = vector.extract_strided_slice %470 {offsets = [0, 32], sizes = [1, 32], strides = [1, 1]} : vector<1x128xf32> to vector<1x32xf32>
    %473 = vector.extract_strided_slice %470 {offsets = [0, 64], sizes = [1, 32], strides = [1, 1]} : vector<1x128xf32> to vector<1x32xf32>
    %474 = vector.extract_strided_slice %470 {offsets = [0, 96], sizes = [1, 32], strides = [1, 1]} : vector<1x128xf32> to vector<1x32xf32>
    %475 = arith.mulf %472, %436 : vector<1x32xf32>
    %476 = arith.mulf %471, %473 : vector<1x32xf32>
    %477 = arith.addf %475, %476 : vector<1x32xf32>
    %478 = math.tanh %477 : vector<1x32xf32>
    %479 = arith.mulf %474, %478 : vector<1x32xf32>
    %c11_i32 = arith.constant 11 : i32
    %480 = arith.index_cast %c11_i32 : i32 to index
    %c0_152 = arith.constant 0 : index
    %481 = vector.load %arg12[%480, %c0_152] : memref<16x128xf32, #tpu.memory_space<vmem>>, vector<1x128xf32>
    %482 = arith.truncf %457 : vector<1x32xf32> to vector<1x32xbf16>
    %c0_153 = arith.constant 0 : index
    %c0_154 = arith.constant 0 : index
    %483 = vector.load %arg4[%c0_153, %c0_154] : memref<32x128xbf16, #tpu.memory_space<vmem>>, vector<32x128xbf16>
    %cst_155 = arith.constant dense<0.000000e+00> : vector<1x128xf32>
    %484 = tpu.matmul %482, %483, %cst_155 {dimension_numbers = #tpu.dot_dimension_numbers<[1], [0], [0], [1], [0, 0, 1, 1], [], []>} : vector<1x32xbf16>, vector<32x128xbf16>, vector<1x128xf32> -> vector<1x128xf32>
    %485 = arith.addf %481, %484 : vector<1x128xf32>
    %486 = arith.mulf %21, %485 : vector<1x128xf32>
    %487 = math.tanh %486 : vector<1x128xf32>
    %488 = arith.mulf %21, %487 : vector<1x128xf32>
    %489 = arith.addf %488, %24 : vector<1x128xf32>
    %490 = vector.extract_strided_slice %489 {offsets = [0, 0], sizes = [1, 32], strides = [1, 1]} : vector<1x128xf32> to vector<1x32xf32>
    %491 = vector.extract_strided_slice %489 {offsets = [0, 32], sizes = [1, 32], strides = [1, 1]} : vector<1x128xf32> to vector<1x32xf32>
    %492 = vector.extract_strided_slice %489 {offsets = [0, 64], sizes = [1, 32], strides = [1, 1]} : vector<1x128xf32> to vector<1x32xf32>
    %493 = vector.extract_strided_slice %489 {offsets = [0, 96], sizes = [1, 32], strides = [1, 1]} : vector<1x128xf32> to vector<1x32xf32>
    %494 = arith.mulf %491, %455 : vector<1x32xf32>
    %495 = arith.mulf %490, %492 : vector<1x32xf32>
    %496 = arith.addf %494, %495 : vector<1x32xf32>
    %497 = math.tanh %496 : vector<1x32xf32>
    %498 = arith.mulf %493, %497 : vector<1x32xf32>
    %499 = arith.truncf %498 : vector<1x32xf32> to vector<1x32xbf16>
    %c0_156 = arith.constant 0 : index
    %c0_157 = arith.constant 0 : index
    %500 = vector.load %arg6[%c0_156, %c0_157] : memref<32x128xbf16, #tpu.memory_space<vmem>>, vector<32x128xbf16>
    %cst_158 = arith.constant dense<0.000000e+00> : vector<1x128xf32>
    %501 = tpu.matmul %499, %500, %cst_158 {dimension_numbers = #tpu.dot_dimension_numbers<[1], [0], [0], [1], [0, 0, 1, 1], [], []>} : vector<1x32xbf16>, vector<32x128xbf16>, vector<1x128xf32> -> vector<1x128xf32>
    %502 = arith.truncf %479 : vector<1x32xf32> to vector<1x32xbf16>
    %c0_159 = arith.constant 0 : index
    %c0_160 = arith.constant 0 : index
    %503 = vector.load %arg7[%c0_159, %c0_160] : memref<32x128xbf16, #tpu.memory_space<vmem>>, vector<32x128xbf16>
    %cst_161 = arith.constant dense<0.000000e+00> : vector<1x128xf32>
    %504 = tpu.matmul %502, %503, %cst_161 {dimension_numbers = #tpu.dot_dimension_numbers<[1], [0], [0], [1], [0, 0, 1, 1], [], []>} : vector<1x32xbf16>, vector<32x128xbf16>, vector<1x128xf32> -> vector<1x128xf32>
    %505 = arith.addf %501, %504 : vector<1x128xf32>
    %c0_162 = arith.constant 0 : index
    %c0_163 = arith.constant 0 : index
    %506 = vector.load %arg8[%c0_162, %c0_163] : memref<1x128xf32, #tpu.memory_space<vmem>>, vector<1x128xf32>
    %507 = arith.addf %505, %506 : vector<1x128xf32>
    %508 = arith.mulf %21, %507 : vector<1x128xf32>
    %509 = math.tanh %508 : vector<1x128xf32>
    %510 = arith.mulf %21, %509 : vector<1x128xf32>
    %511 = arith.addf %510, %24 : vector<1x128xf32>
    %512 = vector.extract_strided_slice %511 {offsets = [0, 0], sizes = [1, 32], strides = [1, 1]} : vector<1x128xf32> to vector<1x32xf32>
    %513 = vector.extract_strided_slice %511 {offsets = [0, 32], sizes = [1, 32], strides = [1, 1]} : vector<1x128xf32> to vector<1x32xf32>
    %514 = vector.extract_strided_slice %511 {offsets = [0, 64], sizes = [1, 32], strides = [1, 1]} : vector<1x128xf32> to vector<1x32xf32>
    %515 = vector.extract_strided_slice %511 {offsets = [0, 96], sizes = [1, 32], strides = [1, 1]} : vector<1x128xf32> to vector<1x32xf32>
    %516 = arith.mulf %513, %477 : vector<1x32xf32>
    %517 = arith.mulf %512, %514 : vector<1x32xf32>
    %518 = arith.addf %516, %517 : vector<1x32xf32>
    %519 = math.tanh %518 : vector<1x32xf32>
    %520 = arith.mulf %515, %519 : vector<1x32xf32>
    %c12_i32 = arith.constant 12 : i32
    %521 = arith.index_cast %c12_i32 : i32 to index
    %c0_164 = arith.constant 0 : index
    %522 = vector.load %arg12[%521, %c0_164] : memref<16x128xf32, #tpu.memory_space<vmem>>, vector<1x128xf32>
    %523 = arith.truncf %498 : vector<1x32xf32> to vector<1x32xbf16>
    %c0_165 = arith.constant 0 : index
    %c0_166 = arith.constant 0 : index
    %524 = vector.load %arg4[%c0_165, %c0_166] : memref<32x128xbf16, #tpu.memory_space<vmem>>, vector<32x128xbf16>
    %cst_167 = arith.constant dense<0.000000e+00> : vector<1x128xf32>
    %525 = tpu.matmul %523, %524, %cst_167 {dimension_numbers = #tpu.dot_dimension_numbers<[1], [0], [0], [1], [0, 0, 1, 1], [], []>} : vector<1x32xbf16>, vector<32x128xbf16>, vector<1x128xf32> -> vector<1x128xf32>
    %526 = arith.addf %522, %525 : vector<1x128xf32>
    %527 = arith.mulf %21, %526 : vector<1x128xf32>
    %528 = math.tanh %527 : vector<1x128xf32>
    %529 = arith.mulf %21, %528 : vector<1x128xf32>
    %530 = arith.addf %529, %24 : vector<1x128xf32>
    %531 = vector.extract_strided_slice %530 {offsets = [0, 0], sizes = [1, 32], strides = [1, 1]} : vector<1x128xf32> to vector<1x32xf32>
    %532 = vector.extract_strided_slice %530 {offsets = [0, 32], sizes = [1, 32], strides = [1, 1]} : vector<1x128xf32> to vector<1x32xf32>
    %533 = vector.extract_strided_slice %530 {offsets = [0, 64], sizes = [1, 32], strides = [1, 1]} : vector<1x128xf32> to vector<1x32xf32>
    %534 = vector.extract_strided_slice %530 {offsets = [0, 96], sizes = [1, 32], strides = [1, 1]} : vector<1x128xf32> to vector<1x32xf32>
    %535 = arith.mulf %532, %496 : vector<1x32xf32>
    %536 = arith.mulf %531, %533 : vector<1x32xf32>
    %537 = arith.addf %535, %536 : vector<1x32xf32>
    %538 = math.tanh %537 : vector<1x32xf32>
    %539 = arith.mulf %534, %538 : vector<1x32xf32>
    %540 = arith.truncf %539 : vector<1x32xf32> to vector<1x32xbf16>
    %c0_168 = arith.constant 0 : index
    %c0_169 = arith.constant 0 : index
    %541 = vector.load %arg6[%c0_168, %c0_169] : memref<32x128xbf16, #tpu.memory_space<vmem>>, vector<32x128xbf16>
    %cst_170 = arith.constant dense<0.000000e+00> : vector<1x128xf32>
    %542 = tpu.matmul %540, %541, %cst_170 {dimension_numbers = #tpu.dot_dimension_numbers<[1], [0], [0], [1], [0, 0, 1, 1], [], []>} : vector<1x32xbf16>, vector<32x128xbf16>, vector<1x128xf32> -> vector<1x128xf32>
    %543 = arith.truncf %520 : vector<1x32xf32> to vector<1x32xbf16>
    %c0_171 = arith.constant 0 : index
    %c0_172 = arith.constant 0 : index
    %544 = vector.load %arg7[%c0_171, %c0_172] : memref<32x128xbf16, #tpu.memory_space<vmem>>, vector<32x128xbf16>
    %cst_173 = arith.constant dense<0.000000e+00> : vector<1x128xf32>
    %545 = tpu.matmul %543, %544, %cst_173 {dimension_numbers = #tpu.dot_dimension_numbers<[1], [0], [0], [1], [0, 0, 1, 1], [], []>} : vector<1x32xbf16>, vector<32x128xbf16>, vector<1x128xf32> -> vector<1x128xf32>
    %546 = arith.addf %542, %545 : vector<1x128xf32>
    %c0_174 = arith.constant 0 : index
    %c0_175 = arith.constant 0 : index
    %547 = vector.load %arg8[%c0_174, %c0_175] : memref<1x128xf32, #tpu.memory_space<vmem>>, vector<1x128xf32>
    %548 = arith.addf %546, %547 : vector<1x128xf32>
    %549 = arith.mulf %21, %548 : vector<1x128xf32>
    %550 = math.tanh %549 : vector<1x128xf32>
    %551 = arith.mulf %21, %550 : vector<1x128xf32>
    %552 = arith.addf %551, %24 : vector<1x128xf32>
    %553 = vector.extract_strided_slice %552 {offsets = [0, 0], sizes = [1, 32], strides = [1, 1]} : vector<1x128xf32> to vector<1x32xf32>
    %554 = vector.extract_strided_slice %552 {offsets = [0, 32], sizes = [1, 32], strides = [1, 1]} : vector<1x128xf32> to vector<1x32xf32>
    %555 = vector.extract_strided_slice %552 {offsets = [0, 64], sizes = [1, 32], strides = [1, 1]} : vector<1x128xf32> to vector<1x32xf32>
    %556 = vector.extract_strided_slice %552 {offsets = [0, 96], sizes = [1, 32], strides = [1, 1]} : vector<1x128xf32> to vector<1x32xf32>
    %557 = arith.mulf %554, %518 : vector<1x32xf32>
    %558 = arith.mulf %553, %555 : vector<1x32xf32>
    %559 = arith.addf %557, %558 : vector<1x32xf32>
    %560 = math.tanh %559 : vector<1x32xf32>
    %561 = arith.mulf %556, %560 : vector<1x32xf32>
    %c13_i32 = arith.constant 13 : i32
    %562 = arith.index_cast %c13_i32 : i32 to index
    %c0_176 = arith.constant 0 : index
    %563 = vector.load %arg12[%562, %c0_176] : memref<16x128xf32, #tpu.memory_space<vmem>>, vector<1x128xf32>
    %564 = arith.truncf %539 : vector<1x32xf32> to vector<1x32xbf16>
    %c0_177 = arith.constant 0 : index
    %c0_178 = arith.constant 0 : index
    %565 = vector.load %arg4[%c0_177, %c0_178] : memref<32x128xbf16, #tpu.memory_space<vmem>>, vector<32x128xbf16>
    %cst_179 = arith.constant dense<0.000000e+00> : vector<1x128xf32>
    %566 = tpu.matmul %564, %565, %cst_179 {dimension_numbers = #tpu.dot_dimension_numbers<[1], [0], [0], [1], [0, 0, 1, 1], [], []>} : vector<1x32xbf16>, vector<32x128xbf16>, vector<1x128xf32> -> vector<1x128xf32>
    %567 = arith.addf %563, %566 : vector<1x128xf32>
    %568 = arith.mulf %21, %567 : vector<1x128xf32>
    %569 = math.tanh %568 : vector<1x128xf32>
    %570 = arith.mulf %21, %569 : vector<1x128xf32>
    %571 = arith.addf %570, %24 : vector<1x128xf32>
    %572 = vector.extract_strided_slice %571 {offsets = [0, 0], sizes = [1, 32], strides = [1, 1]} : vector<1x128xf32> to vector<1x32xf32>
    %573 = vector.extract_strided_slice %571 {offsets = [0, 32], sizes = [1, 32], strides = [1, 1]} : vector<1x128xf32> to vector<1x32xf32>
    %574 = vector.extract_strided_slice %571 {offsets = [0, 64], sizes = [1, 32], strides = [1, 1]} : vector<1x128xf32> to vector<1x32xf32>
    %575 = vector.extract_strided_slice %571 {offsets = [0, 96], sizes = [1, 32], strides = [1, 1]} : vector<1x128xf32> to vector<1x32xf32>
    %576 = arith.mulf %573, %537 : vector<1x32xf32>
    %577 = arith.mulf %572, %574 : vector<1x32xf32>
    %578 = arith.addf %576, %577 : vector<1x32xf32>
    %579 = math.tanh %578 : vector<1x32xf32>
    %580 = arith.mulf %575, %579 : vector<1x32xf32>
    %581 = arith.truncf %580 : vector<1x32xf32> to vector<1x32xbf16>
    %c0_180 = arith.constant 0 : index
    %c0_181 = arith.constant 0 : index
    %582 = vector.load %arg6[%c0_180, %c0_181] : memref<32x128xbf16, #tpu.memory_space<vmem>>, vector<32x128xbf16>
    %cst_182 = arith.constant dense<0.000000e+00> : vector<1x128xf32>
    %583 = tpu.matmul %581, %582, %cst_182 {dimension_numbers = #tpu.dot_dimension_numbers<[1], [0], [0], [1], [0, 0, 1, 1], [], []>} : vector<1x32xbf16>, vector<32x128xbf16>, vector<1x128xf32> -> vector<1x128xf32>
    %584 = arith.truncf %561 : vector<1x32xf32> to vector<1x32xbf16>
    %c0_183 = arith.constant 0 : index
    %c0_184 = arith.constant 0 : index
    %585 = vector.load %arg7[%c0_183, %c0_184] : memref<32x128xbf16, #tpu.memory_space<vmem>>, vector<32x128xbf16>
    %cst_185 = arith.constant dense<0.000000e+00> : vector<1x128xf32>
    %586 = tpu.matmul %584, %585, %cst_185 {dimension_numbers = #tpu.dot_dimension_numbers<[1], [0], [0], [1], [0, 0, 1, 1], [], []>} : vector<1x32xbf16>, vector<32x128xbf16>, vector<1x128xf32> -> vector<1x128xf32>
    %587 = arith.addf %583, %586 : vector<1x128xf32>
    %c0_186 = arith.constant 0 : index
    %c0_187 = arith.constant 0 : index
    %588 = vector.load %arg8[%c0_186, %c0_187] : memref<1x128xf32, #tpu.memory_space<vmem>>, vector<1x128xf32>
    %589 = arith.addf %587, %588 : vector<1x128xf32>
    %590 = arith.mulf %21, %589 : vector<1x128xf32>
    %591 = math.tanh %590 : vector<1x128xf32>
    %592 = arith.mulf %21, %591 : vector<1x128xf32>
    %593 = arith.addf %592, %24 : vector<1x128xf32>
    %594 = vector.extract_strided_slice %593 {offsets = [0, 0], sizes = [1, 32], strides = [1, 1]} : vector<1x128xf32> to vector<1x32xf32>
    %595 = vector.extract_strided_slice %593 {offsets = [0, 32], sizes = [1, 32], strides = [1, 1]} : vector<1x128xf32> to vector<1x32xf32>
    %596 = vector.extract_strided_slice %593 {offsets = [0, 64], sizes = [1, 32], strides = [1, 1]} : vector<1x128xf32> to vector<1x32xf32>
    %597 = vector.extract_strided_slice %593 {offsets = [0, 96], sizes = [1, 32], strides = [1, 1]} : vector<1x128xf32> to vector<1x32xf32>
    %598 = arith.mulf %595, %559 : vector<1x32xf32>
    %599 = arith.mulf %594, %596 : vector<1x32xf32>
    %600 = arith.addf %598, %599 : vector<1x32xf32>
    %601 = math.tanh %600 : vector<1x32xf32>
    %602 = arith.mulf %597, %601 : vector<1x32xf32>
    %c14_i32 = arith.constant 14 : i32
    %603 = arith.index_cast %c14_i32 : i32 to index
    %c0_188 = arith.constant 0 : index
    %604 = vector.load %arg12[%603, %c0_188] : memref<16x128xf32, #tpu.memory_space<vmem>>, vector<1x128xf32>
    %605 = arith.truncf %580 : vector<1x32xf32> to vector<1x32xbf16>
    %c0_189 = arith.constant 0 : index
    %c0_190 = arith.constant 0 : index
    %606 = vector.load %arg4[%c0_189, %c0_190] : memref<32x128xbf16, #tpu.memory_space<vmem>>, vector<32x128xbf16>
    %cst_191 = arith.constant dense<0.000000e+00> : vector<1x128xf32>
    %607 = tpu.matmul %605, %606, %cst_191 {dimension_numbers = #tpu.dot_dimension_numbers<[1], [0], [0], [1], [0, 0, 1, 1], [], []>} : vector<1x32xbf16>, vector<32x128xbf16>, vector<1x128xf32> -> vector<1x128xf32>
    %608 = arith.addf %604, %607 : vector<1x128xf32>
    %609 = arith.mulf %21, %608 : vector<1x128xf32>
    %610 = math.tanh %609 : vector<1x128xf32>
    %611 = arith.mulf %21, %610 : vector<1x128xf32>
    %612 = arith.addf %611, %24 : vector<1x128xf32>
    %613 = vector.extract_strided_slice %612 {offsets = [0, 0], sizes = [1, 32], strides = [1, 1]} : vector<1x128xf32> to vector<1x32xf32>
    %614 = vector.extract_strided_slice %612 {offsets = [0, 32], sizes = [1, 32], strides = [1, 1]} : vector<1x128xf32> to vector<1x32xf32>
    %615 = vector.extract_strided_slice %612 {offsets = [0, 64], sizes = [1, 32], strides = [1, 1]} : vector<1x128xf32> to vector<1x32xf32>
    %616 = vector.extract_strided_slice %612 {offsets = [0, 96], sizes = [1, 32], strides = [1, 1]} : vector<1x128xf32> to vector<1x32xf32>
    %617 = arith.mulf %614, %578 : vector<1x32xf32>
    %618 = arith.mulf %613, %615 : vector<1x32xf32>
    %619 = arith.addf %617, %618 : vector<1x32xf32>
    %620 = math.tanh %619 : vector<1x32xf32>
    %621 = arith.mulf %616, %620 : vector<1x32xf32>
    %622 = arith.truncf %621 : vector<1x32xf32> to vector<1x32xbf16>
    %c0_192 = arith.constant 0 : index
    %c0_193 = arith.constant 0 : index
    %623 = vector.load %arg6[%c0_192, %c0_193] : memref<32x128xbf16, #tpu.memory_space<vmem>>, vector<32x128xbf16>
    %cst_194 = arith.constant dense<0.000000e+00> : vector<1x128xf32>
    %624 = tpu.matmul %622, %623, %cst_194 {dimension_numbers = #tpu.dot_dimension_numbers<[1], [0], [0], [1], [0, 0, 1, 1], [], []>} : vector<1x32xbf16>, vector<32x128xbf16>, vector<1x128xf32> -> vector<1x128xf32>
    %625 = arith.truncf %602 : vector<1x32xf32> to vector<1x32xbf16>
    %c0_195 = arith.constant 0 : index
    %c0_196 = arith.constant 0 : index
    %626 = vector.load %arg7[%c0_195, %c0_196] : memref<32x128xbf16, #tpu.memory_space<vmem>>, vector<32x128xbf16>
    %cst_197 = arith.constant dense<0.000000e+00> : vector<1x128xf32>
    %627 = tpu.matmul %625, %626, %cst_197 {dimension_numbers = #tpu.dot_dimension_numbers<[1], [0], [0], [1], [0, 0, 1, 1], [], []>} : vector<1x32xbf16>, vector<32x128xbf16>, vector<1x128xf32> -> vector<1x128xf32>
    %628 = arith.addf %624, %627 : vector<1x128xf32>
    %c0_198 = arith.constant 0 : index
    %c0_199 = arith.constant 0 : index
    %629 = vector.load %arg8[%c0_198, %c0_199] : memref<1x128xf32, #tpu.memory_space<vmem>>, vector<1x128xf32>
    %630 = arith.addf %628, %629 : vector<1x128xf32>
    %631 = arith.mulf %21, %630 : vector<1x128xf32>
    %632 = math.tanh %631 : vector<1x128xf32>
    %633 = arith.mulf %21, %632 : vector<1x128xf32>
    %634 = arith.addf %633, %24 : vector<1x128xf32>
    %635 = vector.extract_strided_slice %634 {offsets = [0, 0], sizes = [1, 32], strides = [1, 1]} : vector<1x128xf32> to vector<1x32xf32>
    %636 = vector.extract_strided_slice %634 {offsets = [0, 32], sizes = [1, 32], strides = [1, 1]} : vector<1x128xf32> to vector<1x32xf32>
    %637 = vector.extract_strided_slice %634 {offsets = [0, 64], sizes = [1, 32], strides = [1, 1]} : vector<1x128xf32> to vector<1x32xf32>
    %638 = vector.extract_strided_slice %634 {offsets = [0, 96], sizes = [1, 32], strides = [1, 1]} : vector<1x128xf32> to vector<1x32xf32>
    %639 = arith.mulf %636, %600 : vector<1x32xf32>
    %640 = arith.mulf %635, %637 : vector<1x32xf32>
    %641 = arith.addf %639, %640 : vector<1x32xf32>
    %642 = math.tanh %641 : vector<1x32xf32>
    %643 = arith.mulf %638, %642 : vector<1x32xf32>
    %c15_i32 = arith.constant 15 : i32
    %644 = arith.index_cast %c15_i32 : i32 to index
    %c0_200 = arith.constant 0 : index
    %645 = vector.load %arg12[%644, %c0_200] : memref<16x128xf32, #tpu.memory_space<vmem>>, vector<1x128xf32>
    %646 = arith.truncf %621 : vector<1x32xf32> to vector<1x32xbf16>
    %c0_201 = arith.constant 0 : index
    %c0_202 = arith.constant 0 : index
    %647 = vector.load %arg4[%c0_201, %c0_202] : memref<32x128xbf16, #tpu.memory_space<vmem>>, vector<32x128xbf16>
    %cst_203 = arith.constant dense<0.000000e+00> : vector<1x128xf32>
    %648 = tpu.matmul %646, %647, %cst_203 {dimension_numbers = #tpu.dot_dimension_numbers<[1], [0], [0], [1], [0, 0, 1, 1], [], []>} : vector<1x32xbf16>, vector<32x128xbf16>, vector<1x128xf32> -> vector<1x128xf32>
    %649 = arith.addf %645, %648 : vector<1x128xf32>
    %650 = arith.mulf %21, %649 : vector<1x128xf32>
    %651 = math.tanh %650 : vector<1x128xf32>
    %652 = arith.mulf %21, %651 : vector<1x128xf32>
    %653 = arith.addf %652, %24 : vector<1x128xf32>
    %654 = vector.extract_strided_slice %653 {offsets = [0, 0], sizes = [1, 32], strides = [1, 1]} : vector<1x128xf32> to vector<1x32xf32>
    %655 = vector.extract_strided_slice %653 {offsets = [0, 32], sizes = [1, 32], strides = [1, 1]} : vector<1x128xf32> to vector<1x32xf32>
    %656 = vector.extract_strided_slice %653 {offsets = [0, 64], sizes = [1, 32], strides = [1, 1]} : vector<1x128xf32> to vector<1x32xf32>
    %657 = vector.extract_strided_slice %653 {offsets = [0, 96], sizes = [1, 32], strides = [1, 1]} : vector<1x128xf32> to vector<1x32xf32>
    %658 = arith.mulf %655, %619 : vector<1x32xf32>
    %659 = arith.mulf %654, %656 : vector<1x32xf32>
    %660 = arith.addf %658, %659 : vector<1x32xf32>
    %661 = math.tanh %660 : vector<1x32xf32>
    %662 = arith.mulf %657, %661 : vector<1x32xf32>
    %663 = arith.truncf %662 : vector<1x32xf32> to vector<1x32xbf16>
    %c0_204 = arith.constant 0 : index
    %c0_205 = arith.constant 0 : index
    %664 = vector.load %arg6[%c0_204, %c0_205] : memref<32x128xbf16, #tpu.memory_space<vmem>>, vector<32x128xbf16>
    %cst_206 = arith.constant dense<0.000000e+00> : vector<1x128xf32>
    %665 = tpu.matmul %663, %664, %cst_206 {dimension_numbers = #tpu.dot_dimension_numbers<[1], [0], [0], [1], [0, 0, 1, 1], [], []>} : vector<1x32xbf16>, vector<32x128xbf16>, vector<1x128xf32> -> vector<1x128xf32>
    %666 = arith.truncf %643 : vector<1x32xf32> to vector<1x32xbf16>
    %c0_207 = arith.constant 0 : index
    %c0_208 = arith.constant 0 : index
    %667 = vector.load %arg7[%c0_207, %c0_208] : memref<32x128xbf16, #tpu.memory_space<vmem>>, vector<32x128xbf16>
    %cst_209 = arith.constant dense<0.000000e+00> : vector<1x128xf32>
    %668 = tpu.matmul %666, %667, %cst_209 {dimension_numbers = #tpu.dot_dimension_numbers<[1], [0], [0], [1], [0, 0, 1, 1], [], []>} : vector<1x32xbf16>, vector<32x128xbf16>, vector<1x128xf32> -> vector<1x128xf32>
    %669 = arith.addf %665, %668 : vector<1x128xf32>
    %c0_210 = arith.constant 0 : index
    %c0_211 = arith.constant 0 : index
    %670 = vector.load %arg8[%c0_210, %c0_211] : memref<1x128xf32, #tpu.memory_space<vmem>>, vector<1x128xf32>
    %671 = arith.addf %669, %670 : vector<1x128xf32>
    %672 = arith.mulf %21, %671 : vector<1x128xf32>
    %673 = math.tanh %672 : vector<1x128xf32>
    %674 = arith.mulf %21, %673 : vector<1x128xf32>
    %675 = arith.addf %674, %24 : vector<1x128xf32>
    %676 = vector.extract_strided_slice %675 {offsets = [0, 0], sizes = [1, 32], strides = [1, 1]} : vector<1x128xf32> to vector<1x32xf32>
    %677 = vector.extract_strided_slice %675 {offsets = [0, 32], sizes = [1, 32], strides = [1, 1]} : vector<1x128xf32> to vector<1x32xf32>
    %678 = vector.extract_strided_slice %675 {offsets = [0, 64], sizes = [1, 32], strides = [1, 1]} : vector<1x128xf32> to vector<1x32xf32>
    %679 = vector.extract_strided_slice %675 {offsets = [0, 96], sizes = [1, 32], strides = [1, 1]} : vector<1x128xf32> to vector<1x32xf32>
    %680 = arith.mulf %677, %641 : vector<1x32xf32>
    %681 = arith.mulf %676, %678 : vector<1x32xf32>
    %682 = arith.addf %680, %681 : vector<1x32xf32>
    %683 = math.tanh %682 : vector<1x32xf32>
    %684 = arith.mulf %679, %683 : vector<1x32xf32>
    %c16_i32 = arith.constant 16 : i32
    %c0_212 = arith.constant 0 : index
    %c0_213 = arith.constant 0 : index
    %685 = vector.load %arg9[%c0_212, %c0_213] : memref<1x32xf32, #tpu.memory_space<vmem>>, vector<1x32xf32>
    %686 = arith.mulf %684, %685 : vector<1x32xf32>
    %cst_214 = arith.constant dense<0.000000e+00> : vector<1xf32>
    %687 = vector.multi_reduction <add>, %686, %cst_214 [1] : vector<1x32xf32> to vector<1xf32>
    %688 = vector.shape_cast %687 : vector<1xf32> to vector<1x1xf32>
    %c0_215 = arith.constant 0 : index
    %c0_216 = arith.constant 0 : index
    %689 = vector.load %arg10[%c0_215, %c0_216] : memref<1x1xf32, #tpu.memory_space<vmem>>, vector<1x1xf32>
    %690 = arith.addf %688, %689 : vector<1x1xf32>
    %c0_217 = arith.constant 0 : index
    %c0_218 = arith.constant 0 : index
    %691 = vector.load %arg11[%c0_217, %c0_218] : memref<1x1xf32, #tpu.memory_space<vmem>>, vector<1x1xf32>
    tpu.vector_store %arg11[%c0_217, %c0_218], %690 {strides = array<i32>} : memref<1x1xf32, #tpu.memory_space<vmem>>, vector<1x1xf32>,
    return
  }
}

</mosaic_0001>

<bundles_post_ra>
// kernel: tpu_custom_call.1
= control target key start
LH: loop header
LB: loop body
LE: loop exit
PB: predicated region body
PF: predicated region fallthrough
CT: control target
= control target key end

     0   :  { %s5142_s0 = inlined_call_operand.hbm [shape: bf16[144,128], index: 0, kind: input, shape index: {}]   ;;  %s5143_s1 = inlined_call_operand.vmem [shape: bf16[16,144], index: 1, kind: input, shape index: {}]   ;;  %s5144_s2 = inlined_call_operand.vmem [shape: f32[16,1], index: 2, kind: input, shape index: {}]   ;;  %s5145_s3 = inlined_call_operand.hbm [shape: bf16[128,128], index: 3, kind: input, shape index: {}]   ;;  %s5146_s4 = inlined_call_operand.hbm [shape: bf16[32,128], index: 4, kind: input, shape index: {}]   ;;  %s5147_s5 = inlined_call_operand.vmem [shape: f32[1,128], index: 5, kind: input, shape index: {}]   ;;  %s5148_s6 = inlined_call_operand.hbm [shape: bf16[32,128], index: 6, kind: input, shape index: {}]   ;;  %s5149_s7 = inlined_call_operand.hbm [shape: bf16[32,128], index: 7, kind: input, shape index: {}]   ;;  %s5150_s8 = inlined_call_operand.vmem [shape: f32[1,128], index: 8, kind: input, shape index: {}]   ;;  %s5151_s9 = inlined_call_operand.vmem [shape: f32[1,32], index: 9, kind: input, shape index: {}]   ;;  %s5152_s10 = inlined_call_operand.<no memory space> [shape: f32[1,1], index: 10, kind: input, shape index: {}]   ;;  %s5153_s11 = inlined_call_operand.hbm [shape: f32[1,1], index: 11, kind: output, shape index: {}]  }
   0x1   :  { %v16_v0 = vstv %s5152_s10 }
   0x2   :  { %17 = vst [vmem:[#allocation3] sm:$0x1] %v16_v0 }
   0x3   :  { %18 = vsyncpa [#allocation5], 0 }
   0x4   :  { %19 = vsyncpa [#allocation8], 0 }
   0x5   :  { %20 = vsyncpa [#allocation11], 0 }
   0x6   :  { %21 = vsyncpa [#allocation6], 0  ;;  %s4263_s19 = smov [#allocation7]   ;;  %s4264_s21 = smov [#allocation10]  }
   0x7   :  { %s43_s20 = sshll.u32 %s4263_s19, 4  ;;  %s69_s22 = sshll.u32 %s4264_s21, 4  ;;  %s44_s20 = int_to_ptr.vmem [resolvable:$true] %s43_s20  ;;  %s70_s22 = int_to_ptr.vmem [resolvable:$true] %s69_s22 }
   0x8   :  { %s4143_s23 = scalar_lea.vmem %s44_s20, 1024  ;;  %p4148_p1 = scmp.lt.s32.totalorder %s44_s20, %s44_s20 }
   0x9   :  { %p4144_p0 = scmp.ne.s32.totalorder %s44_s20, %s4143_s23  ;;  %p4149_p2 = scmp.lt.s32.totalorder %s4143_s23, %s4143_s23 }
   0xb   :  { %p4150_p3 = por %p4149_p2, %p4148_p1 }
   0xd   :  { %p4151_p4 = pnand %p4150_p3, %p4144_p0 }
   0xf   :  { %4154 = shalt.err (!%p4151_p4)
}
  0x10   :  { %s4265_s24 = smov 64   ;;  %s4266_s10 = smov 4  }
  0x11   :  { %49 = dma.hbm_to_vmem [thread:$0]  %s5145_s3, 1024, %s44_s20, [#allocation8], %s4265_s24, %s4265_s24, %s4266_s10  }
  0x12   :  { %s4163_s27 = scalar_lea.vmem %s70_s22, 256  ;;  %p4168_p6 = scmp.lt.s32.totalorder %s70_s22, %s70_s22 }
  0x13   :  { %p4164_p5 = scmp.ne.s32.totalorder %s70_s22, %s4163_s27  ;;  %p4169_p7 = scmp.lt.s32.totalorder %s4163_s27, %s4163_s27 }
  0x15   :  { %p4170_p8 = por %p4169_p7, %p4168_p6 }
  0x17   :  { %p4171_p9 = pnand %p4170_p8, %p4164_p5 }
  0x19   :  { %4174 = shalt.err (!%p4171_p9)
}
  0x1a   :  { %75 = dma.hbm_to_vmem [thread:$0]  %s5148_s6, 256, %s70_s22, [#allocation11], %s4265_s24, %s4265_s24, %s4266_s10  }
  0x1b   :  { %s4267_s30 = smov [#allocation4]   ;;  %s4268_s13 = smov [#allocation9]  }
  0x1c   :  { %s27_s12 = sshll.u32 %s4267_s30, 4  ;;  %s55_s14 = sshll.u32 %s4268_s13, 4  ;;  %s28_s12 = int_to_ptr.vmem [resolvable:$true] %s27_s12  ;;  %s56_s14 = int_to_ptr.vmem [resolvable:$true] %s55_s14 }
  0x1d   :  { %s4183_s3 = scalar_lea.vmem %s28_s12, 1152  ;;  %p4188_p11 = scmp.lt.s32.totalorder %s28_s12, %s28_s12 }
  0x1e   :  { %p4184_p10 = scmp.ne.s32.totalorder %s28_s12, %s4183_s3  ;;  %p4189_p12 = scmp.lt.s32.totalorder %s4183_s3, %s4183_s3 }
  0x20   :  { %p4190_p13 = por %p4189_p12, %p4188_p11 }
  0x22   :  { %p4191_p0 = pnand %p4190_p13, %p4184_p10 }
  0x24   :  { %4194 = shalt.err (!%p4191_p0)
}
  0x25   :  { %33 = dma.hbm_to_vmem [thread:$0]  %s5142_s0, 1152, %s28_s12, [#allocation5], %s4265_s24, %s4265_s24, %s4266_s10  }
  0x26   :  { %s4203_s6 = scalar_lea.vmem %s56_s14, 256  ;;  %p4208_p2 = scmp.lt.s32.totalorder %s56_s14, %s56_s14 }
  0x27   :  { %p4204_p1 = scmp.ne.s32.totalorder %s56_s14, %s4203_s6  ;;  %p4209_p3 = scmp.lt.s32.totalorder %s4203_s6, %s4203_s6 }
  0x29   :  { %p4210_p4 = por %p4209_p3, %p4208_p2 }
  0x2b   :  { %p4211_p5 = pnand %p4210_p4, %p4204_p1 }
  0x2d   :  { %4214 = shalt.err (!%p4211_p5)
}
  0x2e   :  { %61 = dma.hbm_to_vmem [thread:$0]  %s5146_s4, 256, %s56_s14, [#allocation8], %s4265_s24, %s4265_s24, %s4266_s10  }
  0x2f   :  { %s4269_s19 = smov [#allocation12]  }
  0x30   :  { %s81_s20 = sshll.u32 %s4269_s19, 4  ;;  %s82_s20 = int_to_ptr.vmem [resolvable:$true] %s81_s20 }
  0x31   :  { %s4223_s21 = scalar_lea.vmem %s82_s20, 256  ;;  %p4228_p7 = scmp.lt.s32.totalorder %s82_s20, %s82_s20 }
  0x32   :  { %p4224_p6 = scmp.ne.s32.totalorder %s82_s20, %s4223_s21  ;;  %p4229_p8 = scmp.lt.s32.totalorder %s4223_s21, %s4223_s21 }
  0x34   :  { %p4230_p9 = por %p4229_p8, %p4228_p7 }
  0x36   :  { %p4231_p10 = pnand %p4230_p9, %p4224_p6 }
  0x38   :  { %4234 = shalt.err (!%p4231_p10)
}
  0x39   :  { %87 = dma.hbm_to_vmem [thread:$0]  %s5149_s7, 256, %s82_s20, [#allocation11], %s4265_s24, %s4265_s24, %s4266_s10  }
  0x3a   :  { %4255 = dma.done.wait [#allocation5], 1152  }
  0x3b   :  { %4256 = vsyncadd [#allocation5], 4294966144 }
  0x3c   :  { %4257 = dma.done.wait [#allocation8], 1280  }
  0x3d   :  { %4258 = vsyncadd [#allocation8], 4294966016 }
  0x3e   :  { %4259 = dma.done.wait [#allocation11], 512  }
  0x3f   :  { %4260 = vsyncadd [#allocation11], 4294966784  ;;  %v4270_v1 = vmov 0   ;;  %v4271_v2 = vmov 0.0   ;;  %v3967_v3 = vld [vmem:[#allocation4 + $0x38] sm:$0xff]   ;;  %v3968_v4 = vld [vmem:[#allocation4 + $0x30] sm:$0xff]   ;;  %v365_v35 = vlaneseq }
  0x40   :  { %209 = vmatprep.subr.bf16.mxu0 %v4270_v1  ;;  %3966 = vset.pattern.permute.xlu0 %v4270_v1  ;;  %v3969_v5 = vld [vmem:[#allocation4 + $0x28] sm:$0xff]   ;;  %vm205_vm0 = vcmask 130048   ;;  %v3970_v6 = vld [vmem:[#allocation4 + $0x20] sm:$0xff]   ;;  %v3978_v7 = vld [vmem:[%s5143_s1 + $0x4] ss:$8 sps:$4 sm:$0xff]   ;;  %vm4272_vm1 = vmmov 0  }
  0x41   :  { %3548 = vmatprep.subr.bf16.mxu1 %v4271_v2  ;;  %210 = vmatpush1.bf16.msra.mxu0 %v3967_v3  ;;  %v130_v8 = vld [vmem:[%s5144_s2] sm:$0xff]  ;;  %v3979_v9 = vld [vmem:[#allocation7 + $0x38] sm:$0xff]   ;;  %v131_v10 = vld [vmem:[%s5144_s2 + $0x8] sm:$0xff]  ;;  %v366_v38 = vand.u32 127, %v365_v35  ;;  %v4273_v45 = vmov 0.5   ;;  %vm389_vm5 = vcmask 261120  }
  0x42   :  { %211 = vmatprep.subr.bf16.mxu0 %v4270_v1  ;;  %134 = vperm.xlu0 %3966, %v130_v8   ;;  %v3980_v11 = vld [vmem:[#allocation7 + $0x30] sm:$0xff]   ;;  %v3972_v13 = vld [vmem:[#allocation4 + $0x10] sm:$0xff]   ;;  %v3982_v15 = vld [vmem:[#allocation7 + $0x20] sm:$0xff]   ;;  %s4275_s16 = smov 96   ;;  %vm3296_vm6 = vcmask 253952   ;;  %vm3302_vm7 = vcmask 0  }
  0x43   :  { %3332 = vmatprep.mubr.msk.bf16.mxu0 %vm205_vm0, %v3978_v7  ;;  %3549 = vmatpush3.bf16.msra.mxu1 %v3979_v9  ;;  %v3971_v12 = vld [vmem:[#allocation4 + $0x18] sm:$0xff]   ;;  %v3981_v14 = vld [vmem:[#allocation7 + $0x28] sm:$0xff]   ;;  %v3973_v16 = vld [vmem:[#allocation4 + $0x8] sm:$0xff]   ;;  %vm367_vm2 = vcmp.ge.s32.totalorder %v366_v38, 64  ;;  %vm368_vm3 = vcmp.lt.s32.totalorder %v366_v38, 96 }
  0x44   :  { %3550 = vmatprep.subr.bf16.mxu1 %v4271_v2  ;;  %v3983_v17 = vld [vmem:[#allocation7 + $0x18] sm:$0xff]   ;;  %v3984_v19 = vld [vmem:[#allocation7 + $0x10] sm:$0xff]   ;;  %v3985_v22 = vld [vmem:[#allocation7 + $0x8] sm:$0xff]   ;;  %3564 = vmatprep.mubr.msk.bf16.mxu1 %vm4272_vm1, %v4271_v2 }
  0x45   :  { %212 = vmatpush1.bf16.msra.mxu0 %v3968_v4  ;;  %v3974_v18 = vld [vmem:[#allocation4] sm:$0xff]   ;;  %v3976_v21 = vld [vmem:[%s5143_s1] ss:$8 sps:$4 sm:$0xff]   ;;  %vm369_vm4 = vmand %vm367_vm2, %vm368_vm3 }
  0x46   :  { %213 = vmatprep.subr.bf16.mxu0 %v4270_v1  ;;  %139 = vperm.xlu0 %3966, %v131_v10   ;;  %v3975_v20 = vld [vmem:[#allocation4 + $0x40] sm:$0xff]   ;;  %v3986_v23 = vld [vmem:[#allocation7] sm:$0xff]   ;;  %v4406_v32 = vld [vmem:[#allocation9 + $0x8] sm:$0xff]   ;;  %v4422_v46 = vsel %vm369_vm4, 1.0, %v4273_v45  ;;  %v4425_v54 = vsel %vm369_vm4, 0.0, %v4273_v45 }
  0x47   :  { %3551 = vmatpush3.bf16.msra.mxu1 %v3980_v11  ;;  %v4409_v34 = vld [vmem:[#allocation9] sm:$0xff]   ;;  %v4434_v62 = vld [vmem:[#allocation12 + $0x8] sm:$0xff]   ;;  %v4436_v63 = vld [vmem:[#allocation10 + $0x8] sm:$0xff]  }
  0x48   :  { %3552 = vmatprep.subr.bf16.mxu1 %v4271_v2  ;;  %v3333_v36 = vld [vmem:[%s5147_s5] ss:$0 sm:$0xff]  ;;  %s4274_s5 = smov 32   ;;  %v4442_v3 = vld [vmem:[#allocation10] sm:$0xff]  }
  0x49   :  { %214 = vmatpush1.bf16.msra.mxu0 %v3969_v5  ;;  %v4439_v0 = vld [vmem:[#allocation12] sm:$0xff]  }
  0x4a   :  { %215 = vmatprep.subr.bf16.mxu0 %v4270_v1 }
  0x4b   :  { %3553 = vmatpush3.bf16.msra.mxu1 %v3981_v14 }
  0x4c   :  { %3554 = vmatprep.subr.bf16.mxu1 %v4271_v2 }
  0x4d   :  { %216 = vmatpush1.bf16.msra.mxu0 %v3970_v6 }
  0x4e   :  { %217 = vmatprep.subr.bf16.mxu0 %v4270_v1 }
  0x4f   :  { %3555 = vmatpush3.bf16.msra.mxu1 %v3982_v15 }
  0x50   :  { %3556 = vmatprep.subr.bf16.mxu1 %v4271_v2 }
  0x51   :  { %218 = vmatpush1.bf16.msra.mxu0 %v3971_v12 }
  0x52   :  { %219 = vmatprep.subr.bf16.mxu0 %v4270_v1 }
  0x53   :  { %3557 = vmatpush3.bf16.msra.mxu1 %v3983_v17 }
  0x54   :  { %3558 = vmatprep.subr.bf16.mxu1 %v4271_v2 }
  0x55   :  { %220 = vmatpush1.bf16.msra.mxu0 %v3972_v13  ;;  %v4476_v13 = vld [vmem:[%s5150_s8] sm:$0x1] }
  0x56   :  { %221 = vmatprep.subr.bf16.mxu0 %v4270_v1 }
  0x57   :  { %3559 = vmatpush3.bf16.msra.mxu1 %v3984_v19 }
  0x58   :  { %3560 = vmatprep.subr.bf16.mxu1 %v4271_v2 }
  0x59   :  { %222 = vmatpush1.bf16.msra.mxu0 %v3973_v16 }
  0x5a   :  { %223 = vmatprep.subr.bf16.mxu0 %v4270_v1 }
  0x5b   :  { %3561 = vmatpush3.bf16.msra.mxu1 %v3985_v22 }
  0x5c   :  { %3562 = vmatprep.subr.bf16.mxu1 %v4271_v2 }
  0x5d   :  { %224 = vmatpush1.bf16.msra.mxu0 %v3974_v18 }
  0x5e   :  { %239 = vmatprep.subr.bf16.mxu0 %v4270_v1 }
  0x5f   :  { %3563 = vmatpush3.bf16.msra.mxu1 %v3986_v23 }
  0x60   :  { %3568 = vmatprep.subr.bf16.mxu1 %v4271_v2 }
  0x61   :  { %240 = vmatpush2.bf16.msra.mxu0 %v3975_v20 }
  0x62   :  { %3576 = vmatprep.subr.bf16.mxu0 %v4271_v2 }
  0x64   :  { %242 = vmatmul.mubr.bf16.vlgmr.msra.gmra.mxu0 %v3976_v21 }
  0x65   :  { %3580 = vmatprep.mubr.msk.bf16.mxu0 %vm4272_vm1, %v4271_v2  ;;  %3577 = vmatpush3.bf16.msra.mxu0 %v4434_v62 }
  0x66   :  { %3578 = vmatprep.subr.bf16.mxu0 %v4271_v2 }
  0x69   :  { %3579 = vmatpush3.bf16.msra.mxu0 %v4439_v0 }
  0x6a   :  { %3592 = vmatprep.subr.bf16.mxu0 %v4271_v2 }
  0x6c   :  { %3581 = vmatmul.mubr.bf16.vlgmr.msra.gmra.mxu0 %v4270_v1 }
  0x6d   :  { %3593 = vmatpush3.bf16.msra.mxu0 %v4406_v32  ;;  %3596 = vmatprep.mubr.msk.bf16.mxu0 %vm4272_vm1, %v4271_v2 }
  0x6e   :  { %3594 = vmatprep.subr.bf16.mxu0 %v4271_v2 }
  0x71   :  { %3595 = vmatpush3.bf16.msra.mxu0 %v4409_v34 }
  0x72   :  { %3608 = vmatprep.subr.bf16.mxu0 %v4271_v2 }
  0xbd   :  { %v135_v24 = vpop.permute.xlu0 %134 }
  0xc1   :  { %v140_v27 = vpop.permute.xlu0 %139 }
 0x124   :  { %v243_v25 = vpop.f32.mrf.mxu0 }
 0x125   :  { %v244_v29 = vadd.f32 %v243_v25, %v135_v24 }
 0x126   :  { %v245_v26 = vpop.f32.mrf.mxu0 }
 0x128   :  { %v246_v28 = vpop.f32.mrf.mxu0 }
 0x129   :  { %v247_v30 = vadd.f32 %v246_v28, %v140_v27 }
 0x12a   :  { %v248_v31 = vpop.f32.mrf.mxu0 }
 0x12b   :  { %v250_v33 = vpack.c.bf16 %v247_v30, %v244_v29 }
 0x12c   :  { %v510_v8 = vpop.f32.mrf.mxu0 }
 0x12d   :  { %3565 = vmatmul.mubr.bf16.vlgmr.msra.gmra.mxu1 %v250_v33 }
 0x12e   :  { %3569 = vmatpush3.bf16.msra.mxu1 %v4406_v32  ;;  %3572 = vmatprep.mubr.msk.bf16.mxu1 %vm4272_vm1, %v4271_v2  ;;  %v3582_v9 = vpop.f32.mrf.mxu0 }
 0x12f   :  { %3570 = vmatprep.subr.bf16.mxu1 %v4271_v2 }
 0x130   :  { %v513_v10 = vpop.f32.mrf.mxu0 }
 0x132   :  { %3571 = vmatpush3.bf16.msra.mxu1 %v4409_v34 }
 0x133   :  { %3584 = vmatprep.subr.bf16.mxu1 %v4271_v2 }
 0x135   :  { %3573 = vmatmul.mubr.bf16.vlgmr.msra.gmra.mxu1 %v4270_v1  ;;  %v3583_v1 = vpop.f32.mrf.mxu0 }
 0x136   :  { %3588 = vmatprep.mubr.msk.bf16.mxu1 %vm4272_vm1, %v4271_v2  ;;  %3585 = vmatpush3.bf16.msra.mxu1 %v4436_v63 }
 0x137   :  { %3586 = vmatprep.subr.bf16.mxu1 %v4271_v2 }
 0x13a   :  { %3587 = vmatpush3.bf16.msra.mxu1 %v4442_v3 }
 0x13b   :  { %3600 = vmatprep.subr.bf16.mxu1 %v4271_v2 }
 0x1ed   :  { %v356_v37 = vpop.f32.mrf.mxu1 }
 0x1ee   :  { %v357_v39 = vadd.f32 %v3333_v36, %v356_v37 }
 0x1ef   :  { %v3566_v40 = vpop.f32.mrf.mxu1 }
 0x1f0   :  { %363 = vst [vmem:[#allocation2] sm:$0xff] %v357_v39 }
 0x1f1   :  { %v359_v41 = vpop.f32.mrf.mxu1 }
 0x1f2   :  { %v360_v42 = vadd.f32 %v3333_v36, %v359_v41 }
 0x1f3   :  { %v3567_v43 = vpop.f32.mrf.mxu1 }
 0x1f4   :  { %364 = vst [vmem:[#allocation2 + $0x8] sm:$0xff] %v360_v42 }
 0x1f5   :  { %v427_v44 = vpop.f32.mrf.mxu1 }
 0x1f7   :  { %v372_v47 = vld [vmem:[#allocation2] sm:$0x1]  ;;  %v3574_v48 = vpop.f32.mrf.mxu1  ;;  %v597_v14 = vld [vmem:[#allocation2 + $0x1] sm:$0x1]  ;;  %v776_v10 = vld [vmem:[#allocation2 + $0x2] sm:$0x1] }
 0x1f8   :  { %v433_v49 = vadd.f32 %v427_v44, %v372_v47 }
 0x1f9   :  { %v430_v50 = vpop.f32.mrf.mxu1 }
 0x1fa   :  { %v434_v51 = vmul.f32 %v433_v49, %v4422_v46 }
 0x1fb   :  { %v3575_v52 = vpop.f32.mrf.mxu1 }
 0x1fc   :  { %3993 = vtanh.f32 %v434_v51 }
 0x209   :  { %v3994_v53 = vpop.eup %3993 }
 0x20a   :  { %v436_v55 = vmul.f32 %v3994_v53, %v4422_v46 }
 0x20c   :  { %v437_v56 = vadd.f32 %v436_v55, %v4425_v54 }
 0x20e   :  { %440 = vrot.lane.b32.xlu1 %v437_v56, %s4265_s24  ;;  %v438_v59 = vmul.f32 0.0, %v437_v56 }
 0x280   :  { %v441_v57 = vpop.permute.xlu1 %440 }
 0x281   :  { %v443_v58 = vmul.f32 %v441_v57, %v437_v56 }
 0x283   :  { %445 = vrot.lane.b32.xlu1 %v443_v58, %s4274_s5 }
 0x2f5   :  { %v446_v60 = vpop.permute.xlu1 %445 }
 0x2f6   :  { %v4431_v61 = vadd.f32 %v446_v60, %v438_v59 }
 0x2f8   :  { %3995 = vtanh.f32 %v4431_v61 }
 0x305   :  { %v3996_v4 = vpop.eup %3995 }
 0x306   :  { %451 = vrot.lane.b32.xlu0 %v3996_v4, %s4265_s24 }
 0x378   :  { %v452_v5 = vpop.permute.xlu0 %451 }
 0x379   :  { %v454_v6 = vmul.f32 %v452_v5, %v437_v56 }
 0x37b   :  { %v455_v7 = vpack.c.bf16 %v454_v6, %v454_v6 }
 0x37d   :  { %517 = vrot.lane.b32.xlu1 %v455_v7, %s4274_s5 }
 0x3ef   :  { %v518_v11 = vpop.permute.xlu1 %517 }
 0x3f0   :  { %3589 = vmatmul.mubr.msk.bf16.vlgmr.msra.gmra.mxu1 %vm389_vm5, %v518_v11  ;;  %3597 = vmatmul.mubr.msk.bf16.vlgmr.msra.gmra.mxu0 %vm389_vm5, %v518_v11 }
 0x3f1   :  { %3609 = vmatpush3.bf16.msra.mxu0 %v4436_v63  ;;  %3601 = vmatpush3.bf16.msra.mxu1 %v4434_v62 }
 0x3f2   :  { %3610 = vmatprep.subr.bf16.mxu0 %v4271_v2  ;;  %3602 = vmatprep.subr.bf16.mxu1 %v4271_v2 }
 0x3f3   :  { %3612 = vmatprep.mubr.msk.bf16.mxu0 %vm4272_vm1, %v4271_v2  ;;  %3604 = vmatprep.mubr.msk.bf16.mxu1 %vm4272_vm1, %v4271_v2 }
 0x3f5   :  { %3611 = vmatpush3.bf16.msra.mxu0 %v4442_v3  ;;  %3603 = vmatpush3.bf16.msra.mxu1 %v4439_v0 }
 0x3f6   :  { %3616 = vmatprep.subr.bf16.mxu1 %v4271_v2  ;;  %3624 = vmatprep.subr.bf16.mxu0 %v4271_v2 }
 0x4b0   :  { %v568_v12 = vpop.f32.mrf.mxu1  ;;  %v632_v15 = vpop.f32.mrf.mxu0 }
 0x4b1   :  { %v569_v16 = vadd.f32 %v568_v12, %v510_v8  ;;  %v638_v17 = vadd.f32 %v632_v15, %v597_v14 }
 0x4b2   :  { %v3590_v18 = vpop.f32.mrf.mxu1  ;;  %v3598_v19 = vpop.f32.mrf.mxu0 }
 0x4b3   :  { %v575_v20 = vadd.f32 %v4476_v13, %v569_v16  ;;  %v639_v21 = vmul.f32 %v638_v17, %v4422_v46 }
 0x4b4   :  { %v571_v22 = vpop.f32.mrf.mxu1  ;;  %v635_v23 = vpop.f32.mrf.mxu0 }
 0x4b5   :  { %v576_v24 = vmul.f32 %v575_v20, %v4422_v46  ;;  %3997 = vtanh.f32 %v639_v21 }
 0x4b6   :  { %v3591_v25 = vpop.f32.mrf.mxu1  ;;  %v3599_v26 = vpop.f32.mrf.mxu0 }
 0x4b7   :  { %3999 = vtanh.f32 %v576_v24 }
 0x4c2   :  { %v3998_v27 = vpop.eup %3997 }
 0x4c3   :  { %v641_v28 = vmul.f32 %v3998_v27, %v4422_v46 }
 0x4c4   :  { %v4000_v29 = vpop.eup %3999 }
 0x4c5   :  { %v642_v30 = vadd.f32 %v641_v28, %v4425_v54  ;;  %v578_v31 = vmul.f32 %v4000_v29, %v4422_v46 }
 0x4c7   :  { %645 = vrot.lane.b32.xlu1 %v642_v30, %s4265_s24  ;;  %v579_v33 = vadd.f32 %v578_v31, %v4425_v54  ;;  %v643_v39 = vmul.f32 %v642_v30, %v4431_v61 }
 0x4c9   :  { %582 = vrot.lane.b32.xlu0 %v579_v33, %s4265_s24  ;;  %v580_v42 = vmul.f32 0.0, %v579_v33 }
 0x539   :  { %v646_v35 = vpop.permute.xlu1 %645 }
 0x53a   :  { %v648_v36 = vmul.f32 %v646_v35, %v642_v30 }
 0x53b   :  { %v583_v37 = vpop.permute.xlu0 %582 }
 0x53c   :  { %v585_v38 = vmul.f32 %v583_v37, %v579_v33  ;;  %650 = vrot.lane.b32.xlu1 %v648_v36, %s4274_s5 }
 0x53e   :  { %587 = vrot.lane.b32.xlu0 %v585_v38, %s4274_s5 }
 0x5ae   :  { %v651_v40 = vpop.permute.xlu1 %650 }
 0x5af   :  { %v4490_v41 = vadd.f32 %v651_v40, %v643_v39 }
 0x5b0   :  { %v588_v43 = vpop.permute.xlu0 %587 }
 0x5b1   :  { %4001 = vtanh.f32 %v4490_v41  ;;  %v4493_v44 = vadd.f32 %v588_v43, %v580_v42 }
 0x5b3   :  { %4003 = vtanh.f32 %v4493_v44 }
 0x5be   :  { %v4002_v45 = vpop.eup %4001 }
 0x5bf   :  { %656 = vrot.lane.b32.xlu1 %v4002_v45, %s4265_s24 }
 0x5c0   :  { %v4004_v47 = vpop.eup %4003 }
 0x5c1   :  { %593 = vrot.lane.b32.xlu0 %v4004_v47, %s4265_s24 }
 0x631   :  { %v657_v48 = vpop.permute.xlu1 %656 }
 0x632   :  { %v659_v49 = vmul.f32 %v657_v48, %v642_v30 }
 0x633   :  { %v594_v50 = vpop.permute.xlu0 %593 }
 0x634   :  { %v660_v51 = vpack.c.bf16 %v659_v49, %v659_v49  ;;  %v596_v52 = vmul.f32 %v594_v50, %v579_v33 }
 0x636   :  { %v661_v53 = vpack.c.bf16 %v596_v52, %v596_v52  ;;  %709 = vrot.lane.b32.xlu1 %v660_v51, %s4274_s5 }
 0x638   :  { %663 = vrot.lane.b32.xlu0 %v661_v53, %s4274_s5  ;;  %v955_v53 = vld [vmem:[#allocation2 + $0x3] sm:$0x1] }
 0x6a8   :  { %v710_v55 = vpop.permute.xlu1 %709 }
 0x6a9   :  { %3613 = vmatmul.mubr.msk.bf16.vlgmr.msra.gmra.mxu0 %vm389_vm5, %v710_v55 }
 0x6aa   :  { %v664_v56 = vpop.permute.xlu0 %663  ;;  %3625 = vmatpush3.bf16.msra.mxu0 %v4434_v62  ;;  %3628 = vmatprep.mubr.msk.bf16.mxu0 %vm4272_vm1, %v4271_v2 }
 0x6ab   :  { %3605 = vmatmul.mubr.msk.bf16.vlgmr.msra.gmra.mxu1 %vm389_vm5, %v664_v56  ;;  %3626 = vmatprep.subr.bf16.mxu0 %v4271_v2 }
 0x6ac   :  { %3617 = vmatpush3.bf16.msra.mxu1 %v4406_v32  ;;  %3620 = vmatprep.mubr.msk.bf16.mxu1 %vm4272_vm1, %v4271_v2 }
 0x6ad   :  { %3618 = vmatprep.subr.bf16.mxu1 %v4271_v2 }
 0x6ae   :  { %3627 = vmatpush3.bf16.msra.mxu0 %v4439_v0 }
 0x6af   :  { %3640 = vmatprep.subr.bf16.mxu0 %v4271_v2 }
 0x6b0   :  { %3619 = vmatpush3.bf16.msra.mxu1 %v4409_v34 }
 0x6b1   :  { %3632 = vmatprep.subr.bf16.mxu1 %v4271_v2 }
 0x6b3   :  { %3621 = vmatmul.mubr.msk.bf16.vlgmr.msra.gmra.mxu1 %vm389_vm5, %v710_v55 }
 0x6b4   :  { %3633 = vmatpush3.bf16.msra.mxu1 %v4436_v63  ;;  %3636 = vmatprep.mubr.msk.bf16.mxu1 %vm4272_vm1, %v4271_v2 }
 0x6b5   :  { %3634 = vmatprep.subr.bf16.mxu1 %v4271_v2 }
 0x6b8   :  { %3635 = vmatpush3.bf16.msra.mxu1 %v4442_v3 }
 0x6b9   :  { %3648 = vmatprep.subr.bf16.mxu1 %v4271_v2 }
 0x769   :  { %v748_v57 = vpop.f32.mrf.mxu0 }
 0x76b   :  { %v702_v58 = vpop.f32.mrf.mxu1  ;;  %v3614_v59 = vpop.f32.mrf.mxu0 }
 0x76c   :  { %v749_v60 = vadd.f32 %v748_v57, %v702_v58 }
 0x76d   :  { %v3606_v61 = vpop.f32.mrf.mxu1  ;;  %v751_v4 = vpop.f32.mrf.mxu0 }
 0x76e   :  { %v754_v5 = vadd.f32 %v749_v60, %v4476_v13 }
 0x76f   :  { %v705_v6 = vpop.f32.mrf.mxu1  ;;  %v3615_v7 = vpop.f32.mrf.mxu0 }
 0x770   :  { %v755_v8 = vmul.f32 %v754_v5, %v4422_v46 }
 0x771   :  { %v3607_v9 = vpop.f32.mrf.mxu1 }
 0x772   :  { %4005 = vtanh.f32 %v755_v8 }
 0x773   :  { %v811_v1 = vpop.f32.mrf.mxu1 }
 0x774   :  { %v817_v11 = vadd.f32 %v811_v1, %v776_v10 }
 0x775   :  { %v3622_v12 = vpop.f32.mrf.mxu1 }
 0x776   :  { %v818_v14 = vmul.f32 %v817_v11, %v4422_v46 }
 0x777   :  { %v814_v15 = vpop.f32.mrf.mxu1 }
 0x778   :  { %4007 = vtanh.f32 %v818_v14 }
 0x779   :  { %v3623_v16 = vpop.f32.mrf.mxu1 }
 0x77f   :  { %v4006_v17 = vpop.eup %4005 }
 0x780   :  { %v757_v18 = vmul.f32 %v4006_v17, %v4422_v46 }
 0x782   :  { %v758_v19 = vadd.f32 %v757_v18, %v4425_v54 }
 0x784   :  { %761 = vrot.lane.b32.xlu0 %v758_v19, %s4265_s24  ;;  %v759_v27 = vmul.f32 %v758_v19, %v4493_v44 }
 0x785   :  { %v4008_v20 = vpop.eup %4007 }
 0x786   :  { %v820_v21 = vmul.f32 %v4008_v20, %v4422_v46 }
 0x788   :  { %v821_v22 = vadd.f32 %v820_v21, %v4425_v54 }
 0x78a   :  { %824 = vrot.lane.b32.xlu1 %v821_v22, %s4265_s24  ;;  %v822_v30 = vmul.f32 %v821_v22, %v4490_v41 }
 0x7f6   :  { %v762_v23 = vpop.permute.xlu0 %761 }
 0x7f7   :  { %v764_v24 = vmul.f32 %v762_v23, %v758_v19 }
 0x7f9   :  { %766 = vrot.lane.b32.xlu0 %v764_v24, %s4274_s5 }
 0x7fc   :  { %v825_v25 = vpop.permute.xlu1 %824 }
 0x7fd   :  { %v827_v26 = vmul.f32 %v825_v25, %v821_v22 }
 0x7ff   :  { %829 = vrot.lane.b32.xlu1 %v827_v26, %s4274_s5 }
 0x86b   :  { %v767_v28 = vpop.permute.xlu0 %766 }
 0x86c   :  { %v4533_v29 = vadd.f32 %v767_v28, %v759_v27 }
 0x86e   :  { %4009 = vtanh.f32 %v4533_v29 }
 0x871   :  { %v830_v31 = vpop.permute.xlu1 %829 }
 0x872   :  { %v4537_v33 = vadd.f32 %v830_v31, %v822_v30 }
 0x874   :  { %4011 = vtanh.f32 %v4537_v33 }
 0x87b   :  { %v4010_v35 = vpop.eup %4009 }
 0x87c   :  { %772 = vrot.lane.b32.xlu0 %v4010_v35, %s4265_s24 }
 0x881   :  { %v4012_v36 = vpop.eup %4011 }
 0x882   :  { %835 = vrot.lane.b32.xlu1 %v4012_v36, %s4265_s24 }
 0x8ee   :  { %v773_v37 = vpop.permute.xlu0 %772 }
 0x8ef   :  { %v775_v38 = vmul.f32 %v773_v37, %v758_v19 }
 0x8f1   :  { %v840_v39 = vpack.c.bf16 %v775_v38, %v775_v38 }
 0x8f3   :  { %842 = vrot.lane.b32.xlu0 %v840_v39, %s4274_s5 }
 0x8f4   :  { %v836_v40 = vpop.permute.xlu1 %835 }
 0x8f5   :  { %v838_v42 = vmul.f32 %v836_v40, %v821_v22 }
 0x8f7   :  { %v839_v43 = vpack.c.bf16 %v838_v42, %v838_v42 }
 0x8f9   :  { %888 = vrot.lane.b32.xlu1 %v839_v43, %s4274_s5 }
 0x965   :  { %v843_v41 = vpop.permute.xlu0 %842 }
 0x966   :  { %3629 = vmatmul.mubr.msk.bf16.vlgmr.msra.gmra.mxu0 %vm389_vm5, %v843_v41 }
 0x967   :  { %3641 = vmatpush3.bf16.msra.mxu0 %v4406_v32  ;;  %3644 = vmatprep.mubr.msk.bf16.mxu0 %vm4272_vm1, %v4271_v2 }
 0x968   :  { %3642 = vmatprep.subr.bf16.mxu0 %v4271_v2 }
 0x96b   :  { %3643 = vmatpush3.bf16.msra.mxu0 %v4409_v34  ;;  %v889_v44 = vpop.permute.xlu1 %888 }
 0x96c   :  { %3637 = vmatmul.mubr.msk.bf16.vlgmr.msra.gmra.mxu1 %vm389_vm5, %v889_v44  ;;  %3656 = vmatprep.subr.bf16.mxu0 %v4271_v2 }
 0x96d   :  { %3649 = vmatpush3.bf16.msra.mxu1 %v4434_v62  ;;  %3652 = vmatprep.mubr.msk.bf16.mxu1 %vm4272_vm1, %v4271_v2 }
 0x96e   :  { %3645 = vmatmul.mubr.msk.bf16.vlgmr.msra.gmra.mxu0 %vm389_vm5, %v889_v44  ;;  %3650 = vmatprep.subr.bf16.mxu1 %v4271_v2 }
 0x96f   :  { %3657 = vmatpush3.bf16.msra.mxu0 %v4436_v63  ;;  %3660 = vmatprep.mubr.msk.bf16.mxu0 %vm4272_vm1, %v4271_v2 }
 0x970   :  { %3658 = vmatprep.subr.bf16.mxu0 %v4271_v2 }
 0x971   :  { %3651 = vmatpush3.bf16.msra.mxu1 %v4439_v0 }
 0x972   :  { %3664 = vmatprep.subr.bf16.mxu1 %v4271_v2 }
 0x973   :  { %3659 = vmatpush3.bf16.msra.mxu0 %v4442_v3 }
 0x974   :  { %3672 = vmatprep.subr.bf16.mxu0 %v4271_v2 }
 0xa26   :  { %v881_v45 = vpop.f32.mrf.mxu0 }
 0xa28   :  { %v3630_v47 = vpop.f32.mrf.mxu0 }
 0xa29   :  { %v1134_v47 = vld [vmem:[#allocation2 + $0x4] sm:$0x1] }
 0xa2a   :  { %v884_v48 = vpop.f32.mrf.mxu0 }
 0xa2c   :  { %v3631_v49 = vpop.f32.mrf.mxu0  ;;  %v927_v50 = vpop.f32.mrf.mxu1 }
 0xa2d   :  { %v928_v51 = vadd.f32 %v927_v50, %v881_v45 }
 0xa2e   :  { %v3638_v52 = vpop.f32.mrf.mxu1  ;;  %v990_v55 = vpop.f32.mrf.mxu0 }
 0xa2f   :  { %v933_v56 = vadd.f32 %v928_v51, %v4476_v13  ;;  %v996_v57 = vadd.f32 %v990_v55, %v955_v53 }
 0xa30   :  { %v930_v58 = vpop.f32.mrf.mxu1  ;;  %v3646_v59 = vpop.f32.mrf.mxu0 }
 0xa31   :  { %v934_v60 = vmul.f32 %v933_v56, %v4422_v46  ;;  %v997_v61 = vmul.f32 %v996_v57, %v4422_v46 }
 0xa32   :  { %v3639_v4 = vpop.f32.mrf.mxu1  ;;  %v993_v5 = vpop.f32.mrf.mxu0 }
 0xa33   :  { %4013 = vtanh.f32 %v934_v60 }
 0xa34   :  { %4015 = vtanh.f32 %v997_v61  ;;  %v3647_v6 = vpop.f32.mrf.mxu0 }
 0xa40   :  { %v4014_v7 = vpop.eup %4013 }
 0xa41   :  { %v4016_v8 = vpop.eup %4015  ;;  %v936_v9 = vmul.f32 %v4014_v7, %v4422_v46 }
 0xa42   :  { %v999_v10 = vmul.f32 %v4016_v8, %v4422_v46 }
 0xa43   :  { %v937_v1 = vadd.f32 %v936_v9, %v4425_v54 }
 0xa44   :  { %v1000_v11 = vadd.f32 %v999_v10, %v4425_v54 }
 0xa45   :  { %940 = vrot.lane.b32.xlu0 %v937_v1, %s4265_s24  ;;  %v938_v17 = vmul.f32 %v937_v1, %v4533_v29 }
 0xa46   :  { %1003 = vrot.lane.b32.xlu1 %v1000_v11, %s4265_s24  ;;  %v1001_v18 = vmul.f32 %v1000_v11, %v4537_v33 }
 0xab7   :  { %v941_v12 = vpop.permute.xlu0 %940 }
 0xab8   :  { %v1004_v14 = vpop.permute.xlu1 %1003  ;;  %v943_v15 = vmul.f32 %v941_v12, %v937_v1 }
 0xab9   :  { %v1006_v16 = vmul.f32 %v1004_v14, %v1000_v11 }
 0xaba   :  { %945 = vrot.lane.b32.xlu0 %v943_v15, %s4274_s5 }
 0xabb   :  { %1008 = vrot.lane.b32.xlu1 %v1006_v16, %s4274_s5 }
 0xb2c   :  { %v946_v19 = vpop.permute.xlu0 %945 }
 0xb2d   :  { %v1009_v20 = vpop.permute.xlu1 %1008  ;;  %v4578_v21 = vadd.f32 %v946_v19, %v938_v17 }
 0xb2e   :  { %v4580_v22 = vadd.f32 %v1009_v20, %v1001_v18 }
 0xb2f   :  { %4017 = vtanh.f32 %v4578_v21 }
 0xb30   :  { %4019 = vtanh.f32 %v4580_v22 }
 0xb3c   :  { %v4018_v23 = vpop.eup %4017 }
 0xb3d   :  { %v4020_v24 = vpop.eup %4019  ;;  %951 = vrot.lane.b32.xlu0 %v4018_v23, %s4265_s24 }
 0xb3e   :  { %1014 = vrot.lane.b32.xlu1 %v4020_v24, %s4265_s24 }
 0xbaf   :  { %v952_v25 = vpop.permute.xlu0 %951 }
 0xbb0   :  { %v1015_v26 = vpop.permute.xlu1 %1014  ;;  %v954_v27 = vmul.f32 %v952_v25, %v937_v1 }
 0xbb1   :  { %v1017_v28 = vmul.f32 %v1015_v26, %v1000_v11 }
 0xbb2   :  { %v1019_v29 = vpack.c.bf16 %v954_v27, %v954_v27 }
 0xbb3   :  { %v1018_v30 = vpack.c.bf16 %v1017_v28, %v1017_v28 }
 0xbb4   :  { %1021 = vrot.lane.b32.xlu0 %v1019_v29, %s4274_s5 }
 0xbb5   :  { %1067 = vrot.lane.b32.xlu1 %v1018_v30, %s4274_s5 }
 0xc26   :  { %v1022_v31 = vpop.permute.xlu0 %1021 }
 0xc27   :  { %v1068_v33 = vpop.permute.xlu1 %1067  ;;  %3653 = vmatmul.mubr.msk.bf16.vlgmr.msra.gmra.mxu1 %vm389_vm5, %v1022_v31  ;;  %v1313_v31 = vld [vmem:[#allocation2 + $0x5] sm:$0x1] }
 0xc28   :  { %3661 = vmatmul.mubr.msk.bf16.vlgmr.msra.gmra.mxu0 %vm389_vm5, %v1068_v33  ;;  %3665 = vmatpush3.bf16.msra.mxu1 %v4406_v32 }
 0xc29   :  { %3666 = vmatprep.subr.bf16.mxu1 %v4271_v2  ;;  %3668 = vmatprep.mubr.msk.bf16.mxu1 %vm4272_vm1, %v4271_v2 }
 0xc2a   :  { %3673 = vmatpush3.bf16.msra.mxu0 %v4434_v62  ;;  %3676 = vmatprep.mubr.msk.bf16.mxu0 %vm4272_vm1, %v4271_v2 }
 0xc2b   :  { %3674 = vmatprep.subr.bf16.mxu0 %v4271_v2 }
 0xc2c   :  { %3667 = vmatpush3.bf16.msra.mxu1 %v4409_v34 }
 0xc2d   :  { %3680 = vmatprep.subr.bf16.mxu1 %v4271_v2 }
 0xc2e   :  { %3675 = vmatpush3.bf16.msra.mxu0 %v4439_v0 }
 0xc2f   :  { %3669 = vmatmul.mubr.msk.bf16.vlgmr.msra.gmra.mxu1 %vm389_vm5, %v1068_v33  ;;  %3688 = vmatprep.subr.bf16.mxu0 %v4271_v2 }
 0xc30   :  { %3681 = vmatpush3.bf16.msra.mxu1 %v4436_v63  ;;  %3684 = vmatprep.mubr.msk.bf16.mxu1 %vm4272_vm1, %v4271_v2 }
 0xc31   :  { %3682 = vmatprep.subr.bf16.mxu1 %v4271_v2 }
 0xc34   :  { %3683 = vmatpush3.bf16.msra.mxu1 %v4442_v3 }
 0xc35   :  { %3696 = vmatprep.subr.bf16.mxu1 %v4271_v2 }
 0xce7   :  { %v1060_v35 = vpop.f32.mrf.mxu1 }
 0xce8   :  { %v1106_v36 = vpop.f32.mrf.mxu0 }
 0xce9   :  { %v1107_v37 = vadd.f32 %v1106_v36, %v1060_v35  ;;  %v3654_v38 = vpop.f32.mrf.mxu1 }
 0xcea   :  { %v3662_v39 = vpop.f32.mrf.mxu0 }
 0xceb   :  { %v1112_v40 = vadd.f32 %v1107_v37, %v4476_v13  ;;  %v1063_v42 = vpop.f32.mrf.mxu1 }
 0xcec   :  { %v1109_v43 = vpop.f32.mrf.mxu0 }
 0xced   :  { %v1113_v41 = vmul.f32 %v1112_v40, %v4422_v46  ;;  %v3655_v44 = vpop.f32.mrf.mxu1 }
 0xcee   :  { %v3663_v45 = vpop.f32.mrf.mxu0 }
 0xcef   :  { %4021 = vtanh.f32 %v1113_v41  ;;  %v1169_v48 = vpop.f32.mrf.mxu1 }
 0xcf0   :  { %v1175_v49 = vadd.f32 %v1169_v48, %v1134_v47 }
 0xcf1   :  { %v3670_v50 = vpop.f32.mrf.mxu1 }
 0xcf2   :  { %v1176_v51 = vmul.f32 %v1175_v49, %v4422_v46 }
 0xcf3   :  { %v1172_v52 = vpop.f32.mrf.mxu1 }
 0xcf4   :  { %4023 = vtanh.f32 %v1176_v51 }
 0xcf5   :  { %v3671_v53 = vpop.f32.mrf.mxu1 }
 0xcfc   :  { %v4022_v55 = vpop.eup %4021 }
 0xcfd   :  { %v1115_v56 = vmul.f32 %v4022_v55, %v4422_v46 }
 0xcff   :  { %v1116_v57 = vadd.f32 %v1115_v56, %v4425_v54 }
 0xd01   :  { %v4024_v58 = vpop.eup %4023  ;;  %1119 = vrot.lane.b32.xlu0 %v1116_v57, %s4265_s24  ;;  %v1117_v7 = vmul.f32 %v1116_v57, %v4578_v21 }
 0xd02   :  { %v1178_v59 = vmul.f32 %v4024_v58, %v4422_v46 }
 0xd04   :  { %v1179_v60 = vadd.f32 %v1178_v59, %v4425_v54 }
 0xd06   :  { %1182 = vrot.lane.b32.xlu1 %v1179_v60, %s4265_s24  ;;  %v1180_v10 = vmul.f32 %v1179_v60, %v4580_v22 }
 0xd73   :  { %v1120_v61 = vpop.permute.xlu0 %1119 }
 0xd74   :  { %v1122_v4 = vmul.f32 %v1120_v61, %v1116_v57 }
 0xd76   :  { %1124 = vrot.lane.b32.xlu0 %v1122_v4, %s4274_s5 }
 0xd78   :  { %v1183_v5 = vpop.permute.xlu1 %1182 }
 0xd79   :  { %v1185_v6 = vmul.f32 %v1183_v5, %v1179_v60 }
 0xd7b   :  { %1187 = vrot.lane.b32.xlu1 %v1185_v6, %s4274_s5 }
 0xde8   :  { %v1125_v8 = vpop.permute.xlu0 %1124 }
 0xde9   :  { %v4621_v9 = vadd.f32 %v1125_v8, %v1117_v7 }
 0xdeb   :  { %4025 = vtanh.f32 %v4621_v9 }
 0xded   :  { %v1188_v1 = vpop.permute.xlu1 %1187 }
 0xdee   :  { %v4625_v11 = vadd.f32 %v1188_v1, %v1180_v10 }
 0xdf0   :  { %4027 = vtanh.f32 %v4625_v11 }
 0xdf8   :  { %v4026_v12 = vpop.eup %4025 }
 0xdf9   :  { %1130 = vrot.lane.b32.xlu0 %v4026_v12, %s4265_s24 }
 0xdfd   :  { %v4028_v14 = vpop.eup %4027 }
 0xdfe   :  { %1193 = vrot.lane.b32.xlu1 %v4028_v14, %s4265_s24 }
 0xe6b   :  { %v1131_v15 = vpop.permute.xlu0 %1130 }
 0xe6c   :  { %v1133_v16 = vmul.f32 %v1131_v15, %v1116_v57 }
 0xe6e   :  { %v1198_v17 = vpack.c.bf16 %v1133_v16, %v1133_v16 }
 0xe70   :  { %1200 = vrot.lane.b32.xlu0 %v1198_v17, %s4274_s5  ;;  %v1194_v18 = vpop.permute.xlu1 %1193 }
 0xe71   :  { %v1196_v19 = vmul.f32 %v1194_v18, %v1179_v60 }
 0xe73   :  { %v1197_v20 = vpack.c.bf16 %v1196_v19, %v1196_v19 }
 0xe75   :  { %1246 = vrot.lane.b32.xlu1 %v1197_v20, %s4274_s5 }
 0xee2   :  { %v1201_v21 = vpop.permute.xlu0 %1200 }
 0xee3   :  { %3677 = vmatmul.mubr.msk.bf16.vlgmr.msra.gmra.mxu0 %vm389_vm5, %v1201_v21 }
 0xee4   :  { %3689 = vmatpush3.bf16.msra.mxu0 %v4406_v32  ;;  %3692 = vmatprep.mubr.msk.bf16.mxu0 %vm4272_vm1, %v4271_v2 }
 0xee5   :  { %3690 = vmatprep.subr.bf16.mxu0 %v4271_v2 }
 0xee7   :  { %v1247_v22 = vpop.permute.xlu1 %1246 }
 0xee8   :  { %3691 = vmatpush3.bf16.msra.mxu0 %v4409_v34  ;;  %3685 = vmatmul.mubr.msk.bf16.vlgmr.msra.gmra.mxu1 %vm389_vm5, %v1247_v22 }
 0xee9   :  { %3704 = vmatprep.subr.bf16.mxu0 %v4271_v2  ;;  %3697 = vmatpush3.bf16.msra.mxu1 %v4434_v62 }
 0xeea   :  { %3698 = vmatprep.subr.bf16.mxu1 %v4271_v2  ;;  %3700 = vmatprep.mubr.msk.bf16.mxu1 %vm4272_vm1, %v4271_v2 }
 0xeeb   :  { %3693 = vmatmul.mubr.msk.bf16.vlgmr.msra.gmra.mxu0 %vm389_vm5, %v1247_v22  ;;  %v1492_v22 = vld [vmem:[#allocation2 + $0x6] sm:$0x1] }
 0xeec   :  { %3705 = vmatpush3.bf16.msra.mxu0 %v4436_v63  ;;  %3708 = vmatprep.mubr.msk.bf16.mxu0 %vm4272_vm1, %v4271_v2 }
 0xeed   :  { %3706 = vmatprep.subr.bf16.mxu0 %v4271_v2  ;;  %3699 = vmatpush3.bf16.msra.mxu1 %v4439_v0 }
 0xeee   :  { %3712 = vmatprep.subr.bf16.mxu1 %v4271_v2 }
 0xef0   :  { %3707 = vmatpush3.bf16.msra.mxu0 %v4442_v3 }
 0xef1   :  { %3720 = vmatprep.subr.bf16.mxu0 %v4271_v2 }
 0xfa3   :  { %v1239_v23 = vpop.f32.mrf.mxu0 }
 0xfa5   :  { %v3678_v24 = vpop.f32.mrf.mxu0 }
 0xfa7   :  { %v1242_v25 = vpop.f32.mrf.mxu0 }
 0xfa8   :  { %v1285_v26 = vpop.f32.mrf.mxu1 }
 0xfa9   :  { %v3679_v27 = vpop.f32.mrf.mxu0  ;;  %v1286_v28 = vadd.f32 %v1285_v26, %v1239_v23 }
 0xfaa   :  { %v3686_v29 = vpop.f32.mrf.mxu1 }
 0xfab   :  { %v1291_v30 = vadd.f32 %v1286_v28, %v4476_v13  ;;  %v1348_v33 = vpop.f32.mrf.mxu0 }
 0xfac   :  { %v1354_v35 = vadd.f32 %v1348_v33, %v1313_v31  ;;  %v1288_v36 = vpop.f32.mrf.mxu1 }
 0xfad   :  { %v1292_v37 = vmul.f32 %v1291_v30, %v4422_v46  ;;  %v3694_v38 = vpop.f32.mrf.mxu0 }
 0xfae   :  { %v1355_v39 = vmul.f32 %v1354_v35, %v4422_v46  ;;  %v3687_v40 = vpop.f32.mrf.mxu1 }
 0xfaf   :  { %4029 = vtanh.f32 %v1292_v37  ;;  %v1351_v42 = vpop.f32.mrf.mxu0 }
 0xfb0   :  { %4031 = vtanh.f32 %v1355_v39 }
 0xfb1   :  { %v3695_v43 = vpop.f32.mrf.mxu0 }
 0xfbc   :  { %v4030_v41 = vpop.eup %4029 }
 0xfbd   :  { %v4032_v44 = vpop.eup %4031  ;;  %v1294_v45 = vmul.f32 %v4030_v41, %v4422_v46 }
 0xfbe   :  { %v1357_v47 = vmul.f32 %v4032_v44, %v4422_v46 }
 0xfbf   :  { %v1295_v48 = vadd.f32 %v1294_v45, %v4425_v54 }
 0xfc0   :  { %v1358_v49 = vadd.f32 %v1357_v47, %v4425_v54 }
 0xfc1   :  { %1298 = vrot.lane.b32.xlu0 %v1295_v48, %s4265_s24  ;;  %v1296_v55 = vmul.f32 %v1295_v48, %v4621_v9 }
 0xfc2   :  { %1361 = vrot.lane.b32.xlu1 %v1358_v49, %s4265_s24  ;;  %v1359_v56 = vmul.f32 %v1358_v49, %v4625_v11 }
0x1033   :  { %v1299_v50 = vpop.permute.xlu0 %1298 }
0x1034   :  { %v1362_v51 = vpop.permute.xlu1 %1361  ;;  %v1301_v52 = vmul.f32 %v1299_v50, %v1295_v48 }
0x1035   :  { %v1364_v53 = vmul.f32 %v1362_v51, %v1358_v49 }
0x1036   :  { %1303 = vrot.lane.b32.xlu0 %v1301_v52, %s4274_s5 }
0x1037   :  { %1366 = vrot.lane.b32.xlu1 %v1364_v53, %s4274_s5 }
0x10a8   :  { %v1304_v57 = vpop.permute.xlu0 %1303 }
0x10a9   :  { %v1367_v58 = vpop.permute.xlu1 %1366  ;;  %v4666_v59 = vadd.f32 %v1304_v57, %v1296_v55 }
0x10aa   :  { %v4668_v60 = vadd.f32 %v1367_v58, %v1359_v56  ;;  %v4721_v58 = vld [vmem:[#allocation9 + $0x8] sm:$0xff]  }
0x10ab   :  { %4033 = vtanh.f32 %v4666_v59 }
0x10ac   :  { %4035 = vtanh.f32 %v4668_v60 }
0x10b8   :  { %v4034_v61 = vpop.eup %4033 }
0x10b9   :  { %v4036_v4 = vpop.eup %4035  ;;  %1309 = vrot.lane.b32.xlu0 %v4034_v61, %s4265_s24 }
0x10ba   :  { %1372 = vrot.lane.b32.xlu1 %v4036_v4, %s4265_s24 }
0x112b   :  { %v1310_v5 = vpop.permute.xlu0 %1309 }
0x112c   :  { %v1373_v6 = vpop.permute.xlu1 %1372  ;;  %v1312_v7 = vmul.f32 %v1310_v5, %v1295_v48 }
0x112d   :  { %v1375_v8 = vmul.f32 %v1373_v6, %v1358_v49 }
0x112e   :  { %v1377_v9 = vpack.c.bf16 %v1312_v7, %v1312_v7 }
0x112f   :  { %v1376_v10 = vpack.c.bf16 %v1375_v8, %v1375_v8 }
0x1130   :  { %1379 = vrot.lane.b32.xlu0 %v1377_v9, %s4274_s5  ;;  %v1671_v9 = vld [vmem:[#allocation2 + $0x7] sm:$0x1] }
0x1131   :  { %1425 = vrot.lane.b32.xlu1 %v1376_v10, %s4274_s5 }
0x11a2   :  { %v1380_v1 = vpop.permute.xlu0 %1379 }
0x11a3   :  { %v1426_v11 = vpop.permute.xlu1 %1425  ;;  %3701 = vmatmul.mubr.msk.bf16.vlgmr.msra.gmra.mxu1 %vm389_vm5, %v1380_v1 }
0x11a4   :  { %3709 = vmatmul.mubr.msk.bf16.vlgmr.msra.gmra.mxu0 %vm389_vm5, %v1426_v11  ;;  %3713 = vmatpush3.bf16.msra.mxu1 %v4406_v32 }
0x11a5   :  { %3714 = vmatprep.subr.bf16.mxu1 %v4271_v2  ;;  %3716 = vmatprep.mubr.msk.bf16.mxu1 %vm4272_vm1, %v4271_v2 }
0x11a6   :  { %3721 = vmatpush3.bf16.msra.mxu0 %v4434_v62  ;;  %3724 = vmatprep.mubr.msk.bf16.mxu0 %vm4272_vm1, %v4271_v2 }
0x11a7   :  { %3722 = vmatprep.subr.bf16.mxu0 %v4271_v2 }
0x11a8   :  { %3715 = vmatpush3.bf16.msra.mxu1 %v4409_v34 }
0x11a9   :  { %3728 = vmatprep.subr.bf16.mxu1 %v4271_v2 }
0x11aa   :  { %3723 = vmatpush3.bf16.msra.mxu0 %v4439_v0 }
0x11ab   :  { %3717 = vmatmul.mubr.msk.bf16.vlgmr.msra.gmra.mxu1 %vm389_vm5, %v1426_v11  ;;  %3736 = vmatprep.subr.bf16.mxu0 %v4271_v2 }
0x11ac   :  { %3729 = vmatpush3.bf16.msra.mxu1 %v4436_v63  ;;  %3732 = vmatprep.mubr.msk.bf16.mxu1 %vm4272_vm1, %v4271_v2 }
0x11ad   :  { %3730 = vmatprep.subr.bf16.mxu1 %v4271_v2 }
0x11b0   :  { %3731 = vmatpush3.bf16.msra.mxu1 %v4442_v3 }
0x11b1   :  { %3744 = vmatprep.subr.bf16.mxu1 %v4271_v2 }
0x1263   :  { %v1418_v32 = vpop.f32.mrf.mxu1 }
0x1264   :  { %v1464_v34 = vpop.f32.mrf.mxu0 }
0x1265   :  { %v1465_v12 = vadd.f32 %v1464_v34, %v1418_v32  ;;  %v3702_v14 = vpop.f32.mrf.mxu1 }
0x1266   :  { %v3710_v15 = vpop.f32.mrf.mxu0 }
0x1267   :  { %v1470_v16 = vadd.f32 %v1465_v12, %v4476_v13  ;;  %v1421_v17 = vpop.f32.mrf.mxu1 }
0x1268   :  { %v1467_v18 = vpop.f32.mrf.mxu0 }
0x1269   :  { %v1471_v19 = vmul.f32 %v1470_v16, %v4422_v46  ;;  %v3703_v20 = vpop.f32.mrf.mxu1 }
0x126a   :  { %v3711_v21 = vpop.f32.mrf.mxu0 }
0x126b   :  { %4037 = vtanh.f32 %v1471_v19  ;;  %v1527_v23 = vpop.f32.mrf.mxu1 }
0x126c   :  { %v1533_v24 = vadd.f32 %v1527_v23, %v1492_v22 }
0x126d   :  { %v3718_v25 = vpop.f32.mrf.mxu1 }
0x126e   :  { %v1534_v26 = vmul.f32 %v1533_v24, %v4422_v46 }
0x126f   :  { %v1530_v27 = vpop.f32.mrf.mxu1 }
0x1270   :  { %4039 = vtanh.f32 %v1534_v26 }
0x1271   :  { %v3719_v28 = vpop.f32.mrf.mxu1 }
0x1278   :  { %v4038_v29 = vpop.eup %4037 }
0x1279   :  { %v1473_v30 = vmul.f32 %v4038_v29, %v4422_v46 }
0x127b   :  { %v1474_v31 = vadd.f32 %v1473_v30, %v4425_v54 }
0x127d   :  { %v4040_v33 = vpop.eup %4039  ;;  %1477 = vrot.lane.b32.xlu0 %v1474_v31, %s4265_s24  ;;  %v1475_v42 = vmul.f32 %v1474_v31, %v4666_v59 }
0x127e   :  { %v1536_v35 = vmul.f32 %v4040_v33, %v4422_v46 }
0x1280   :  { %v1537_v36 = vadd.f32 %v1536_v35, %v4425_v54 }
0x1282   :  { %1540 = vrot.lane.b32.xlu1 %v1537_v36, %s4265_s24  ;;  %v1538_v44 = vmul.f32 %v1537_v36, %v4668_v60  ;;  %v4727_v60 = vld [vmem:[#allocation9] sm:$0xff]  }
0x12ef   :  { %v1478_v37 = vpop.permute.xlu0 %1477 }
0x12f0   :  { %v1480_v38 = vmul.f32 %v1478_v37, %v1474_v31 }
0x12f2   :  { %1482 = vrot.lane.b32.xlu0 %v1480_v38, %s4274_s5 }
0x12f4   :  { %v1541_v39 = vpop.permute.xlu1 %1540 }
0x12f5   :  { %v1543_v40 = vmul.f32 %v1541_v39, %v1537_v36 }
0x12f7   :  { %1545 = vrot.lane.b32.xlu1 %v1543_v40, %s4274_s5 }
0x1364   :  { %v1483_v43 = vpop.permute.xlu0 %1482 }
0x1365   :  { %v4709_v41 = vadd.f32 %v1483_v43, %v1475_v42  ;;  %v4774_v43 = vld [vmem:[#allocation12 + $0x8] sm:$0xff]  }
0x1367   :  { %4041 = vtanh.f32 %v4709_v41 }
0x1369   :  { %v1546_v45 = vpop.permute.xlu1 %1545 }
0x136a   :  { %v4713_v47 = vadd.f32 %v1546_v45, %v1538_v44  ;;  %v4787_v44 = vld [vmem:[#allocation10 + $0x8] sm:$0xff]   ;;  %v4793_v45 = vld [vmem:[#allocation10] sm:$0xff]  }
0x136c   :  { %4043 = vtanh.f32 %v4713_v47 }
0x1374   :  { %v4042_v48 = vpop.eup %4041 }
0x1375   :  { %1488 = vrot.lane.b32.xlu0 %v4042_v48, %s4265_s24 }
0x1379   :  { %v4044_v49 = vpop.eup %4043 }
0x137a   :  { %1551 = vrot.lane.b32.xlu1 %v4044_v49, %s4265_s24 }
0x13e7   :  { %v1489_v50 = vpop.permute.xlu0 %1488 }
0x13e8   :  { %v1491_v51 = vmul.f32 %v1489_v50, %v1474_v31 }
0x13ea   :  { %v1556_v52 = vpack.c.bf16 %v1491_v51, %v1491_v51 }
0x13ec   :  { %1558 = vrot.lane.b32.xlu0 %v1556_v52, %s4274_s5  ;;  %v1552_v53 = vpop.permute.xlu1 %1551  ;;  %v4800_v52 = vld [vmem:[%s5150_s8] sm:$0x1] }
0x13ed   :  { %v1554_v55 = vmul.f32 %v1552_v53, %v1537_v36 }
0x13ef   :  { %v1555_v56 = vpack.c.bf16 %v1554_v55, %v1554_v55 }
0x13f1   :  { %1604 = vrot.lane.b32.xlu1 %v1555_v56, %s4274_s5 }
0x145e   :  { %v1559_v57 = vpop.permute.xlu0 %1558 }
0x145f   :  { %3725 = vmatmul.mubr.msk.bf16.vlgmr.msra.gmra.mxu0 %vm389_vm5, %v1559_v57 }
0x1460   :  { %3737 = vmatpush3.bf16.msra.mxu0 %v4721_v58  ;;  %3740 = vmatprep.mubr.msk.bf16.mxu0 %vm4272_vm1, %v4271_v2 }
0x1461   :  { %3738 = vmatprep.subr.bf16.mxu0 %v4271_v2 }
0x1463   :  { %v1605_v59 = vpop.permute.xlu1 %1604 }
0x1464   :  { %3739 = vmatpush3.bf16.msra.mxu0 %v4727_v60  ;;  %3733 = vmatmul.mubr.msk.bf16.vlgmr.msra.gmra.mxu1 %vm389_vm5, %v1605_v59 }
0x1465   :  { %3752 = vmatprep.subr.bf16.mxu0 %v4271_v2  ;;  %3745 = vmatpush3.bf16.msra.mxu1 %v4434_v62 }
0x1466   :  { %3746 = vmatprep.subr.bf16.mxu1 %v4271_v2  ;;  %3748 = vmatprep.mubr.msk.bf16.mxu1 %vm4272_vm1, %v4271_v2 }
0x1467   :  { %3741 = vmatmul.mubr.msk.bf16.vlgmr.msra.gmra.mxu0 %vm389_vm5, %v1605_v59 }
0x1468   :  { %3753 = vmatpush3.bf16.msra.mxu0 %v4436_v63  ;;  %3756 = vmatprep.mubr.msk.bf16.mxu0 %vm4272_vm1, %v4271_v2 }
0x1469   :  { %3754 = vmatprep.subr.bf16.mxu0 %v4271_v2  ;;  %3747 = vmatpush3.bf16.msra.mxu1 %v4439_v0 }
0x146a   :  { %3760 = vmatprep.subr.bf16.mxu1 %v4271_v2 }
0x146c   :  { %3755 = vmatpush3.bf16.msra.mxu0 %v4442_v3 }
0x146d   :  { %3768 = vmatprep.subr.bf16.mxu0 %v4271_v2 }
0x151f   :  { %v1597_v62 = vpop.f32.mrf.mxu0 }
0x1521   :  { %v3726_v61 = vpop.f32.mrf.mxu0 }
0x1522   :  { %v1850_v61 = vld [vmem:[#allocation2 + $0x8] sm:$0x1] }
0x1523   :  { %v1600_v4 = vpop.f32.mrf.mxu0 }
0x1524   :  { %v1643_v5 = vpop.f32.mrf.mxu1 }
0x1525   :  { %v3727_v6 = vpop.f32.mrf.mxu0  ;;  %v1644_v7 = vadd.f32 %v1643_v5, %v1597_v62 }
0x1526   :  { %v3734_v63 = vpop.f32.mrf.mxu1 }
0x1527   :  { %v1649_v8 = vadd.f32 %v1644_v7, %v4476_v13  ;;  %v1706_v10 = vpop.f32.mrf.mxu0 }
0x1528   :  { %v1712_v1 = vadd.f32 %v1706_v10, %v1671_v9  ;;  %v1646_v11 = vpop.f32.mrf.mxu1 }
0x1529   :  { %v1650_v0 = vmul.f32 %v1649_v8, %v4422_v46  ;;  %v3742_v32 = vpop.f32.mrf.mxu0 }
0x152a   :  { %v1713_v3 = vmul.f32 %v1712_v1, %v4422_v46  ;;  %v3735_v34 = vpop.f32.mrf.mxu1 }
0x152b   :  { %4045 = vtanh.f32 %v1650_v0  ;;  %v1709_v12 = vpop.f32.mrf.mxu0 }
0x152c   :  { %4047 = vtanh.f32 %v1713_v3 }
0x152d   :  { %v3743_v14 = vpop.f32.mrf.mxu0 }
0x1538   :  { %v4046_v15 = vpop.eup %4045 }
0x1539   :  { %v4048_v16 = vpop.eup %4047  ;;  %v1652_v17 = vmul.f32 %v4046_v15, %v4422_v46 }
0x153a   :  { %v1715_v13 = vmul.f32 %v4048_v16, %v4422_v46 }
0x153b   :  { %v1653_v18 = vadd.f32 %v1652_v17, %v4425_v54 }
0x153c   :  { %v1716_v19 = vadd.f32 %v1715_v13, %v4425_v54 }
0x153d   :  { %1656 = vrot.lane.b32.xlu0 %v1653_v18, %s4265_s24  ;;  %v1654_v24 = vmul.f32 %v1653_v18, %v4709_v41  ;;  %v4782_v41 = vld [vmem:[#allocation12] sm:$0xff]  }
0x153e   :  { %1719 = vrot.lane.b32.xlu1 %v1716_v19, %s4265_s24  ;;  %v1717_v25 = vmul.f32 %v1716_v19, %v4713_v47 }
0x15af   :  { %v1657_v20 = vpop.permute.xlu0 %1656 }
0x15b0   :  { %v1720_v21 = vpop.permute.xlu1 %1719  ;;  %v1659_v22 = vmul.f32 %v1657_v20, %v1653_v18 }
0x15b1   :  { %v1722_v23 = vmul.f32 %v1720_v21, %v1716_v19 }
0x15b2   :  { %1661 = vrot.lane.b32.xlu0 %v1659_v22, %s4274_s5 }
0x15b3   :  { %1724 = vrot.lane.b32.xlu1 %v1722_v23, %s4274_s5 }
0x1624   :  { %v1662_v26 = vpop.permute.xlu0 %1661 }
0x1625   :  { %v1725_v27 = vpop.permute.xlu1 %1724  ;;  %v4758_v28 = vadd.f32 %v1662_v26, %v1654_v24 }
0x1626   :  { %v4760_v29 = vadd.f32 %v1725_v27, %v1717_v25 }
0x1627   :  { %4049 = vtanh.f32 %v4758_v28 }
0x1628   :  { %4051 = vtanh.f32 %v4760_v29 }
0x1634   :  { %v4050_v30 = vpop.eup %4049 }
0x1635   :  { %v4052_v31 = vpop.eup %4051  ;;  %1667 = vrot.lane.b32.xlu0 %v4050_v30, %s4265_s24 }
0x1636   :  { %1730 = vrot.lane.b32.xlu1 %v4052_v31, %s4265_s24 }
0x16a7   :  { %v1668_v33 = vpop.permute.xlu0 %1667 }
0x16a8   :  { %v1731_v35 = vpop.permute.xlu1 %1730  ;;  %v1670_v36 = vmul.f32 %v1668_v33, %v1653_v18 }
0x16a9   :  { %v1733_v37 = vmul.f32 %v1731_v35, %v1716_v19 }
0x16aa   :  { %v1735_v38 = vpack.c.bf16 %v1670_v36, %v1670_v36 }
0x16ab   :  { %v1734_v39 = vpack.c.bf16 %v1733_v37, %v1733_v37 }
0x16ac   :  { %1737 = vrot.lane.b32.xlu0 %v1735_v38, %s4274_s5 }
0x16ad   :  { %1783 = vrot.lane.b32.xlu1 %v1734_v39, %s4274_s5 }
0x171e   :  { %v1738_v40 = vpop.permute.xlu0 %1737 }
0x171f   :  { %v1784_v42 = vpop.permute.xlu1 %1783  ;;  %3749 = vmatmul.mubr.msk.bf16.vlgmr.msra.gmra.mxu1 %vm389_vm5, %v1738_v40  ;;  %v2029_v40 = vld [vmem:[#allocation2 + $0x9] sm:$0x1] }
0x1720   :  { %3757 = vmatmul.mubr.msk.bf16.vlgmr.msra.gmra.mxu0 %vm389_vm5, %v1784_v42  ;;  %3761 = vmatpush3.bf16.msra.mxu1 %v4721_v58 }
0x1721   :  { %3762 = vmatprep.subr.bf16.mxu1 %v4271_v2  ;;  %3764 = vmatprep.mubr.msk.bf16.mxu1 %vm4272_vm1, %v4271_v2 }
0x1722   :  { %3769 = vmatpush3.bf16.msra.mxu0 %v4774_v43  ;;  %3772 = vmatprep.mubr.msk.bf16.mxu0 %vm4272_vm1, %v4271_v2 }
0x1723   :  { %3770 = vmatprep.subr.bf16.mxu0 %v4271_v2 }
0x1724   :  { %3763 = vmatpush3.bf16.msra.mxu1 %v4727_v60 }
0x1725   :  { %3776 = vmatprep.subr.bf16.mxu1 %v4271_v2 }
0x1726   :  { %3771 = vmatpush3.bf16.msra.mxu0 %v4782_v41 }
0x1727   :  { %3765 = vmatmul.mubr.msk.bf16.vlgmr.msra.gmra.mxu1 %vm389_vm5, %v1784_v42  ;;  %3784 = vmatprep.subr.bf16.mxu0 %v4271_v2 }
0x1728   :  { %3777 = vmatpush3.bf16.msra.mxu1 %v4787_v44  ;;  %3780 = vmatprep.mubr.msk.bf16.mxu1 %vm4272_vm1, %v4271_v2 }
0x1729   :  { %3778 = vmatprep.subr.bf16.mxu1 %v4271_v2 }
0x172c   :  { %3779 = vmatpush3.bf16.msra.mxu1 %v4793_v45 }
0x172d   :  { %3792 = vmatprep.subr.bf16.mxu1 %v4271_v2 }
0x17df   :  { %v1776_v47 = vpop.f32.mrf.mxu1 }
0x17e0   :  { %v1822_v48 = vpop.f32.mrf.mxu0 }
0x17e1   :  { %v1823_v49 = vadd.f32 %v1822_v48, %v1776_v47  ;;  %v3750_v50 = vpop.f32.mrf.mxu1 }
0x17e2   :  { %v3758_v51 = vpop.f32.mrf.mxu0 }
0x17e3   :  { %v1828_v53 = vadd.f32 %v4800_v52, %v1823_v49  ;;  %v1779_v55 = vpop.f32.mrf.mxu1 }
0x17e4   :  { %v1825_v56 = vpop.f32.mrf.mxu0 }
0x17e5   :  { %v1829_v57 = vmul.f32 %v1828_v53, %v4422_v46  ;;  %v3751_v59 = vpop.f32.mrf.mxu1 }
0x17e6   :  { %v3759_v62 = vpop.f32.mrf.mxu0 }
0x17e7   :  { %4053 = vtanh.f32 %v1829_v57  ;;  %v1885_v4 = vpop.f32.mrf.mxu1 }
0x17e8   :  { %v1891_v5 = vadd.f32 %v1885_v4, %v1850_v61 }
0x17e9   :  { %v3766_v6 = vpop.f32.mrf.mxu1 }
0x17ea   :  { %v1892_v7 = vmul.f32 %v1891_v5, %v4422_v46 }
0x17eb   :  { %v1888_v63 = vpop.f32.mrf.mxu1 }
0x17ec   :  { %4055 = vtanh.f32 %v1892_v7 }
0x17ed   :  { %v3767_v8 = vpop.f32.mrf.mxu1 }
0x17f4   :  { %v4054_v9 = vpop.eup %4053 }
0x17f5   :  { %v1831_v10 = vmul.f32 %v4054_v9, %v4422_v46 }
0x17f7   :  { %v1832_v1 = vadd.f32 %v1831_v10, %v4425_v54 }
0x17f9   :  { %v4056_v11 = vpop.eup %4055  ;;  %1835 = vrot.lane.b32.xlu0 %v1832_v1, %s4265_s24  ;;  %v1833_v15 = vmul.f32 %v1832_v1, %v4758_v28 }
0x17fa   :  { %v1894_v0 = vmul.f32 %v4056_v11, %v4422_v46 }
0x17fc   :  { %v1895_v32 = vadd.f32 %v1894_v0, %v4425_v54 }
0x17fe   :  { %1898 = vrot.lane.b32.xlu1 %v1895_v32, %s4265_s24  ;;  %v1896_v13 = vmul.f32 %v1895_v32, %v4760_v29 }
0x186b   :  { %v1836_v3 = vpop.permute.xlu0 %1835 }
0x186c   :  { %v1838_v34 = vmul.f32 %v1836_v3, %v1832_v1 }
0x186e   :  { %1840 = vrot.lane.b32.xlu0 %v1838_v34, %s4274_s5 }
0x1870   :  { %v1899_v12 = vpop.permute.xlu1 %1898 }
0x1871   :  { %v1901_v14 = vmul.f32 %v1899_v12, %v1895_v32 }
0x1873   :  { %1903 = vrot.lane.b32.xlu1 %v1901_v14, %s4274_s5 }
0x18e0   :  { %v1841_v16 = vpop.permute.xlu0 %1840 }
0x18e1   :  { %v4814_v17 = vadd.f32 %v1841_v16, %v1833_v15 }
0x18e3   :  { %4057 = vtanh.f32 %v4814_v17 }
0x18e5   :  { %v1904_v18 = vpop.permute.xlu1 %1903 }
0x18e6   :  { %v4818_v19 = vadd.f32 %v1904_v18, %v1896_v13 }
0x18e8   :  { %4059 = vtanh.f32 %v4818_v19 }
0x18f0   :  { %v4058_v20 = vpop.eup %4057 }
0x18f1   :  { %1846 = vrot.lane.b32.xlu0 %v4058_v20, %s4265_s24 }
0x18f5   :  { %v4060_v21 = vpop.eup %4059 }
0x18f6   :  { %1909 = vrot.lane.b32.xlu1 %v4060_v21, %s4265_s24 }
0x1963   :  { %v1847_v22 = vpop.permute.xlu0 %1846 }
0x1964   :  { %v1849_v23 = vmul.f32 %v1847_v22, %v1832_v1 }
0x1966   :  { %v1914_v24 = vpack.c.bf16 %v1849_v23, %v1849_v23 }
0x1968   :  { %1916 = vrot.lane.b32.xlu0 %v1914_v24, %s4274_s5  ;;  %v1910_v25 = vpop.permute.xlu1 %1909 }
0x1969   :  { %v1912_v26 = vmul.f32 %v1910_v25, %v1895_v32 }
0x196b   :  { %v1913_v27 = vpack.c.bf16 %v1912_v26, %v1912_v26 }
0x196d   :  { %1962 = vrot.lane.b32.xlu1 %v1913_v27, %s4274_s5 }
0x19da   :  { %v1917_v28 = vpop.permute.xlu0 %1916 }
0x19db   :  { %3773 = vmatmul.mubr.msk.bf16.vlgmr.msra.gmra.mxu0 %vm389_vm5, %v1917_v28 }
0x19dc   :  { %3785 = vmatpush3.bf16.msra.mxu0 %v4721_v58  ;;  %3788 = vmatprep.mubr.msk.bf16.mxu0 %vm4272_vm1, %v4271_v2 }
0x19dd   :  { %3786 = vmatprep.subr.bf16.mxu0 %v4271_v2 }
0x19df   :  { %v1963_v29 = vpop.permute.xlu1 %1962 }
0x19e0   :  { %3787 = vmatpush3.bf16.msra.mxu0 %v4727_v60  ;;  %3781 = vmatmul.mubr.msk.bf16.vlgmr.msra.gmra.mxu1 %vm389_vm5, %v1963_v29 }
0x19e1   :  { %3800 = vmatprep.subr.bf16.mxu0 %v4271_v2  ;;  %3793 = vmatpush3.bf16.msra.mxu1 %v4774_v43 }
0x19e2   :  { %3794 = vmatprep.subr.bf16.mxu1 %v4271_v2  ;;  %3796 = vmatprep.mubr.msk.bf16.mxu1 %vm4272_vm1, %v4271_v2 }
0x19e3   :  { %3789 = vmatmul.mubr.msk.bf16.vlgmr.msra.gmra.mxu0 %vm389_vm5, %v1963_v29 }
0x19e4   :  { %3801 = vmatpush3.bf16.msra.mxu0 %v4787_v44  ;;  %3804 = vmatprep.mubr.msk.bf16.mxu0 %vm4272_vm1, %v4271_v2 }
0x19e5   :  { %3802 = vmatprep.subr.bf16.mxu0 %v4271_v2  ;;  %3795 = vmatpush3.bf16.msra.mxu1 %v4782_v41 }
0x19e6   :  { %3808 = vmatprep.subr.bf16.mxu1 %v4271_v2 }
0x19e8   :  { %3803 = vmatpush3.bf16.msra.mxu0 %v4793_v45 }
0x19e9   :  { %3816 = vmatprep.subr.bf16.mxu0 %v4271_v2 }
0x1a9b   :  { %v1955_v30 = vpop.f32.mrf.mxu0 }
0x1a9d   :  { %v3774_v31 = vpop.f32.mrf.mxu0 }
0x1a9e   :  { %v2208_v31 = vld [vmem:[#allocation2 + $0xa] sm:$0x1] }
0x1a9f   :  { %v1958_v33 = vpop.f32.mrf.mxu0 }
0x1aa0   :  { %v2001_v35 = vpop.f32.mrf.mxu1 }
0x1aa1   :  { %v3775_v36 = vpop.f32.mrf.mxu0  ;;  %v2002_v37 = vadd.f32 %v2001_v35, %v1955_v30 }
0x1aa2   :  { %v3782_v38 = vpop.f32.mrf.mxu1 }
0x1aa3   :  { %v2007_v39 = vadd.f32 %v4800_v52, %v2002_v37  ;;  %v2064_v42 = vpop.f32.mrf.mxu0 }
0x1aa4   :  { %v2070_v47 = vadd.f32 %v2064_v42, %v2029_v40  ;;  %v2004_v48 = vpop.f32.mrf.mxu1 }
0x1aa5   :  { %v2008_v49 = vmul.f32 %v2007_v39, %v4422_v46  ;;  %v3790_v50 = vpop.f32.mrf.mxu0 }
0x1aa6   :  { %v2071_v51 = vmul.f32 %v2070_v47, %v4422_v46  ;;  %v3783_v53 = vpop.f32.mrf.mxu1 }
0x1aa7   :  { %4061 = vtanh.f32 %v2008_v49  ;;  %v2067_v55 = vpop.f32.mrf.mxu0 }
0x1aa8   :  { %4063 = vtanh.f32 %v2071_v51 }
0x1aa9   :  { %v3791_v56 = vpop.f32.mrf.mxu0 }
0x1ab4   :  { %v4062_v57 = vpop.eup %4061 }
0x1ab5   :  { %v4064_v59 = vpop.eup %4063  ;;  %v2010_v62 = vmul.f32 %v4062_v57, %v4422_v46 }
0x1ab6   :  { %v2073_v61 = vmul.f32 %v4064_v59, %v4422_v46 }
0x1ab7   :  { %v2011_v4 = vadd.f32 %v2010_v62, %v4425_v54 }
0x1ab8   :  { %v2074_v5 = vadd.f32 %v2073_v61, %v4425_v54 }
0x1ab9   :  { %2014 = vrot.lane.b32.xlu0 %v2011_v4, %s4265_s24  ;;  %v2012_v9 = vmul.f32 %v2011_v4, %v4814_v17 }
0x1aba   :  { %2077 = vrot.lane.b32.xlu1 %v2074_v5, %s4265_s24  ;;  %v2075_v10 = vmul.f32 %v2074_v5, %v4818_v19 }
0x1b2b   :  { %v2015_v6 = vpop.permute.xlu0 %2014 }
0x1b2c   :  { %v2078_v7 = vpop.permute.xlu1 %2077  ;;  %v2017_v63 = vmul.f32 %v2015_v6, %v2011_v4 }
0x1b2d   :  { %v2080_v8 = vmul.f32 %v2078_v7, %v2074_v5 }
0x1b2e   :  { %2019 = vrot.lane.b32.xlu0 %v2017_v63, %s4274_s5 }
0x1b2f   :  { %2082 = vrot.lane.b32.xlu1 %v2080_v8, %s4274_s5 }
0x1ba0   :  { %v2020_v1 = vpop.permute.xlu0 %2019 }
0x1ba1   :  { %v2083_v11 = vpop.permute.xlu1 %2082  ;;  %v4859_v0 = vadd.f32 %v2020_v1, %v2012_v9 }
0x1ba2   :  { %v4861_v32 = vadd.f32 %v2083_v11, %v2075_v10 }
0x1ba3   :  { %4065 = vtanh.f32 %v4859_v0 }
0x1ba4   :  { %4067 = vtanh.f32 %v4861_v32 }
0x1bb0   :  { %v4066_v3 = vpop.eup %4065 }
0x1bb1   :  { %v4068_v34 = vpop.eup %4067  ;;  %2025 = vrot.lane.b32.xlu0 %v4066_v3, %s4265_s24 }
0x1bb2   :  { %2088 = vrot.lane.b32.xlu1 %v4068_v34, %s4265_s24 }
0x1c23   :  { %v2026_v12 = vpop.permute.xlu0 %2025 }
0x1c24   :  { %v2089_v14 = vpop.permute.xlu1 %2088  ;;  %v2028_v15 = vmul.f32 %v2026_v12, %v2011_v4 }
0x1c25   :  { %v2091_v16 = vmul.f32 %v2089_v14, %v2074_v5 }
0x1c26   :  { %v2093_v17 = vpack.c.bf16 %v2028_v15, %v2028_v15 }
0x1c27   :  { %v2092_v13 = vpack.c.bf16 %v2091_v16, %v2091_v16 }
0x1c28   :  { %2095 = vrot.lane.b32.xlu0 %v2093_v17, %s4274_s5 }
0x1c29   :  { %2141 = vrot.lane.b32.xlu1 %v2092_v13, %s4274_s5 }
0x1c9a   :  { %v2096_v18 = vpop.permute.xlu0 %2095 }
0x1c9b   :  { %v2142_v19 = vpop.permute.xlu1 %2141  ;;  %3797 = vmatmul.mubr.msk.bf16.vlgmr.msra.gmra.mxu1 %vm389_vm5, %v2096_v18  ;;  %v2387_v18 = vld [vmem:[#allocation2 + $0xb] sm:$0x1] }
0x1c9c   :  { %3805 = vmatmul.mubr.msk.bf16.vlgmr.msra.gmra.mxu0 %vm389_vm5, %v2142_v19  ;;  %3809 = vmatpush3.bf16.msra.mxu1 %v4721_v58 }
0x1c9d   :  { %3810 = vmatprep.subr.bf16.mxu1 %v4271_v2  ;;  %3812 = vmatprep.mubr.msk.bf16.mxu1 %vm4272_vm1, %v4271_v2 }
0x1c9e   :  { %3817 = vmatpush3.bf16.msra.mxu0 %v4774_v43  ;;  %3820 = vmatprep.mubr.msk.bf16.mxu0 %vm4272_vm1, %v4271_v2 }
0x1c9f   :  { %3818 = vmatprep.subr.bf16.mxu0 %v4271_v2 }
0x1ca0   :  { %3811 = vmatpush3.bf16.msra.mxu1 %v4727_v60 }
0x1ca1   :  { %3824 = vmatprep.subr.bf16.mxu1 %v4271_v2 }
0x1ca2   :  { %3819 = vmatpush3.bf16.msra.mxu0 %v4782_v41 }
0x1ca3   :  { %3813 = vmatmul.mubr.msk.bf16.vlgmr.msra.gmra.mxu1 %vm389_vm5, %v2142_v19  ;;  %3832 = vmatprep.subr.bf16.mxu0 %v4271_v2 }
0x1ca4   :  { %3825 = vmatpush3.bf16.msra.mxu1 %v4787_v44  ;;  %3828 = vmatprep.mubr.msk.bf16.mxu1 %vm4272_vm1, %v4271_v2 }
0x1ca5   :  { %3826 = vmatprep.subr.bf16.mxu1 %v4271_v2 }
0x1ca8   :  { %3827 = vmatpush3.bf16.msra.mxu1 %v4793_v45 }
0x1ca9   :  { %3840 = vmatprep.subr.bf16.mxu1 %v4271_v2 }
0x1d5b   :  { %v2134_v20 = vpop.f32.mrf.mxu1 }
0x1d5c   :  { %v2180_v21 = vpop.f32.mrf.mxu0 }
0x1d5d   :  { %v2181_v22 = vadd.f32 %v2180_v21, %v2134_v20  ;;  %v3798_v23 = vpop.f32.mrf.mxu1 }
0x1d5e   :  { %v3806_v24 = vpop.f32.mrf.mxu0 }
0x1d5f   :  { %v2186_v25 = vadd.f32 %v4800_v52, %v2181_v22  ;;  %v2137_v26 = vpop.f32.mrf.mxu1 }
0x1d60   :  { %v2183_v27 = vpop.f32.mrf.mxu0 }
0x1d61   :  { %v2187_v28 = vmul.f32 %v2186_v25, %v4422_v46  ;;  %v3799_v29 = vpop.f32.mrf.mxu1 }
0x1d62   :  { %v3807_v30 = vpop.f32.mrf.mxu0 }
0x1d63   :  { %4069 = vtanh.f32 %v2187_v28  ;;  %v2243_v33 = vpop.f32.mrf.mxu1 }
0x1d64   :  { %v2249_v35 = vadd.f32 %v2243_v33, %v2208_v31 }
0x1d65   :  { %v3814_v36 = vpop.f32.mrf.mxu1 }
0x1d66   :  { %v2250_v37 = vmul.f32 %v2249_v35, %v4422_v46 }
0x1d67   :  { %v2246_v38 = vpop.f32.mrf.mxu1 }
0x1d68   :  { %4071 = vtanh.f32 %v2250_v37 }
0x1d69   :  { %v3815_v39 = vpop.f32.mrf.mxu1 }
0x1d70   :  { %v4070_v40 = vpop.eup %4069 }
0x1d71   :  { %v2189_v42 = vmul.f32 %v4070_v40, %v4422_v46 }
0x1d73   :  { %v2190_v47 = vadd.f32 %v2189_v42, %v4425_v54 }
0x1d75   :  { %v4072_v48 = vpop.eup %4071  ;;  %2193 = vrot.lane.b32.xlu0 %v2190_v47, %s4265_s24  ;;  %v2191_v57 = vmul.f32 %v2190_v47, %v4859_v0 }
0x1d76   :  { %v2252_v49 = vmul.f32 %v4072_v48, %v4422_v46 }
0x1d78   :  { %v2253_v50 = vadd.f32 %v2252_v49, %v4425_v54 }
0x1d7a   :  { %2256 = vrot.lane.b32.xlu1 %v2253_v50, %s4265_s24  ;;  %v2254_v61 = vmul.f32 %v2253_v50, %v4861_v32 }
0x1de7   :  { %v2194_v51 = vpop.permute.xlu0 %2193 }
0x1de8   :  { %v2196_v53 = vmul.f32 %v2194_v51, %v2190_v47 }
0x1dea   :  { %2198 = vrot.lane.b32.xlu0 %v2196_v53, %s4274_s5 }
0x1dec   :  { %v2257_v55 = vpop.permute.xlu1 %2256 }
0x1ded   :  { %v2259_v56 = vmul.f32 %v2257_v55, %v2253_v50 }
0x1def   :  { %2261 = vrot.lane.b32.xlu1 %v2259_v56, %s4274_s5 }
0x1e5c   :  { %v2199_v59 = vpop.permute.xlu0 %2198 }
0x1e5d   :  { %v4902_v62 = vadd.f32 %v2199_v59, %v2191_v57 }
0x1e5f   :  { %4073 = vtanh.f32 %v4902_v62 }
0x1e61   :  { %v2262_v4 = vpop.permute.xlu1 %2261 }
0x1e62   :  { %v4906_v5 = vadd.f32 %v2262_v4, %v2254_v61 }
0x1e64   :  { %4075 = vtanh.f32 %v4906_v5 }
0x1e6c   :  { %v4074_v6 = vpop.eup %4073 }
0x1e6d   :  { %2204 = vrot.lane.b32.xlu0 %v4074_v6, %s4265_s24 }
0x1e71   :  { %v4076_v7 = vpop.eup %4075 }
0x1e72   :  { %2267 = vrot.lane.b32.xlu1 %v4076_v7, %s4265_s24 }
0x1edf   :  { %v2205_v63 = vpop.permute.xlu0 %2204 }
0x1ee0   :  { %v2207_v8 = vmul.f32 %v2205_v63, %v2190_v47 }
0x1ee2   :  { %v2272_v9 = vpack.c.bf16 %v2207_v8, %v2207_v8 }
0x1ee4   :  { %2274 = vrot.lane.b32.xlu0 %v2272_v9, %s4274_s5  ;;  %v2268_v10 = vpop.permute.xlu1 %2267 }
0x1ee5   :  { %v2270_v1 = vmul.f32 %v2268_v10, %v2253_v50 }
0x1ee7   :  { %v2271_v11 = vpack.c.bf16 %v2270_v1, %v2270_v1 }
0x1ee9   :  { %2320 = vrot.lane.b32.xlu1 %v2271_v11, %s4274_s5 }
0x1f56   :  { %v2275_v0 = vpop.permute.xlu0 %2274 }
0x1f57   :  { %3821 = vmatmul.mubr.msk.bf16.vlgmr.msra.gmra.mxu0 %vm389_vm5, %v2275_v0 }
0x1f58   :  { %3833 = vmatpush3.bf16.msra.mxu0 %v4721_v58  ;;  %3836 = vmatprep.mubr.msk.bf16.mxu0 %vm4272_vm1, %v4271_v2 }
0x1f59   :  { %3834 = vmatprep.subr.bf16.mxu0 %v4271_v2 }
0x1f5b   :  { %v2321_v32 = vpop.permute.xlu1 %2320 }
0x1f5c   :  { %3835 = vmatpush3.bf16.msra.mxu0 %v4727_v60  ;;  %3829 = vmatmul.mubr.msk.bf16.vlgmr.msra.gmra.mxu1 %vm389_vm5, %v2321_v32 }
0x1f5d   :  { %3848 = vmatprep.subr.bf16.mxu0 %v4271_v2  ;;  %3841 = vmatpush3.bf16.msra.mxu1 %v4774_v43 }
0x1f5e   :  { %3842 = vmatprep.subr.bf16.mxu1 %v4271_v2  ;;  %3844 = vmatprep.mubr.msk.bf16.mxu1 %vm4272_vm1, %v4271_v2 }
0x1f5f   :  { %3837 = vmatmul.mubr.msk.bf16.vlgmr.msra.gmra.mxu0 %vm389_vm5, %v2321_v32 }
0x1f60   :  { %3849 = vmatpush3.bf16.msra.mxu0 %v4787_v44  ;;  %3852 = vmatprep.mubr.msk.bf16.mxu0 %vm4272_vm1, %v4271_v2 }
0x1f61   :  { %3850 = vmatprep.subr.bf16.mxu0 %v4271_v2  ;;  %3843 = vmatpush3.bf16.msra.mxu1 %v4782_v41 }
0x1f62   :  { %3856 = vmatprep.subr.bf16.mxu1 %v4271_v2 }
0x1f64   :  { %3851 = vmatpush3.bf16.msra.mxu0 %v4793_v45 }
0x1f65   :  { %3864 = vmatprep.subr.bf16.mxu0 %v4271_v2 }
0x2017   :  { %v2313_v3 = vpop.f32.mrf.mxu0 }
0x2019   :  { %v3822_v34 = vpop.f32.mrf.mxu0 }
0x201a   :  { %v2566_v34 = vld [vmem:[#allocation2 + $0xc] sm:$0x1] }
0x201b   :  { %v2316_v12 = vpop.f32.mrf.mxu0 }
0x201c   :  { %v2359_v14 = vpop.f32.mrf.mxu1 }
0x201d   :  { %v3823_v15 = vpop.f32.mrf.mxu0  ;;  %v2360_v16 = vadd.f32 %v2359_v14, %v2313_v3 }
0x201e   :  { %v3830_v17 = vpop.f32.mrf.mxu1 }
0x201f   :  { %v2365_v13 = vadd.f32 %v4800_v52, %v2360_v16  ;;  %v2422_v19 = vpop.f32.mrf.mxu0 }
0x2020   :  { %v2428_v20 = vadd.f32 %v2422_v19, %v2387_v18  ;;  %v2362_v21 = vpop.f32.mrf.mxu1 }
0x2021   :  { %v2366_v22 = vmul.f32 %v2365_v13, %v4422_v46  ;;  %v3838_v23 = vpop.f32.mrf.mxu0 }
0x2022   :  { %v2429_v24 = vmul.f32 %v2428_v20, %v4422_v46  ;;  %v3831_v25 = vpop.f32.mrf.mxu1 }
0x2023   :  { %4077 = vtanh.f32 %v2366_v22  ;;  %v2425_v26 = vpop.f32.mrf.mxu0 }
0x2024   :  { %4079 = vtanh.f32 %v2429_v24 }
0x2025   :  { %v3839_v27 = vpop.f32.mrf.mxu0 }
0x2030   :  { %v4078_v28 = vpop.eup %4077 }
0x2031   :  { %v4080_v29 = vpop.eup %4079  ;;  %v2368_v30 = vmul.f32 %v4078_v28, %v4422_v46 }
0x2032   :  { %v2431_v31 = vmul.f32 %v4080_v29, %v4422_v46 }
0x2033   :  { %v2369_v33 = vadd.f32 %v2368_v30, %v4425_v54 }
0x2034   :  { %v2432_v35 = vadd.f32 %v2431_v31, %v4425_v54 }
0x2035   :  { %2372 = vrot.lane.b32.xlu0 %v2369_v33, %s4265_s24  ;;  %v2370_v40 = vmul.f32 %v2369_v33, %v4902_v62 }
0x2036   :  { %2435 = vrot.lane.b32.xlu1 %v2432_v35, %s4265_s24  ;;  %v2433_v42 = vmul.f32 %v2432_v35, %v4906_v5 }
0x20a7   :  { %v2373_v36 = vpop.permute.xlu0 %2372 }
0x20a8   :  { %v2436_v37 = vpop.permute.xlu1 %2435  ;;  %v2375_v38 = vmul.f32 %v2373_v36, %v2369_v33 }
0x20a9   :  { %v2438_v39 = vmul.f32 %v2436_v37, %v2432_v35 }
0x20aa   :  { %2377 = vrot.lane.b32.xlu0 %v2375_v38, %s4274_s5 }
0x20ab   :  { %2440 = vrot.lane.b32.xlu1 %v2438_v39, %s4274_s5 }
0x211c   :  { %v2378_v47 = vpop.permute.xlu0 %2377 }
0x211d   :  { %v2441_v48 = vpop.permute.xlu1 %2440  ;;  %v4947_v49 = vadd.f32 %v2378_v47, %v2370_v40 }
0x211e   :  { %v4949_v50 = vadd.f32 %v2441_v48, %v2433_v42 }
0x211f   :  { %4081 = vtanh.f32 %v4947_v49 }
0x2120   :  { %4083 = vtanh.f32 %v4949_v50 }
0x212c   :  { %v4082_v51 = vpop.eup %4081 }
0x212d   :  { %v4084_v53 = vpop.eup %4083  ;;  %2383 = vrot.lane.b32.xlu0 %v4082_v51, %s4265_s24 }
0x212e   :  { %2446 = vrot.lane.b32.xlu1 %v4084_v53, %s4265_s24 }
0x219f   :  { %v2384_v55 = vpop.permute.xlu0 %2383 }
0x21a0   :  { %v2447_v56 = vpop.permute.xlu1 %2446  ;;  %v2386_v57 = vmul.f32 %v2384_v55, %v2369_v33 }
0x21a1   :  { %v2449_v59 = vmul.f32 %v2447_v56, %v2432_v35 }
0x21a2   :  { %v2451_v62 = vpack.c.bf16 %v2386_v57, %v2386_v57 }
0x21a3   :  { %v2450_v61 = vpack.c.bf16 %v2449_v59, %v2449_v59 }
0x21a4   :  { %2453 = vrot.lane.b32.xlu0 %v2451_v62, %s4274_s5  ;;  %v2745_v62 = vld [vmem:[#allocation2 + $0xd] sm:$0x1] }
0x21a5   :  { %2499 = vrot.lane.b32.xlu1 %v2450_v61, %s4274_s5 }
0x2216   :  { %v2454_v4 = vpop.permute.xlu0 %2453 }
0x2217   :  { %v2500_v5 = vpop.permute.xlu1 %2499  ;;  %3845 = vmatmul.mubr.msk.bf16.vlgmr.msra.gmra.mxu1 %vm389_vm5, %v2454_v4 }
0x2218   :  { %3853 = vmatmul.mubr.msk.bf16.vlgmr.msra.gmra.mxu0 %vm389_vm5, %v2500_v5  ;;  %3857 = vmatpush3.bf16.msra.mxu1 %v4721_v58 }
0x2219   :  { %3858 = vmatprep.subr.bf16.mxu1 %v4271_v2  ;;  %3860 = vmatprep.mubr.msk.bf16.mxu1 %vm4272_vm1, %v4271_v2 }
0x221a   :  { %3865 = vmatpush3.bf16.msra.mxu0 %v4774_v43  ;;  %3868 = vmatprep.mubr.msk.bf16.mxu0 %vm4272_vm1, %v4271_v2 }
0x221b   :  { %3866 = vmatprep.subr.bf16.mxu0 %v4271_v2 }
0x221c   :  { %3859 = vmatpush3.bf16.msra.mxu1 %v4727_v60 }
0x221d   :  { %3872 = vmatprep.subr.bf16.mxu1 %v4271_v2 }
0x221e   :  { %3867 = vmatpush3.bf16.msra.mxu0 %v4782_v41 }
0x221f   :  { %3861 = vmatmul.mubr.msk.bf16.vlgmr.msra.gmra.mxu1 %vm389_vm5, %v2500_v5  ;;  %3880 = vmatprep.subr.bf16.mxu0 %v4271_v2 }
0x2220   :  { %3873 = vmatpush3.bf16.msra.mxu1 %v4787_v44  ;;  %3876 = vmatprep.mubr.msk.bf16.mxu1 %vm4272_vm1, %v4271_v2 }
0x2221   :  { %3874 = vmatprep.subr.bf16.mxu1 %v4271_v2 }
0x2224   :  { %3875 = vmatpush3.bf16.msra.mxu1 %v4793_v45 }
0x2225   :  { %3888 = vmatprep.subr.bf16.mxu1 %v4271_v2 }
0x22d7   :  { %v2492_v6 = vpop.f32.mrf.mxu1 }
0x22d8   :  { %v2538_v7 = vpop.f32.mrf.mxu0 }
0x22d9   :  { %v2539_v63 = vadd.f32 %v2538_v7, %v2492_v6  ;;  %v3846_v8 = vpop.f32.mrf.mxu1 }
0x22da   :  { %v3854_v9 = vpop.f32.mrf.mxu0 }
0x22db   :  { %v2544_v10 = vadd.f32 %v4800_v52, %v2539_v63  ;;  %v2495_v1 = vpop.f32.mrf.mxu1 }
0x22dc   :  { %v2541_v11 = vpop.f32.mrf.mxu0 }
0x22dd   :  { %v2545_v0 = vmul.f32 %v2544_v10, %v4422_v46  ;;  %v3847_v32 = vpop.f32.mrf.mxu1 }
0x22de   :  { %v3855_v3 = vpop.f32.mrf.mxu0 }
0x22df   :  { %4085 = vtanh.f32 %v2545_v0  ;;  %v2601_v12 = vpop.f32.mrf.mxu1 }
0x22e0   :  { %v2607_v14 = vadd.f32 %v2601_v12, %v2566_v34 }
0x22e1   :  { %v3862_v15 = vpop.f32.mrf.mxu1 }
0x22e2   :  { %v2608_v16 = vmul.f32 %v2607_v14, %v4422_v46 }
0x22e3   :  { %v2604_v17 = vpop.f32.mrf.mxu1 }
0x22e4   :  { %4087 = vtanh.f32 %v2608_v16 }
0x22e5   :  { %v3863_v13 = vpop.f32.mrf.mxu1 }
0x22ec   :  { %v4086_v18 = vpop.eup %4085 }
0x22ed   :  { %v2547_v19 = vmul.f32 %v4086_v18, %v4422_v46 }
0x22ef   :  { %v2548_v20 = vadd.f32 %v2547_v19, %v4425_v54 }
0x22f1   :  { %v4088_v21 = vpop.eup %4087  ;;  %2551 = vrot.lane.b32.xlu0 %v2548_v20, %s4265_s24  ;;  %v2549_v28 = vmul.f32 %v2548_v20, %v4947_v49 }
0x22f2   :  { %v2610_v22 = vmul.f32 %v4088_v21, %v4422_v46 }
0x22f4   :  { %v2611_v23 = vadd.f32 %v2610_v22, %v4425_v54 }
0x22f6   :  { %2614 = vrot.lane.b32.xlu1 %v2611_v23, %s4265_s24  ;;  %v2612_v31 = vmul.f32 %v2611_v23, %v4949_v50 }
0x2363   :  { %v2552_v24 = vpop.permute.xlu0 %2551 }
0x2364   :  { %v2554_v25 = vmul.f32 %v2552_v24, %v2548_v20 }
0x2366   :  { %2556 = vrot.lane.b32.xlu0 %v2554_v25, %s4274_s5 }
0x2368   :  { %v2615_v26 = vpop.permute.xlu1 %2614 }
0x2369   :  { %v2617_v27 = vmul.f32 %v2615_v26, %v2611_v23 }
0x236b   :  { %2619 = vrot.lane.b32.xlu1 %v2617_v27, %s4274_s5 }
0x23d8   :  { %v2557_v29 = vpop.permute.xlu0 %2556 }
0x23d9   :  { %v4990_v30 = vadd.f32 %v2557_v29, %v2549_v28 }
0x23db   :  { %4089 = vtanh.f32 %v4990_v30 }
0x23dd   :  { %v2620_v33 = vpop.permute.xlu1 %2619 }
0x23de   :  { %v4994_v35 = vadd.f32 %v2620_v33, %v2612_v31  ;;  %v5047_v33 = vld [vmem:[#allocation9 + $0x8] sm:$0xff]  }
0x23e0   :  { %4091 = vtanh.f32 %v4994_v35 }
0x23e8   :  { %v4090_v36 = vpop.eup %4089 }
0x23e9   :  { %2562 = vrot.lane.b32.xlu0 %v4090_v36, %s4265_s24 }
0x23ed   :  { %v4092_v37 = vpop.eup %4091 }
0x23ee   :  { %2625 = vrot.lane.b32.xlu1 %v4092_v37, %s4265_s24 }
0x245b   :  { %v2563_v38 = vpop.permute.xlu0 %2562 }
0x245c   :  { %v2565_v39 = vmul.f32 %v2563_v38, %v2548_v20 }
0x245e   :  { %v2630_v40 = vpack.c.bf16 %v2565_v39, %v2565_v39 }
0x2460   :  { %2632 = vrot.lane.b32.xlu0 %v2630_v40, %s4274_s5  ;;  %v2626_v42 = vpop.permute.xlu1 %2625 }
0x2461   :  { %v2628_v47 = vmul.f32 %v2626_v42, %v2611_v23 }
0x2463   :  { %v2629_v48 = vpack.c.bf16 %v2628_v47, %v2628_v47 }
0x2465   :  { %2678 = vrot.lane.b32.xlu1 %v2629_v48, %s4274_s5 }
0x24d2   :  { %v2633_v49 = vpop.permute.xlu0 %2632 }
0x24d3   :  { %3869 = vmatmul.mubr.msk.bf16.vlgmr.msra.gmra.mxu0 %vm389_vm5, %v2633_v49  ;;  %v2924_v49 = vld [vmem:[#allocation2 + $0xe] sm:$0x1] }
0x24d4   :  { %3881 = vmatpush3.bf16.msra.mxu0 %v4721_v58  ;;  %3884 = vmatprep.mubr.msk.bf16.mxu0 %vm4272_vm1, %v4271_v2 }
0x24d5   :  { %3882 = vmatprep.subr.bf16.mxu0 %v4271_v2 }
0x24d7   :  { %v2679_v50 = vpop.permute.xlu1 %2678 }
0x24d8   :  { %3883 = vmatpush3.bf16.msra.mxu0 %v4727_v60  ;;  %3877 = vmatmul.mubr.msk.bf16.vlgmr.msra.gmra.mxu1 %vm389_vm5, %v2679_v50 }
0x24d9   :  { %3896 = vmatprep.subr.bf16.mxu0 %v4271_v2  ;;  %3889 = vmatpush3.bf16.msra.mxu1 %v4774_v43 }
0x24da   :  { %3890 = vmatprep.subr.bf16.mxu1 %v4271_v2  ;;  %3892 = vmatprep.mubr.msk.bf16.mxu1 %vm4272_vm1, %v4271_v2 }
0x24db   :  { %3885 = vmatmul.mubr.msk.bf16.vlgmr.msra.gmra.mxu0 %vm389_vm5, %v2679_v50 }
0x24dc   :  { %3897 = vmatpush3.bf16.msra.mxu0 %v4787_v44  ;;  %3900 = vmatprep.mubr.msk.bf16.mxu0 %vm4272_vm1, %v4271_v2 }
0x24dd   :  { %3898 = vmatprep.subr.bf16.mxu0 %v4271_v2  ;;  %3891 = vmatpush3.bf16.msra.mxu1 %v4782_v41 }
0x24de   :  { %3904 = vmatprep.subr.bf16.mxu1 %v4271_v2 }
0x24e0   :  { %3899 = vmatpush3.bf16.msra.mxu0 %v4793_v45 }
0x24e1   :  { %3912 = vmatprep.subr.bf16.mxu0 %v4271_v2 }
0x2593   :  { %v2671_v58 = vpop.f32.mrf.mxu0 }
0x2595   :  { %v3870_v60 = vpop.f32.mrf.mxu0 }
0x2597   :  { %v2674_v51 = vpop.f32.mrf.mxu0 }
0x2598   :  { %v2717_v53 = vpop.f32.mrf.mxu1 }
0x2599   :  { %v3871_v55 = vpop.f32.mrf.mxu0  ;;  %v2718_v56 = vadd.f32 %v2717_v53, %v2671_v58 }
0x259a   :  { %v3878_v57 = vpop.f32.mrf.mxu1 }
0x259b   :  { %v2723_v59 = vadd.f32 %v4800_v52, %v2718_v56  ;;  %v2780_v61 = vpop.f32.mrf.mxu0 }
0x259c   :  { %v2786_v4 = vadd.f32 %v2780_v61, %v2745_v62  ;;  %v2720_v5 = vpop.f32.mrf.mxu1 }
0x259d   :  { %v2724_v6 = vmul.f32 %v2723_v59, %v4422_v46  ;;  %v3886_v7 = vpop.f32.mrf.mxu0 }
0x259e   :  { %v2787_v63 = vmul.f32 %v2786_v4, %v4422_v46  ;;  %v3879_v8 = vpop.f32.mrf.mxu1 }
0x259f   :  { %4093 = vtanh.f32 %v2724_v6  ;;  %v2783_v9 = vpop.f32.mrf.mxu0 }
0x25a0   :  { %4095 = vtanh.f32 %v2787_v63 }
0x25a1   :  { %v3887_v10 = vpop.f32.mrf.mxu0 }
0x25ac   :  { %v4094_v1 = vpop.eup %4093 }
0x25ad   :  { %v4096_v11 = vpop.eup %4095  ;;  %v2726_v0 = vmul.f32 %v4094_v1, %v4422_v46 }
0x25ae   :  { %v2789_v32 = vmul.f32 %v4096_v11, %v4422_v46 }
0x25af   :  { %v2727_v3 = vadd.f32 %v2726_v0, %v4425_v54 }
0x25b0   :  { %v2790_v34 = vadd.f32 %v2789_v32, %v4425_v54 }
0x25b1   :  { %2730 = vrot.lane.b32.xlu0 %v2727_v3, %s4265_s24  ;;  %v2728_v17 = vmul.f32 %v2727_v3, %v4990_v30 }
0x25b2   :  { %2793 = vrot.lane.b32.xlu1 %v2790_v34, %s4265_s24  ;;  %v2791_v13 = vmul.f32 %v2790_v34, %v4994_v35  ;;  %v5057_v35 = vld [vmem:[#allocation9] sm:$0xff]  }
0x2623   :  { %v2731_v12 = vpop.permute.xlu0 %2730 }
0x2624   :  { %v2794_v14 = vpop.permute.xlu1 %2793  ;;  %v2733_v15 = vmul.f32 %v2731_v12, %v2727_v3 }
0x2625   :  { %v2796_v16 = vmul.f32 %v2794_v14, %v2790_v34 }
0x2626   :  { %2735 = vrot.lane.b32.xlu0 %v2733_v15, %s4274_s5 }
0x2627   :  { %2798 = vrot.lane.b32.xlu1 %v2796_v16, %s4274_s5 }
0x2698   :  { %v2736_v18 = vpop.permute.xlu0 %2735 }
0x2699   :  { %v2799_v19 = vpop.permute.xlu1 %2798  ;;  %v5035_v20 = vadd.f32 %v2736_v18, %v2728_v17  ;;  %v4131_v18 = vld [vmem:[#allocation10 + $0x8] sm:$0xff]  }
0x269a   :  { %v5037_v21 = vadd.f32 %v2799_v19, %v2791_v13  ;;  %v4130_v13 = vld [vmem:[#allocation12 + $0x8] sm:$0xff]   ;;  %v4132_v19 = vld [vmem:[#allocation12] sm:$0xff]  }
0x269b   :  { %4097 = vtanh.f32 %v5035_v20 }
0x269c   :  { %4099 = vtanh.f32 %v5037_v21 }
0x26a8   :  { %v4098_v22 = vpop.eup %4097 }
0x26a9   :  { %v4100_v23 = vpop.eup %4099  ;;  %2741 = vrot.lane.b32.xlu0 %v4098_v22, %s4265_s24 }
0x26aa   :  { %2804 = vrot.lane.b32.xlu1 %v4100_v23, %s4265_s24 }
0x271b   :  { %v2742_v24 = vpop.permute.xlu0 %2741 }
0x271c   :  { %v2805_v25 = vpop.permute.xlu1 %2804  ;;  %v2744_v26 = vmul.f32 %v2742_v24, %v2727_v3 }
0x271d   :  { %v2807_v27 = vmul.f32 %v2805_v25, %v2790_v34 }
0x271e   :  { %v2809_v28 = vpack.c.bf16 %v2744_v26, %v2744_v26 }
0x271f   :  { %v2808_v29 = vpack.c.bf16 %v2807_v27, %v2807_v27 }
0x2720   :  { %2811 = vrot.lane.b32.xlu0 %v2809_v28, %s4274_s5  ;;  %v4134_v28 = vld [vmem:[%s5150_s8] sm:$0x1] }
0x2721   :  { %2857 = vrot.lane.b32.xlu1 %v2808_v29, %s4274_s5 }
0x2792   :  { %v2812_v30 = vpop.permute.xlu0 %2811 }
0x2793   :  { %v2858_v31 = vpop.permute.xlu1 %2857  ;;  %3893 = vmatmul.mubr.msk.bf16.vlgmr.msra.gmra.mxu1 %vm389_vm5, %v2812_v30  ;;  %v3103_v30 = vld [vmem:[#allocation2 + $0xf] sm:$0x1] }
0x2794   :  { %3901 = vmatmul.mubr.msk.bf16.vlgmr.msra.gmra.mxu0 %vm389_vm5, %v2858_v31  ;;  %3905 = vmatpush3.bf16.msra.mxu1 %v5047_v33 }
0x2795   :  { %3906 = vmatprep.subr.bf16.mxu1 %v4271_v2  ;;  %3908 = vmatprep.mubr.msk.bf16.mxu1 %vm4272_vm1, %v4271_v2 }
0x2796   :  { %3913 = vmatpush3.bf16.msra.mxu0 %v4774_v43  ;;  %3916 = vmatprep.mubr.msk.bf16.mxu0 %vm4272_vm1, %v4271_v2 }
0x2797   :  { %3914 = vmatprep.subr.bf16.mxu0 %v4271_v2 }
0x2798   :  { %3907 = vmatpush3.bf16.msra.mxu1 %v5057_v35 }
0x2799   :  { %3920 = vmatprep.subr.bf16.mxu1 %v4271_v2 }
0x279a   :  { %3915 = vmatpush3.bf16.msra.mxu0 %v4782_v41 }
0x279b   :  { %3909 = vmatmul.mubr.msk.bf16.vlgmr.msra.gmra.mxu1 %vm389_vm5, %v2858_v31  ;;  %3928 = vmatprep.subr.bf16.mxu0 %v4271_v2 }
0x279c   :  { %3921 = vmatpush3.bf16.msra.mxu1 %v4787_v44  ;;  %3924 = vmatprep.mubr.msk.bf16.mxu1 %vm4272_vm1, %v4271_v2 }
0x279d   :  { %3922 = vmatprep.subr.bf16.mxu1 %v4271_v2 }
0x27a0   :  { %3923 = vmatpush3.bf16.msra.mxu1 %v4793_v45 }
0x27a1   :  { %3936 = vmatprep.subr.bf16.mxu1 %v4271_v2 }
0x2853   :  { %v2850_v43 = vpop.f32.mrf.mxu1 }
0x2854   :  { %v2896_v36 = vpop.f32.mrf.mxu0 }
0x2855   :  { %v2897_v37 = vadd.f32 %v2896_v36, %v2850_v43  ;;  %v3894_v38 = vpop.f32.mrf.mxu1 }
0x2856   :  { %v3902_v41 = vpop.f32.mrf.mxu0 }
0x2857   :  { %v2902_v39 = vadd.f32 %v4800_v52, %v2897_v37  ;;  %v2853_v40 = vpop.f32.mrf.mxu1 }
0x2858   :  { %v2899_v42 = vpop.f32.mrf.mxu0 }
0x2859   :  { %v2903_v44 = vmul.f32 %v2902_v39, %v4422_v46  ;;  %v3895_v47 = vpop.f32.mrf.mxu1 }
0x285a   :  { %v3903_v48 = vpop.f32.mrf.mxu0 }
0x285b   :  { %4101 = vtanh.f32 %v2903_v44  ;;  %v2959_v50 = vpop.f32.mrf.mxu1 }
0x285c   :  { %v2965_v58 = vadd.f32 %v2959_v50, %v2924_v49 }
0x285d   :  { %v3910_v45 = vpop.f32.mrf.mxu1 }
0x285e   :  { %v2966_v60 = vmul.f32 %v2965_v58, %v4422_v46 }
0x285f   :  { %v2962_v51 = vpop.f32.mrf.mxu1 }
0x2860   :  { %4103 = vtanh.f32 %v2966_v60 }
0x2861   :  { %v3911_v53 = vpop.f32.mrf.mxu1 }
0x2868   :  { %v4102_v55 = vpop.eup %4101 }
0x2869   :  { %v2905_v56 = vmul.f32 %v4102_v55, %v4422_v46 }
0x286b   :  { %v2906_v52 = vadd.f32 %v2905_v56, %v4425_v54 }
0x286d   :  { %v4104_v57 = vpop.eup %4103  ;;  %2909 = vrot.lane.b32.xlu0 %v2906_v52, %s4265_s24  ;;  %v2907_v7 = vmul.f32 %v2906_v52, %v5035_v20  ;;  %v4133_v20 = vld [vmem:[#allocation10] sm:$0xff]  }
0x286e   :  { %v2968_v59 = vmul.f32 %v4104_v57, %v4422_v46 }
0x2870   :  { %v2969_v62 = vadd.f32 %v2968_v59, %v4425_v54 }
0x2872   :  { %2972 = vrot.lane.b32.xlu1 %v2969_v62, %s4265_s24  ;;  %v2970_v9 = vmul.f32 %v2969_v62, %v5037_v21 }
0x28df   :  { %v2910_v61 = vpop.permute.xlu0 %2909 }
0x28e0   :  { %v2912_v4 = vmul.f32 %v2910_v61, %v2906_v52 }
0x28e2   :  { %2914 = vrot.lane.b32.xlu0 %v2912_v4, %s4274_s5 }
0x28e4   :  { %v2973_v5 = vpop.permute.xlu1 %2972 }
0x28e5   :  { %v2975_v6 = vmul.f32 %v2973_v5, %v2969_v62 }
0x28e7   :  { %2977 = vrot.lane.b32.xlu1 %v2975_v6, %s4274_s5 }
0x2954   :  { %v2915_v63 = vpop.permute.xlu0 %2914 }
0x2955   :  { %v5082_v8 = vadd.f32 %v2915_v63, %v2907_v7 }
0x2957   :  { %4105 = vtanh.f32 %v5082_v8 }
0x2959   :  { %v2978_v10 = vpop.permute.xlu1 %2977 }
0x295a   :  { %v5086_v1 = vadd.f32 %v2978_v10, %v2970_v9 }
0x295c   :  { %4107 = vtanh.f32 %v5086_v1 }
0x2964   :  { %v4106_v11 = vpop.eup %4105 }
0x2965   :  { %2920 = vrot.lane.b32.xlu0 %v4106_v11, %s4265_s24 }
0x2969   :  { %v4108_v0 = vpop.eup %4107 }
0x296a   :  { %2983 = vrot.lane.b32.xlu1 %v4108_v0, %s4265_s24 }
0x29d7   :  { %v2921_v32 = vpop.permute.xlu0 %2920 }
0x29d8   :  { %v2923_v3 = vmul.f32 %v2921_v32, %v2906_v52 }
0x29da   :  { %v2988_v34 = vpack.c.bf16 %v2923_v3, %v2923_v3 }
0x29dc   :  { %2990 = vrot.lane.b32.xlu0 %v2988_v34, %s4274_s5  ;;  %v2984_v12 = vpop.permute.xlu1 %2983 }
0x29dd   :  { %v2986_v14 = vmul.f32 %v2984_v12, %v2969_v62 }
0x29df   :  { %v2987_v15 = vpack.c.bf16 %v2986_v14, %v2986_v14 }
0x29e1   :  { %3036 = vrot.lane.b32.xlu1 %v2987_v15, %s4274_s5 }
0x2a4e   :  { %v2991_v16 = vpop.permute.xlu0 %2990 }
0x2a4f   :  { %3917 = vmatmul.mubr.msk.bf16.vlgmr.msra.gmra.mxu0 %vm389_vm5, %v2991_v16 }
0x2a50   :  { %3929 = vmatpush3.bf16.msra.mxu0 %v5047_v33  ;;  %3932 = vmatprep.mubr.msk.bf16.mxu0 %vm4272_vm1, %v4271_v2 }
0x2a51   :  { %3930 = vmatprep.subr.bf16.mxu0 %v4271_v2 }
0x2a53   :  { %v3037_v17 = vpop.permute.xlu1 %3036 }
0x2a54   :  { %3931 = vmatpush3.bf16.msra.mxu0 %v5057_v35  ;;  %3925 = vmatmul.mubr.msk.bf16.vlgmr.msra.gmra.mxu1 %vm389_vm5, %v3037_v17 }
0x2a55   :  { %3944 = vmatprep.subr.bf16.mxu0 %v4271_v2  ;;  %3937 = vmatpush3.bf16.msra.mxu1 %v4130_v13 }
0x2a56   :  { %3938 = vmatprep.subr.bf16.mxu1 %v4271_v2  ;;  %3940 = vmatprep.mubr.msk.bf16.mxu1 %vm4272_vm1, %v4271_v2 }
0x2a57   :  { %3933 = vmatmul.mubr.msk.bf16.vlgmr.msra.gmra.mxu0 %vm389_vm5, %v3037_v17 }
0x2a58   :  { %3945 = vmatpush3.bf16.msra.mxu0 %v4131_v18  ;;  %3948 = vmatprep.mubr.msk.bf16.mxu0 %vm4272_vm1, %v4271_v2 }
0x2a59   :  { %3946 = vmatprep.subr.bf16.mxu0 %v4271_v2  ;;  %3939 = vmatpush3.bf16.msra.mxu1 %v4132_v19 }
0x2a5c   :  { %3947 = vmatpush3.bf16.msra.mxu0 %v4133_v20  ;;  %v3394_v20 = vld [vmem:[%s5151_s9] ss:$0 sm:$0xff]  ;;  %s4276_s9 = smov [#allocation13]  }
0x2a5d   :  { %s3310_s6 = sshll.u32 %s4276_s9, 4  ;;  %s3311_s6 = int_to_ptr.vmem [resolvable:$true] %s3310_s6 }
0x2a5e   :  { %s4235_s17 = scalar_lea.vmem %s3311_s6, 16  ;;  %p4240_p12 = scmp.lt.s32.totalorder %s3311_s6, %s3311_s6 }
0x2a5f   :  { %p4236_p11 = scmp.ne.s32.totalorder %s3311_s6, %s4235_s17 }
0x2b0f   :  { %v3029_v21 = vpop.f32.mrf.mxu0 }
0x2b11   :  { %v3918_v22 = vpop.f32.mrf.mxu0 }
0x2b13   :  { %v3032_v23 = vpop.f32.mrf.mxu0 }
0x2b14   :  { %v3075_v24 = vpop.f32.mrf.mxu1 }
0x2b15   :  { %v3919_v25 = vpop.f32.mrf.mxu0  ;;  %v3076_v26 = vadd.f32 %v3075_v24, %v3029_v21 }
0x2b16   :  { %v3926_v27 = vpop.f32.mrf.mxu1 }
0x2b17   :  { %v3081_v29 = vadd.f32 %v4134_v28, %v3076_v26  ;;  %v3138_v31 = vpop.f32.mrf.mxu0 }
0x2b18   :  { %v3144_v33 = vadd.f32 %v3138_v31, %v3103_v30  ;;  %v3078_v2 = vpop.f32.mrf.mxu1 }
0x2b19   :  { %v3082_v35 = vmul.f32 %v3081_v29, %v4422_v46  ;;  %v3934_v43 = vpop.f32.mrf.mxu0  ;;  %v3300_v29 = vld [vmem:[#allocation3] sm:$0x1] }
0x2b1a   :  { %v3145_v36 = vmul.f32 %v3144_v33, %v4422_v46  ;;  %v3927_v37 = vpop.f32.mrf.mxu1 }
0x2b1b   :  { %4109 = vtanh.f32 %v3082_v35  ;;  %v3141_v38 = vpop.f32.mrf.mxu0 }
0x2b1c   :  { %4111 = vtanh.f32 %v3145_v36 }
0x2b1d   :  { %v3935_v41 = vpop.f32.mrf.mxu0 }
0x2b28   :  { %v4110_v39 = vpop.eup %4109 }
0x2b29   :  { %v4112_v40 = vpop.eup %4111  ;;  %v3084_v42 = vmul.f32 %v4110_v39, %v4422_v46 }
0x2b2a   :  { %v3147_v44 = vmul.f32 %v4112_v40, %v4422_v46 }
0x2b2b   :  { %v3085_v47 = vadd.f32 %v3084_v42, %v4425_v54 }
0x2b2c   :  { %v3148_v48 = vadd.f32 %v3147_v44, %v4425_v54 }
0x2b2d   :  { %3088 = vrot.lane.b32.xlu0 %v3085_v47, %s4265_s24  ;;  %v3086_v60 = vmul.f32 %v3085_v47, %v5082_v8 }
0x2b2e   :  { %3151 = vrot.lane.b32.xlu1 %v3148_v48, %s4265_s24  ;;  %v3149_v51 = vmul.f32 %v3148_v48, %v5086_v1 }
0x2b9f   :  { %v3089_v49 = vpop.permute.xlu0 %3088 }
0x2ba0   :  { %v3152_v50 = vpop.permute.xlu1 %3151  ;;  %v3091_v58 = vmul.f32 %v3089_v49, %v3085_v47 }
0x2ba1   :  { %v3154_v45 = vmul.f32 %v3152_v50, %v3148_v48 }
0x2ba2   :  { %3093 = vrot.lane.b32.xlu0 %v3091_v58, %s4274_s5 }
0x2ba3   :  { %3156 = vrot.lane.b32.xlu1 %v3154_v45, %s4274_s5 }
0x2c14   :  { %v3094_v53 = vpop.permute.xlu0 %3093 }
0x2c15   :  { %v3157_v55 = vpop.permute.xlu1 %3156  ;;  %v3096_v56 = vadd.f32 %v3094_v53, %v3086_v60 }
0x2c16   :  { %v3159_v52 = vadd.f32 %v3157_v55, %v3149_v51 }
0x2c17   :  { %4113 = vtanh.f32 %v3096_v56 }
0x2c18   :  { %4115 = vtanh.f32 %v3159_v52 }
0x2c24   :  { %v4114_v57 = vpop.eup %4113 }
0x2c25   :  { %v4116_v59 = vpop.eup %4115  ;;  %3099 = vrot.lane.b32.xlu0 %v4114_v57, %s4265_s24 }
0x2c26   :  { %3162 = vrot.lane.b32.xlu1 %v4116_v59, %s4265_s24 }
0x2c97   :  { %v3100_v62 = vpop.permute.xlu0 %3099 }
0x2c98   :  { %v3163_v61 = vpop.permute.xlu1 %3162  ;;  %v3102_v4 = vmul.f32 %v3100_v62, %v3085_v47 }
0x2c99   :  { %v3165_v5 = vmul.f32 %v3163_v61, %v3148_v48 }
0x2c9a   :  { %v3167_v6 = vpack.c.bf16 %v3102_v4, %v3102_v4 }
0x2c9b   :  { %v3166_v7 = vpack.c.bf16 %v3165_v5, %v3165_v5 }
0x2c9c   :  { %3169 = vrot.lane.b32.xlu0 %v3167_v6, %s4274_s5 }
0x2c9d   :  { %3215 = vrot.lane.b32.xlu1 %v3166_v7, %s4274_s5 }
0x2d0e   :  { %v3170_v63 = vpop.permute.xlu0 %3169 }
0x2d0f   :  { %v3216_v8 = vpop.permute.xlu1 %3215  ;;  %3941 = vmatmul.mubr.msk.bf16.vlgmr.msra.gmra.mxu1 %vm389_vm5, %v3170_v63 }
0x2d10   :  { %3949 = vmatmul.mubr.msk.bf16.vlgmr.msra.gmra.mxu0 %vm389_vm5, %v3216_v8 }
0x2dcf   :  { %v3208_v9 = vpop.f32.mrf.mxu1 }
0x2dd0   :  { %v3254_v10 = vpop.f32.mrf.mxu0 }
0x2dd1   :  { %v3255_v1 = vadd.f32 %v3254_v10, %v3208_v9  ;;  %v3942_v11 = vpop.f32.mrf.mxu1 }
0x2dd2   :  { %v3950_v0 = vpop.f32.mrf.mxu0 }
0x2dd3   :  { %v3260_v32 = vadd.f32 %v4134_v28, %v3255_v1  ;;  %v3211_v3 = vpop.f32.mrf.mxu1 }
0x2dd4   :  { %v3257_v34 = vpop.f32.mrf.mxu0 }
0x2dd5   :  { %v3261_v12 = vmul.f32 %v3260_v32, %v4422_v46  ;;  %v3943_v14 = vpop.f32.mrf.mxu1 }
0x2dd6   :  { %v3951_v15 = vpop.f32.mrf.mxu0 }
0x2dd7   :  { %4117 = vtanh.f32 %v3261_v12 }
0x2de4   :  { %v4118_v16 = vpop.eup %4117 }
0x2de5   :  { %v3263_v17 = vmul.f32 %v4118_v16, %v4422_v46 }
0x2de7   :  { %v3264_v13 = vadd.f32 %v3263_v17, %v4425_v54 }
0x2de9   :  { %3267 = vrot.lane.b32.xlu0 %v3264_v13, %s4265_s24  ;;  %v3265_v21 = vmul.f32 %v3264_v13, %v3096_v56 }
0x2e5b   :  { %v3268_v18 = vpop.permute.xlu0 %3267 }
0x2e5c   :  { %v3270_v19 = vmul.f32 %v3268_v18, %v3264_v13 }
0x2e5e   :  { %3272 = vrot.lane.b32.xlu1 %v3270_v19, %s4274_s5 }
0x2e62   :  { %3288 = vrot.lane.b32.xlu1 %v3394_v20, %s4275_s16 }
0x2ed0   :  { %v3273_v22 = vpop.permute.xlu1 %3272 }
0x2ed1   :  { %v3275_v23 = vadd.f32 %v3273_v22, %v3265_v21 }
0x2ed3   :  { %4119 = vtanh.f32 %v3275_v23 }
0x2ed4   :  { %v3289_v54 = vpop.permute.xlu1 %3288 }
0x2ee0   :  { %v4120_v24 = vpop.eup %4119 }
0x2ee1   :  { %3278 = vrot.lane.b32.xlu0 %v4120_v24, %s4265_s24  ;;  %s4239_s24 = scalar_lea.vmem %s3311_s6, 32 }
0x2ee2   :  { %p4241_p13 = scmp.lt.s32.totalorder %s4239_s24, %s4235_s17 }
0x2ee4   :  { %p4242_p0 = por %p4241_p13, %p4240_p12 }
0x2ee6   :  { %p4243_p1 = pnand %p4242_p0, %p4236_p11 }
0x2f53   :  { %v3279_v46 = vpop.permute.xlu0 %3278 }
0x2f54   :  { %v3281_v25 = vmul.f32 %v3279_v46, %v3264_v13 }
0x2f56   :  { %v3291_v26 = vmul.f32 %v3289_v54, %v3281_v25 }
0x2f58   :  { %3293 = vrot.lane.b32.xlu0 %v3291_v26, %s4274_s5 }
0x2fca   :  { %v3294_v27 = vpop.permute.xlu0 %3293 }
0x2fcb   :  { %v3297_v28 = vsel %vm3296_vm6, %v3294_v27, 0.0 }
0x2fcc   :  { %3298 = vadd.xlane.f32.xlu1 %v3297_v28 }
0x3055   :  { %v3299_v30 = vpop.xlane.xlu1 %3298 }
0x3056   :  { %v3301_v31 = vadd.f32 %v3300_v29, %v3299_v30 }
0x3058   :  { %3303 = vst.msk [vmem:[#allocation13] sm:$0x1] %vm3302_vm7, %v3301_v31 }
0x3059   :  { %4246 = shalt.err (!%p4243_p1)
}
0x305a   :  { %3313 = dma.vmem_to_hbm [thread:$0]  %s3311_s6, 16, %s5153_s11, [#allocation6]  }
0x305b   :  { %4261 = dma.done.wait [#allocation6], 16  }
0x305c   :  { %4262 = vsyncadd [#allocation6], 4294967280 }
0x305d   :  { %3317 = vsyncpa [#allocation5], 1 }
0x305e   :  { %3318 = vsyncpa [#allocation8], 1 }
0x305f   :  { %3319 = vsyncpa [#allocation11], 1 }
0x3060   :  { %3320 = vsyncpa [#allocation6], 1 }

</bundles_post_ra>
